<compile_context>
chip_gen: v5e
topology: v5e:2x2
jax: 0.10.0
libtpu: 0.0.40
codegen_flags: <defaults>
</compile_context>

<pallas_src>
import functools

import jax
import jax.numpy as jnp
from jax import lax
from jax.experimental import pallas as pl
from jax.experimental.pallas import tpu as pltpu

_BN_EPS = 1e-5


def _round_up(x, m):
    return (x + m - 1) // m * m


# --------------------------------------------------------------------------
# Pallas kernel: fused 3x3 conv + bias + ReLU, 9 taps stacked along K
# --------------------------------------------------------------------------
def _repvgg_fused_kernel(x_ref, w_ref, b_ref, o_ref, rhs_ref, *, H, Wp, C_in):
    """One (batch, C_out-tile) grid step of the fused RepVGG conv.

    x_ref   : (1, C_in, (H+3)*Wp)  zero-padded input, spatial flattened, bf16
    w_ref   : (TCO, 9*C_in)        fused 3x3 kernel, taps stacked on K, bf16
    b_ref   : (TCO, 1)             fused bias, f32
    o_ref   : (1, TCO, H*Wp)       output in padded-width layout, bf16
    rhs_ref : (9*C_in, H*Wp)       VMEM scratch: tap-stacked RHS, bf16

    Wp is a multiple of 128, so the per-row (kh*Wp) shifts are lane-tile
    aligned; only kw=1/2 produce a lane-rotated copy (reused for all kh).
    Garbage columns w >= W of each row (and lane-crossing reads feeding them)
    are cropped by the wrapper, so they never affect valid outputs.
    """
    L = H * Wp
    Lsh = (H + 2) * Wp
    xv = x_ref[0]                                   # (C_in, (H+3)*Wp)

    for kw in range(3):
        xs = xv[:, kw:kw + Lsh]                     # lane shift by kw
        for kh in range(3):
            k = kh * 3 + kw                         # tap index
            rhs_ref[k * C_in:(k + 1) * C_in, :] = xs[:, kh * Wp:kh * Wp + L]

    # Single MXU matmul with K = 9*C_in; f32 accumulation.
    acc = jnp.dot(w_ref[...], rhs_ref[...], preferred_element_type=jnp.float32)
    o_ref[0] = jnp.maximum(acc + b_ref[...], 0.0).astype(o_ref.dtype)


# --------------------------------------------------------------------------
# Branch fusion (plain JAX glue) == RepVGGBlock.get_equivalent_kernel_bias
# --------------------------------------------------------------------------
def _fuse_conv_bn(kernel, bn):
    std = jnp.sqrt(bn["var"] + _BN_EPS)
    t = bn["gamma"] / std
    return kernel * t.reshape(-1, 1, 1, 1), bn["beta"] - bn["mean"] * t


def fuse_repvgg_params(params, C):
    k3, b3 = _fuse_conv_bn(params["w3"], params["bn3"])
    k1 = jnp.pad(params["w1"], ((0, 0), (0, 0), (1, 1), (1, 1)))
    k1, b1 = _fuse_conv_bn(k1, params["bn1"])
    idx = jnp.arange(C)
    id_kernel = jnp.zeros((C, C, 3, 3), jnp.float32).at[idx, idx, 1, 1].set(1.0)
    kid, bid = _fuse_conv_bn(id_kernel, params["bn_id"])
    return k3 + k1 + kid, b3 + b1 + bid


# --------------------------------------------------------------------------
# Forward wrapper
# --------------------------------------------------------------------------
def repvgg_forward(x, params):
    """x: (B, C, H, W) float32 NCHW; stride=1 / groups=1 RepVGGBlock forward."""
    B, C_in, H, W = x.shape
    kernel_f, bias_f = fuse_repvgg_params(params, C_in)
    C_out = kernel_f.shape[0]

    # Lane-dense layout: each padded row occupies Wp lanes (multiple of 128).
    Wp = _round_up(W + 2, 128)
    L = H * Wp                    # output lanes per channel (multiple of 128)
    Lp = (H + 3) * Wp             # input lanes (1 top + 2 bottom pad rows)

    # Zero pad: 1 top / 2 bottom rows, 1 left / Wp-W-1 right cols, flatten
    # spatial onto lanes, cast to bf16 for the MXU.
    # TODO(synk): in a full network, keep this padded-width bf16 layout
    # between RepVGG blocks to avoid the pad here and the crop below (each is
    # an extra HBM pass in XLA around a memory-bound conv).
    x_pad = jnp.pad(x, ((0, 0), (0, 0), (1, 2), (1, Wp - W - 1)))
    x_pad = x_pad.reshape(B, C_in, Lp).astype(jnp.bfloat16)

    # C_out tiling: 256 matches the 2x256^2 MXU on v6e/v7x (use 128 on v5e).
    TCO = min(C_out, 256)
    n_co = pl.cdiv(C_out, TCO)
    C_out_pad = n_co * TCO

    # (C_out, C_in, 3, 3) -> (C_out, 9*C_in): column block k = kh*3 + kw.
    w_mat = jnp.transpose(kernel_f, (0, 2, 3, 1)).reshape(C_out, 9 * C_in)
    w_mat = jnp.pad(w_mat, ((0, C_out_pad - C_out), (0, 0))).astype(jnp.bfloat16)
    bias = jnp.pad(bias_f, (0, C_out_pad - C_out)).reshape(C_out_pad, 1)
    bias = bias.astype(jnp.float32)

    # TODO(synk): add spatial (H-row) and C_in (K) grid tiling for very large
    # feature maps / very wide layers so the RHS scratch and weight tiles fit
    # v7x's 64 MiB VMEM; typical YOLOX RepVGG stages fit the budget below.
    out_flat = pl.pallas_call(
        functools.partial(_repvgg_fused_kernel, H=H, Wp=Wp, C_in=C_in),
        out_shape=jax.ShapeDtypeStruct((B, C_out_pad, L), jnp.bfloat16),
        grid=(B, n_co),
        in_specs=[
            pl.BlockSpec((1, C_in, Lp), lambda b, co: (b, 0, 0)),   # x: per batch, reused across co
            pl.BlockSpec((TCO, 9 * C_in), lambda b, co: (co, 0)),   # fused weights (C_out tiled)
            pl.BlockSpec((TCO, 1), lambda b, co: (co, 0)),          # fused bias
        ],
        out_specs=pl.BlockSpec((1, TCO, L), lambda b, co: (b, co, 0)),
        scratch_shapes=[pltpu.VMEM((9 * C_in, L), jnp.bfloat16)],
        compiler_params=pltpu.CompilerParams(
            dimension_semantics=("parallel", "parallel"),
            vmem_limit_bytes=48 * 1024 * 1024),
    )(x_pad, w_mat, bias)

    # Drop padded output channels and the garbage padded-width columns.
    return out_flat.reshape(B, C_out_pad, H, Wp)[:, :C_out, :, :W]


# --------------------------------------------------------------------------
# Pure-JAX reference: the three un-fused branches, exactly like the module
# --------------------------------------------------------------------------
def repvgg_reference(x, params):
    def conv(xx, w, pad):
        return lax.conv_general_dilated(
            xx, w, window_strides=(1, 1), padding=[(pad, pad), (pad, pad)],
            dimension_numbers=("NCHW", "OIHW", "NCHW"))

    def bn(y, p):
        g = p["gamma"].reshape(1, -1, 1, 1)
        b = p["beta"].reshape(1, -1, 1, 1)
        m = p["mean"].reshape(1, -1, 1, 1)
        v = p["var"].reshape(1, -1, 1, 1)
        return g * (y - m) / jnp.sqrt(v + _BN_EPS) + b

    y = bn(conv(x, params["w3"], 1), params["bn3"])       # rbr_dense
    y = y + bn(conv(x, params["w1"], 0), params["bn1"])   # rbr_1x1
    y = y + bn(x, params["bn_id"])                        # rbr_identity
    return jnp.maximum(y, 0.0)                            # nonlinearity (ReLU)


# --------------------------------------------------------------------------
# Parameter init
# --------------------------------------------------------------------------
def init_params(key, C):
    def bn_params(k):
        k1, k2, k3, k4 = jax.random.split(k, 4)
        return {
            "gamma": jax.random.uniform(k1, (C,), jnp.float32, 0.5, 1.5),
            "beta": jax.random.normal(k2, (C,), jnp.float32) * 0.1,
            "mean": jax.random.normal(k3, (C,), jnp.float32) * 0.1,
            "var": jax.random.uniform(k4, (C,), jnp.float32, 0.5, 1.5),
        }

    ks = jax.random.split(key, 5)
    s3 = 1.0 / (9.0 * C) ** 0.5
    s1 = 1.0 / float(C) ** 0.5
    return {
        "w3": jax.random.normal(ks[0], (C, C, 3, 3), jnp.float32) * s3,
        "bn3": bn_params(ks[1]),
        "w1": jax.random.normal(ks[2], (C, C, 1, 1), jnp.float32) * s1,
        "bn1": bn_params(ks[3]),
        "bn_id": bn_params(ks[4]),
    }


if __name__ == "__main__":
    B, C, H, W = 2, 32, 16, 16      # NCHW, in_channels == out_channels, stride=1

    key = jax.random.PRNGKey(0)
    kx, kp = jax.random.split(key)
    x = jax.random.normal(kx, (B, C, H, W), jnp.float32)
    params = init_params(kp, C)

    out = repvgg_forward(x, params)
    out = jax.block_until_ready(out)
    ref = repvgg_reference(x, params)

    # bf16 MXU inputs + bf16 output store with f32 accumulation -> loosened
    # tolerance vs the pure-f32 reference.
    if jnp.allclose(out.astype(jnp.float32), ref, atol=7.5e-2, rtol=3e-2):
        print("KERNEL_OK")
    else:
        err = float(jnp.max(jnp.abs(out.astype(jnp.float32) - ref)))
        print(f"MISMATCH max_abs_err={err}")
</pallas_src>

<mosaic_0001>
module attributes {stable_mosaic.version = 11 : i64} {
  func.func @_repvgg_fused_kernel(%arg0: i32, %arg1: i32, %arg2: memref<1x32x2432xbf16, #tpu.memory_space<vmem>>, %arg3: memref<32x288xbf16, #tpu.memory_space<vmem>>, %arg4: memref<32x1xf32, #tpu.memory_space<vmem>>, %arg5: memref<1x32x2048xbf16, #tpu.memory_space<vmem>>, %arg6: memref<288x2048xbf16, #tpu.memory_space<vmem>>) attributes {dimension_semantics = [#tpu.dimension_semantics<parallel>, #tpu.dimension_semantics<parallel>], iteration_bounds = array<i64: 2, 1>, scalar_prefetch = 0 : i64, scratch_operands = 1 : i64, tpu.core_type = #tpu.core_type<tc>, window_params = [{transform_indices = @transform_0, window_bounds = array<i64: 1, 32, 2432>}, {transform_indices = @transform_1, window_bounds = array<i64: 32, 288>}, {transform_indices = @transform_2, window_bounds = array<i64: 32, 1>}, {transform_indices = @transform_3, window_bounds = array<i64: 1, 32, 2048>}]} {
    %c0 = arith.constant 0 : index
    %c0_0 = arith.constant 0 : index
    %c0_1 = arith.constant 0 : index
    %0 = vector.load %arg2[%c0, %c0_0, %c0_1] : memref<1x32x2432xbf16, #tpu.memory_space<vmem>>, vector<1x32x2432xbf16>
    %1 = vector.shape_cast %0 : vector<1x32x2432xbf16> to vector<32x2432xbf16>
    %2 = vector.extract_strided_slice %1 {offsets = [0, 0], sizes = [32, 2304], strides = [1, 1]} : vector<32x2432xbf16> to vector<32x2304xbf16>
    %3 = vector.extract_strided_slice %2 {offsets = [0, 0], sizes = [32, 2048], strides = [1, 1]} : vector<32x2304xbf16> to vector<32x2048xbf16>
    %c0_2 = arith.constant 0 : index
    %c0_3 = arith.constant 0 : index
    %4 = vector.load %arg6[%c0_2, %c0_3] : memref<288x2048xbf16, #tpu.memory_space<vmem>>, vector<32x2048xbf16>
    tpu.vector_store %arg6[%c0_2, %c0_3], %3 {strides = array<i32>} : memref<288x2048xbf16, #tpu.memory_space<vmem>>, vector<32x2048xbf16>,
    %5 = vector.extract_strided_slice %2 {offsets = [0, 128], sizes = [32, 2048], strides = [1, 1]} : vector<32x2304xbf16> to vector<32x2048xbf16>
    %c96 = arith.constant 96 : index
    %c0_4 = arith.constant 0 : index
    %6 = vector.load %arg6[%c96, %c0_4] : memref<288x2048xbf16, #tpu.memory_space<vmem>>, vector<32x2048xbf16>
    tpu.vector_store %arg6[%c96, %c0_4], %5 {strides = array<i32>} : memref<288x2048xbf16, #tpu.memory_space<vmem>>, vector<32x2048xbf16>,
    %7 = vector.extract_strided_slice %2 {offsets = [0, 256], sizes = [32, 2048], strides = [1, 1]} : vector<32x2304xbf16> to vector<32x2048xbf16>
    %c192 = arith.constant 192 : index
    %c0_5 = arith.constant 0 : index
    %8 = vector.load %arg6[%c192, %c0_5] : memref<288x2048xbf16, #tpu.memory_space<vmem>>, vector<32x2048xbf16>
    tpu.vector_store %arg6[%c192, %c0_5], %7 {strides = array<i32>} : memref<288x2048xbf16, #tpu.memory_space<vmem>>, vector<32x2048xbf16>,
    %9 = vector.extract_strided_slice %1 {offsets = [0, 1], sizes = [32, 2304], strides = [1, 1]} : vector<32x2432xbf16> to vector<32x2304xbf16>
    %10 = vector.extract_strided_slice %9 {offsets = [0, 0], sizes = [32, 2048], strides = [1, 1]} : vector<32x2304xbf16> to vector<32x2048xbf16>
    %c32 = arith.constant 32 : index
    %c0_6 = arith.constant 0 : index
    %11 = vector.load %arg6[%c32, %c0_6] : memref<288x2048xbf16, #tpu.memory_space<vmem>>, vector<32x2048xbf16>
    tpu.vector_store %arg6[%c32, %c0_6], %10 {strides = array<i32>} : memref<288x2048xbf16, #tpu.memory_space<vmem>>, vector<32x2048xbf16>,
    %12 = vector.extract_strided_slice %9 {offsets = [0, 128], sizes = [32, 2048], strides = [1, 1]} : vector<32x2304xbf16> to vector<32x2048xbf16>
    %c128 = arith.constant 128 : index
    %c0_7 = arith.constant 0 : index
    %13 = vector.load %arg6[%c128, %c0_7] : memref<288x2048xbf16, #tpu.memory_space<vmem>>, vector<32x2048xbf16>
    tpu.vector_store %arg6[%c128, %c0_7], %12 {strides = array<i32>} : memref<288x2048xbf16, #tpu.memory_space<vmem>>, vector<32x2048xbf16>,
    %14 = vector.extract_strided_slice %9 {offsets = [0, 256], sizes = [32, 2048], strides = [1, 1]} : vector<32x2304xbf16> to vector<32x2048xbf16>
    %c224 = arith.constant 224 : index
    %c0_8 = arith.constant 0 : index
    %15 = vector.load %arg6[%c224, %c0_8] : memref<288x2048xbf16, #tpu.memory_space<vmem>>, vector<32x2048xbf16>
    tpu.vector_store %arg6[%c224, %c0_8], %14 {strides = array<i32>} : memref<288x2048xbf16, #tpu.memory_space<vmem>>, vector<32x2048xbf16>,
    %16 = vector.extract_strided_slice %1 {offsets = [0, 2], sizes = [32, 2304], strides = [1, 1]} : vector<32x2432xbf16> to vector<32x2304xbf16>
    %17 = vector.extract_strided_slice %16 {offsets = [0, 0], sizes = [32, 2048], strides = [1, 1]} : vector<32x2304xbf16> to vector<32x2048xbf16>
    %c64 = arith.constant 64 : index
    %c0_9 = arith.constant 0 : index
    %18 = vector.load %arg6[%c64, %c0_9] : memref<288x2048xbf16, #tpu.memory_space<vmem>>, vector<32x2048xbf16>
    tpu.vector_store %arg6[%c64, %c0_9], %17 {strides = array<i32>} : memref<288x2048xbf16, #tpu.memory_space<vmem>>, vector<32x2048xbf16>,
    %19 = vector.extract_strided_slice %16 {offsets = [0, 128], sizes = [32, 2048], strides = [1, 1]} : vector<32x2304xbf16> to vector<32x2048xbf16>
    %c160 = arith.constant 160 : index
    %c0_10 = arith.constant 0 : index
    %20 = vector.load %arg6[%c160, %c0_10] : memref<288x2048xbf16, #tpu.memory_space<vmem>>, vector<32x2048xbf16>
    tpu.vector_store %arg6[%c160, %c0_10], %19 {strides = array<i32>} : memref<288x2048xbf16, #tpu.memory_space<vmem>>, vector<32x2048xbf16>,
    %21 = vector.extract_strided_slice %16 {offsets = [0, 256], sizes = [32, 2048], strides = [1, 1]} : vector<32x2304xbf16> to vector<32x2048xbf16>
    %c256 = arith.constant 256 : index
    %c0_11 = arith.constant 0 : index
    %22 = vector.load %arg6[%c256, %c0_11] : memref<288x2048xbf16, #tpu.memory_space<vmem>>, vector<32x2048xbf16>
    tpu.vector_store %arg6[%c256, %c0_11], %21 {strides = array<i32>} : memref<288x2048xbf16, #tpu.memory_space<vmem>>, vector<32x2048xbf16>,
    %c0_12 = arith.constant 0 : index
    %c0_13 = arith.constant 0 : index
    %23 = vector.load %arg3[%c0_12, %c0_13] : memref<32x288xbf16, #tpu.memory_space<vmem>>, vector<32x288xbf16>
    %c0_14 = arith.constant 0 : index
    %c0_15 = arith.constant 0 : index
    %24 = vector.load %arg6[%c0_14, %c0_15] : memref<288x2048xbf16, #tpu.memory_space<vmem>>, vector<288x2048xbf16>
    %cst = arith.constant dense<0.000000e+00> : vector<32x2048xf32>
    %25 = tpu.matmul %23, %24, %cst {dimension_numbers = #tpu.dot_dimension_numbers<[1], [0], [0], [1], [0, 0, 1, 1], [], []>} : vector<32x288xbf16>, vector<288x2048xbf16>, vector<32x2048xf32> -> vector<32x2048xf32>
    %c0_16 = arith.constant 0 : index
    %c0_17 = arith.constant 0 : index
    %26 = vector.load %arg4[%c0_16, %c0_17] : memref<32x1xf32, #tpu.memory_space<vmem>>, vector<32x1xf32>
    %27 = vector.broadcast %26 : vector<32x1xf32> to vector<32x2048xf32>
    %28 = arith.addf %25, %27 : vector<32x2048xf32>
    %cst_18 = arith.constant 0.000000e+00 : f32
    %29 = vector.broadcast %cst_18 : f32 to vector<32x2048xf32>
    %30 = arith.maximumf %28, %29 : vector<32x2048xf32>
    %31 = arith.truncf %30 : vector<32x2048xf32> to vector<32x2048xbf16>
    %c0_19 = arith.constant 0 : index
    %c0_20 = arith.constant 0 : index
    %c0_21 = arith.constant 0 : index
    %32 = vector.load %arg5[%c0_19, %c0_20, %c0_21] : memref<1x32x2048xbf16, #tpu.memory_space<vmem>>, vector<1x32x2048xbf16>
    %33 = vector.shape_cast %32 : vector<1x32x2048xbf16> to vector<32x2048xbf16>
    %34 = vector.shape_cast %31 : vector<32x2048xbf16> to vector<1x32x2048xbf16>
    tpu.vector_store %arg5[%c0_19, %c0_20, %c0_21], %34 {strides = array<i32>} : memref<1x32x2048xbf16, #tpu.memory_space<vmem>>, vector<1x32x2048xbf16>,
    return
  }
  func.func @transform_0(%arg0: i32, %arg1: i32) -> (i32, i32, i32) {
    %c0_i32 = arith.constant 0 : i32
    %c0_i32_0 = arith.constant 0 : i32
    %c0_i32_1 = arith.constant 0 : i32
    return %arg0, %c0_i32, %c0_i32_0 : i32, i32, i32
  }
  func.func @transform_1(%arg0: i32, %arg1: i32) -> (i32, i32) {
    %c0_i32 = arith.constant 0 : i32
    %c0_i32_0 = arith.constant 0 : i32
    return %arg1, %c0_i32 : i32, i32
  }
  func.func @transform_2(%arg0: i32, %arg1: i32) -> (i32, i32) {
    %c0_i32 = arith.constant 0 : i32
    %c0_i32_0 = arith.constant 0 : i32
    return %arg1, %c0_i32 : i32, i32
  }
  func.func @transform_3(%arg0: i32, %arg1: i32) -> (i32, i32, i32) {
    %c0_i32 = arith.constant 0 : i32
    %c0_i32_0 = arith.constant 0 : i32
    return %arg0, %arg1, %c0_i32 : i32, i32, i32
  }
}

</mosaic_0001>

<bundles_post_ra>
// kernel: tpu_custom_call.1
= control target key start
LH: loop header
LB: loop body
LE: loop exit
PB: predicated region body
PF: predicated region fallthrough
CT: control target
= control target key end

     0   :  { %8 = vsyncpa [#allocation4], 0  ;;  %s7857_s0 = inlined_call_operand.hbm [shape: bf16[2,32,2432], index: 0, kind: input, shape index: {}]   ;;  %s7858_s1 = inlined_call_operand.hbm [shape: bf16[32,288], index: 1, kind: input, shape index: {}]   ;;  %s7859_s2 = inlined_call_operand.vmem [shape: f32[32,1], index: 2, kind: input, shape index: {}]   ;;  %s7860_s3 = inlined_call_operand.hbm [shape: bf16[2,32,2048], index: 3, kind: output, shape index: {}]  }
   0x1   :  { %10 = vsyncpa [#allocation4 + $0x1], 0 }
   0x2   :  { %11 = vsyncpa [#allocation7], 0 }
   0x3   :  { %12 = vsyncpa [#allocation5], 0 }
   0x4   :  { %14 = vsyncpa [#allocation5 + $0x1], 0  ;;  %s6070_s12 = smov 0   ;;  %s6072_s13 = smov 0  }
   0x5   :  { %s6074_s14 = smov 0   ;;  %s6076_s15 = smov 0  }
   0x6   :  { %s6078_s16 = smov 0   ;;  %s6080_s17 = smov 0  }
   0x7 LB: > { %s4278_s18 = sadd.s32 4294967295, %s6038_s17   ;;  %s4279_s19 = sadd.s32 4294967294, %s6038_s17   ;;  %s6038_s17 = sphi %s6080_s17, %s20_s17   ;;  %s6034_s16 = sphi %s6078_s16, %s7873_s16   ;;  %s6030_s15 = sphi %s6076_s15, %s7872_s15   ;;  %s6026_s14 = sphi %s6074_s14, %s7871_s14   ;;  %s6022_s13 = sphi %s6072_s13, %s7870_s13   ;;  %s6018_s12 = sphi %s6070_s12, %s7869_s12  }
   0x8   : > { %p52_p0 = scmp.ne.s32.totalorder %s6022_s13, %s6018_s12  ;;  %p6104_p1 = scmp.eq.s32.totalorder %s4278_s18, 0 }
   0x9   : > { %p6108_p2 = scmp.eq.s32.totalorder %s4278_s18, 1  ;;  %p136_p3 = scmp.eq.s32.totalorder %s4279_s19, 1 }
   0xa   : > { %p6114_p4 = por %p6104_p1, %p52_p0  ;;  %p4280_p5 = scmp.ge.s32.totalorder %s6038_s17, 1 }
   0xb   : > { %p6119_p6 = por %p136_p3, %p52_p0  ;;  %p143_p7 = scmp.lt.s32.totalorder %s6038_s17, 3 }
   0xc   : > { %s158_s26 = sshll.u32 %s7858_s1, 4  ;;  %s6040_s28 = smov [#allocation6]   ;;  %s159_s26 = int_to_ptr.hbm [resolvable:$true] %s158_s26 }
   0xd   : > { %p6127_p8 = pnand %p4280_p5, %p143_p7  ;;  %s160_s29 = sshll.u32 %s6040_s28, 4  ;;  %s161_s29 = int_to_ptr.vmem [resolvable:$true] %s160_s29 }
   0xe   : > { %p4283_p11 = scmp.ge.s32.totalorder %s6038_s17, 2  ;;  %s6041_s30 = smov 192  }
   0xf   : > { %p5815_p9 = pneg %p6127_p8  ;;  %s6042_s4 = smov 12  }
  0x10   : > { %s32_s5 = sadd.s32 1, %s6034_s16  ;;  %s39_s6 = sadd.s32 1, %s6026_s14 }
  0x11   : > { %p5816_p10 = pnand %p5815_p9, %p6104_p1  ;;  %p34_p12 = scmp.ge.s32.totalorder %s32_s5, 2 }
  0x12   : > { %p46_p13 = scmp.ne.s32.totalorder %s6026_s14, %s6022_s13  ;;  %p47_p0 = scmp.eq.s32.totalorder %s6038_s17, 0 }
  0x13   : > { %5818 = dma.hbm_to_vmem [thread:$0]  (!%p5816_p10), %s159_s26, 768, %s161_s29, [#allocation7], %s6041_s30, %s6041_s30, %s6042_s4  }
  0x14   : > { %s7875_s5 = smov (%p34_p12, %s32_s5), 0  ;;  %p48_p3 = por %p47_p0, %p46_p13 }
  0x15   : > { %p6145_p5 = por %p6108_p2, %p46_p13  ;;  %s36_s8 = ssub.s32 %s6034_s16, %s7875_s5 }
  0x16   : > { %p5828_p7 = scmp.lt.s32.totalorder %s6038_s17, 2  ;;  %p37_p9 = scmp.eq.s32.totalorder %s36_s8, 0 }
  0x17   : > { %s183_s9 = sand.u32 1, %s6026_s14   ;;  %s5805_s18 = smul.u32 304, %s6034_s16 }
  0x18   : > { %s5804_s10 = smul.u32 304, %s183_s9  ;;  %p5820_p10 = pnand %p5828_p7, %p48_p3 }
  0x19   : > { %s6154_s11 = scalar_select %p37_p9, %s6026_s14, %s39_s6  }
  0x1a   : > { %s187_s19 = scalar_lea.vmem [#allocation3], %s5804_s10  ;;  %s192_s28 = scalar_lea.hbm %s7857_s0, %s5805_s18 }
  0x1b   : > { %s195_s24 = sshll.u32 %s187_s19, 4  ;;  %s193_s21 = sshll.u32 %s192_s28, 4  ;;  %s196_s24 = int_to_ptr.vmem [resolvable:$true] %s195_s24  ;;  %s194_s21 = int_to_ptr.hbm [resolvable:$true] %s193_s21 }
  0x1c   : > { %s184_s29 = scalar_lea.sflag [#allocation4], %s183_s9  ;;  %s6043_s30 = smov 1216  }
  0x1d   : > { %s6044_s4 = smov 76   ;;  %207 = sbr.rel (%p6127_p8) target bundleno = 768 (0x300), region = 32 }
  0x1e   : > { %5822 = dma.hbm_to_vmem [thread:$0]  (!%p5820_p10), %s194_s21, 4864, %s196_s24, %s184_s29, %s6043_s30, %s6043_s30, %s6044_s4  }
  0x1f   : > { %s6163_s6 = sand.u32 (!%p6127_p8), 1, %s6022_s13  }
  0x20   : > { %s5806_s8 = smul.u32 (!%p6127_p8), 304, %s6163_s6  ;;  %s210_s10 = scalar_lea.sflag (!%p6127_p8), [#allocation4], %s6163_s6 }
  0x22   : > { %s6167_s19 = scalar_lea.vmem [#allocation3], %s5806_s8 }
  0x23   : > { %6005 = dma.done.wait (%p6114_p4), %s210_s10, 4864  }
  0x24   : > { %6007 = vsyncadd (%p6114_p4), %s210_s10, 4294962432 }
  0x25   : > { %6009 = dma.done.wait (%p6104_p1), [#allocation7], 768  }
  0x26   : > { %6011 = vsyncadd (%p6104_p1), [#allocation7], 4294966528  ;;  %v6178_v0 = vld [vmem:[%s6167_s19 + $0xec] sm:$0xff]  ;;  %v277_v1 = vld [vmem:[%s6167_s19 + $0xa0] sm:$0xff]  ;;  %s6045_s27 = smov 127   ;;  %s6046_s22 = smov 126  }
  0x27   : > { %v6182_v2 = vld [vmem:[%s6167_s19 + $0xf4] sm:$0xff]  ;;  %585 = vrot.lane.b32.xlu1 %v6178_v0, %s6045_s27  ;;  %321 = vst [vmem:[#allocation2 + $0xc8] sm:$0xff] %v6178_v0  ;;  %960 = vrot.lane.b32.xlu2 %v277_v1, %s6046_s22  ;;  %v392_v4 = vrot.slane %v6178_v0, 4  ;;  %v6193_v5 = vld [vmem:[%s6167_s19 + $0xa8] sm:$0xff]  ;;  %vm400_vm0 = vcmask 1043456   ;;  %v383_v8 = vrot.slane %v277_v1, 4 }
  0x28   : > { %v393_v3 = vrot.slane %v6182_v2, 4  ;;  %521 = vst [vmem:[#allocation2 + $0x6c0] sm:$0xff] %v6178_v0  ;;  %567 = vrot.lane.b32.xlu0 %v277_v1, %s6045_s27  ;;  %v384_v6 = vrot.slane %v6193_v5, 4  ;;  %v258_v10 = vld [vmem:[%s6167_s19 + $0x10] sm:$0xff]  ;;  %v257_v12 = vld [vmem:[%s6167_s19 + $0x8] sm:$0xff]  ;;  %v6215_v14 = vld [vmem:[%s6167_s19 + $0x5c] sm:$0xff] }
  0x29   : > { %313 = vst [vmem:[#allocation2 + $0x88] sm:$0xff] %v277_v1  ;;  %v366_v11 = vrot.slane %v258_v10, 4  ;;  %v365_v13 = vrot.slane %v257_v12, 4  ;;  %v267_v15 = vld [vmem:[%s6167_s19 + $0x54] sm:$0xff]  ;;  %v375_v16 = vrot.slane %v6215_v14, 4  ;;  %v6228_v22 = vld [vmem:[%s6167_s19 + $0xe4] sm:$0xff] }
  0x2a   : > { %513 = vst [vmem:[#allocation2 + $0x680] sm:$0xff] %v277_v1  ;;  %v426_v7 = vsel %vm400_vm0, %v392_v4, %v393_v3  ;;  %v418_v9 = vsel %vm400_vm0, %v383_v8, %v384_v6  ;;  %v374_v18 = vrot.slane %v267_v15, 4  ;;  %v6221_v19 = vld [vmem:[%s6167_s19 + $0x98] sm:$0xff]  ;;  %v391_v23 = vrot.slane %v6228_v22, 4  ;;  %v6238_v24 = vld [vmem:[%s6167_s19 + $0x4c] sm:$0xff]  ;;  %v256_v27 = vld [vmem:[%s6167_s19] sm:$0xff] }
  0x2b   : > { %322 = vst [vmem:[#allocation2 + $0xd0] sm:$0xff] %v6182_v2  ;;  %v402_v17 = vsel %vm400_vm0, %v365_v13, %v366_v11  ;;  %v382_v20 = vrot.slane %v6221_v19, 4  ;;  %v373_v26 = vrot.slane %v6238_v24, 4  ;;  %v364_v29 = vrot.slane %v256_v27, 4  ;;  %v6255_v32 = vld [vmem:[%s6167_s19 + $0x18] sm:$0xff]  ;;  %v279_v36 = vld [vmem:[%s6167_s19 + $0xb0] sm:$0xff] }
  0x2c   : > { %522 = vst [vmem:[#allocation2 + $0x6c8] sm:$0xff] %v6182_v2  ;;  %v410_v21 = vsel %vm400_vm0, %v374_v18, %v375_v16  ;;  %v425_v28 = vsel %vm400_vm0, %v391_v23, %v392_v4  ;;  %v367_v33 = vrot.slane %v6255_v32, 4  ;;  %v289_v35 = vld [vmem:[%s6167_s19 + $0xfc] sm:$0xff]  ;;  %v385_v38 = vrot.slane %v279_v36, 4  ;;  %v269_v41 = vld [vmem:[%s6167_s19 + $0x64] sm:$0xff]  ;;  %v270_v53 = vld [vmem:[%s6167_s19 + $0x6c] sm:$0xff] }
  0x2d   : > { %490 = vst [vmem:[#allocation2 + $0x3c8] sm:$0xff] %v426_v7  ;;  %v417_v25 = vsel %vm400_vm0, %v382_v20, %v383_v8  ;;  %v409_v30 = vsel %vm400_vm0, %v373_v26, %v374_v18  ;;  %v401_v31 = vsel %vm400_vm0, %v364_v29, %v365_v13  ;;  %v394_v37 = vrot.slane %v289_v35, 4  ;;  %v280_v44 = vld [vmem:[%s6167_s19 + $0xb8] sm:$0xff]  ;;  %v6289_v45 = vld [vmem:[%s6167_s19 + $0x20] sm:$0xff]  ;;  %v6313_v56 = vld [vmem:[%s6167_s19 + $0x10c] sm:$0xff]  ;;  %s4287_s29 = sshll.u32 %s6163_s6, 8 }
  0x2e   : > { %314 = vst [vmem:[#allocation2 + $0x90] sm:$0xff] %v6193_v5  ;;  %v403_v34 = vsel %vm400_vm0, %v366_v11, %v367_v33  ;;  %v419_v40 = vsel %vm400_vm0, %v384_v6, %v385_v38  ;;  %v376_v42 = vrot.slane %v269_v41, 4  ;;  %v386_v46 = vrot.slane %v280_v44, 4  ;;  %v290_v50 = vld [vmem:[%s6167_s19 + $0x104] sm:$0xff]  ;;  %v6414_v26 = vld [vmem:[%s6167_s19 + $0xd0] sm:$0xff]  ;;  %s7478_s30 = scalar_lea.vmem [#allocation8], %s4287_s29 }
  0x2f   : > { %587 = vrot.lane.b32.xlu1 %v6182_v2, %s6045_s27  ;;  %514 = vst [vmem:[#allocation2 + $0x688] sm:$0xff] %v6193_v5  ;;  %962 = vrot.lane.b32.xlu2 %v6193_v5, %s6046_s22  ;;  %v427_v39 = vsel %vm400_vm0, %v393_v3, %v394_v37  ;;  %v368_v47 = vrot.slane %v6289_v45, 4  ;;  %v395_v51 = vrot.slane %v290_v50, 4  ;;  %v377_v54 = vrot.slane %v270_v53, 4  ;;  %v281_v57 = vld [vmem:[%s6167_s19 + $0xc0] sm:$0xff]  ;;  %v6328_v62 = vld [vmem:[%s6167_s19 + $0x28] sm:$0xff] }
  0x30   : > { %482 = vst [vmem:[#allocation2 + $0x388] sm:$0xff] %v418_v9  ;;  %569 = vrot.lane.b32.xlu0 %v6193_v5, %s6045_s27  ;;  %v411_v43 = vsel %vm400_vm0, %v375_v16, %v376_v42  ;;  %v420_v48 = vsel %vm400_vm0, %v385_v38, %v386_v46  ;;  %v396_v58 = vrot.slane %v6313_v56, 4  ;;  %v387_v59 = vrot.slane %v281_v57, 4  ;;  %s5795_s4 = sshll.u32 %s6030_s15, 8  ;;  %s4149_s15 = scalar_lea.sflag [#allocation5], %s6163_s6 }
  0x31   : > { %297 = vst [vmem:[#allocation2 + $0x8] sm:$0xff] %v257_v12  ;;  %v404_v49 = vsel %vm400_vm0, %v367_v33, %v368_v47  ;;  %v428_v52 = vsel %vm400_vm0, %v394_v37, %v395_v51  ;;  %v412_v55 = vsel %vm400_vm0, %v376_v42, %v377_v54  ;;  %v369_v63 = vrot.slane %v6328_v62, 4  ;;  %s5972_s25 = scalar_lea.hbm %s7860_s3, 512 }
  0x32   : > { %497 = vst [vmem:[#allocation2 + $0x600] sm:$0xff] %v257_v12  ;;  %v429_v60 = vsel %vm400_vm0, %v395_v51, %v396_v58  ;;  %v421_v61 = vsel %vm400_vm0, %v386_v46, %v387_v59  ;;  %vm1031_vm1 = vcmask 1031168   ;;  %vm638_vm2 = vcmask 1039360  }
  0x33   : > { %305 = vst [vmem:[#allocation2 + $0x48] sm:$0xff] %v267_v15  ;;  %vm3101_vm3 = vcmask 261120  }
  0x34   : > { %505 = vst [vmem:[#allocation2 + $0x640] sm:$0xff] %v267_v15 }
  0x35   : > { %298 = vst [vmem:[#allocation2 + $0x10] sm:$0xff] %v258_v10 }
  0x36   : > { %466 = vst [vmem:[#allocation2 + $0x308] sm:$0xff] %v402_v17 }
  0x37   : > { %980 = vrot.lane.b32.xlu1 %v6182_v2, %s6046_s22  ;;  %531 = vrot.lane.b32.xlu2 %v257_v12, %s6045_s27  ;;  %498 = vst [vmem:[#allocation2 + $0x608] sm:$0xff] %v258_v10  ;;  %v271_v2 = vld [vmem:[%s6167_s19 + $0x74] sm:$0xff] }
  0x38   : > { %978 = vrot.lane.b32.xlu0 %v6178_v0, %s6046_s22  ;;  %306 = vst [vmem:[#allocation2 + $0x50] sm:$0xff] %v6215_v14  ;;  %v405_v0 = vsel %vm400_vm0, %v368_v47, %v369_v63  ;;  %v378_v6 = vrot.slane %v271_v2, 4 }
  0x39   : > { %474 = vst [vmem:[#allocation2 + $0x348] sm:$0xff] %v410_v21 }
  0x3a   : > { %506 = vst [vmem:[#allocation2 + $0x648] sm:$0xff] %v6215_v14 }
  0x3b   : > { %312 = vst [vmem:[#allocation2 + $0x80] sm:$0xff] %v6221_v19 }
  0x3c   : > { %481 = vst [vmem:[#allocation2 + $0x380] sm:$0xff] %v417_v25 }
  0x3d   : > { %320 = vst [vmem:[#allocation2 + $0xc0] sm:$0xff] %v6228_v22 }
  0x3e   : > { %489 = vst [vmem:[#allocation2 + $0x3c0] sm:$0xff] %v425_v28 }
  0x3f   : > { %549 = vrot.lane.b32.xlu1 %v267_v15, %s6045_s27  ;;  %551 = vrot.lane.b32.xlu2 %v6215_v14, %s6045_s27  ;;  %304 = vst [vmem:[#allocation2 + $0x40] sm:$0xff] %v6238_v24 }
  0x40   : > { %533 = vrot.lane.b32.xlu0 %v258_v10, %s6045_s27  ;;  %473 = vst [vmem:[#allocation2 + $0x340] sm:$0xff] %v409_v30  ;;  %v389_v30 = vrot.slane %v6414_v26, 4 }
  0x41   : > { %296 = vst [vmem:[#allocation2] sm:$0xff] %v256_v27 }
  0x42   : > { %465 = vst [vmem:[#allocation2 + $0x300] sm:$0xff] %v401_v31 }
  0x43   : > { %299 = vst [vmem:[#allocation2 + $0x18] sm:$0xff] %v6255_v32  ;;  %v4762_v47 = vld [vmem:[#allocation2 + $0x380] sm:$0xf] }
  0x44   : > { %467 = vst [vmem:[#allocation2 + $0x310] sm:$0xff] %v403_v34 }
  0x45   : > { %499 = vst [vmem:[#allocation2 + $0x610] sm:$0xff] %v6255_v32 }
  0x46   : > { %323 = vst [vmem:[#allocation2 + $0xd8] sm:$0xff] %v289_v35 }
  0x47   : > { %926 = vrot.lane.b32.xlu1 %v258_v10, %s6046_s22  ;;  %942 = vrot.lane.b32.xlu2 %v267_v15, %s6046_s22  ;;  %523 = vst [vmem:[#allocation2 + $0x6d0] sm:$0xff] %v289_v35  ;;  %v413_v10 = vsel %vm400_vm0, %v377_v54, %v378_v6  ;;  %v6379_v15 = vld [vmem:[%s6167_s19 + $0x114] sm:$0xff] }
  0x48   : > { %924 = vrot.lane.b32.xlu0 %v257_v12, %s6046_s22  ;;  %315 = vst [vmem:[#allocation2 + $0x98] sm:$0xff] %v279_v36  ;;  %v6368_v12 = vld [vmem:[%s6167_s19 + $0xc8] sm:$0xff]  ;;  %v397_v20 = vrot.slane %v6379_v15, 4 }
  0x49   : > { %491 = vst [vmem:[#allocation2 + $0x3d0] sm:$0xff] %v427_v39  ;;  %v388_v13 = vrot.slane %v6368_v12, 4 }
  0x4a   : > { %483 = vst [vmem:[#allocation2 + $0x390] sm:$0xff] %v419_v40  ;;  %v6451_v40 = vld [vmem:[%s6167_s19 + $0x30] sm:$0xff] }
  0x4b   : > { %515 = vst [vmem:[#allocation2 + $0x690] sm:$0xff] %v279_v36  ;;  %v423_v34 = vsel %vm400_vm0, %v388_v13, %v389_v30  ;;  %v370_v51 = vrot.slane %v6451_v40, 4 }
  0x4c   : > { %307 = vst [vmem:[#allocation2 + $0x58] sm:$0xff] %v269_v41 }
  0x4d   : > { %507 = vst [vmem:[#allocation2 + $0x650] sm:$0xff] %v269_v41 }
  0x4e   : > { %475 = vst [vmem:[#allocation2 + $0x350] sm:$0xff] %v411_v43 }
  0x4f   : > { %958 = vrot.lane.b32.xlu1 %v6221_v19, %s6046_s22  ;;  %976 = vrot.lane.b32.xlu2 %v6228_v22, %s6046_s22  ;;  %316 = vst [vmem:[#allocation2 + $0xa0] sm:$0xff] %v280_v44 }
  0x50   : > { %944 = vrot.lane.b32.xlu0 %v6215_v14, %s6046_s22  ;;  %516 = vst [vmem:[#allocation2 + $0x698] sm:$0xff] %v280_v44  ;;  %v422_v14 = vsel %vm400_vm0, %v387_v59, %v388_v13  ;;  %v4764_v59 = vld [vmem:[#allocation2 + $0x3c0] sm:$0xf0] }
  0x51   : > { %300 = vst [vmem:[#allocation2 + $0x20] sm:$0xff] %v6289_v45 }
  0x52   : > { %484 = vst [vmem:[#allocation2 + $0x398] sm:$0xff] %v420_v48  ;;  %v5627_v48 = vld [vmem:[#allocation2 + $0x3bc] sm:$0xf0] }
  0x53   : > { %468 = vst [vmem:[#allocation2 + $0x318] sm:$0xff] %v404_v49 }
  0x54   : > { %500 = vst [vmem:[#allocation2 + $0x618] sm:$0xff] %v6289_v45 }
  0x55   : > { %324 = vst [vmem:[#allocation2 + $0xe0] sm:$0xff] %v290_v50 }
  0x56   : > { %524 = vst [vmem:[#allocation2 + $0x6d8] sm:$0xff] %v290_v50 }
  0x57   : > { %940 = vrot.lane.b32.xlu1 %v6238_v24, %s6046_s22  ;;  %565 = vrot.lane.b32.xlu2 %v6221_v19, %s6045_s27  ;;  %492 = vst [vmem:[#allocation2 + $0x3d8] sm:$0xff] %v428_v52  ;;  %v6390_v19 = vld [vmem:[%s6167_s19 + $0x7c] sm:$0xff] }
  0x58   : > { %922 = vrot.lane.b32.xlu0 %v256_v27, %s6046_s22  ;;  %308 = vst [vmem:[#allocation2 + $0x60] sm:$0xff] %v270_v53  ;;  %v379_v21 = vrot.slane %v6390_v19, 4  ;;  %v6466_v52 = vld [vmem:[%s6167_s19 + $0x11c] sm:$0xff] }
  0x59   : > { %508 = vst [vmem:[#allocation2 + $0x658] sm:$0xff] %v270_v53 }
  0x5a   : > { %476 = vst [vmem:[#allocation2 + $0x358] sm:$0xff] %v412_v55  ;;  %v414_v23 = vsel %vm400_vm0, %v378_v6, %v379_v21  ;;  %v5619_v55 = vld [vmem:[#allocation2 + $0x384] sm:$0xf]  ;;  %v5611_v6 = vld [vmem:[#allocation2 + $0x33c] sm:$0xf0] }
  0x5b   : > { %325 = vst [vmem:[#allocation2 + $0xe8] sm:$0xff] %v6313_v56 }
  0x5c   : > { %525 = vst [vmem:[#allocation2 + $0x6e0] sm:$0xff] %v6313_v56 }
  0x5d   : > { %317 = vst [vmem:[#allocation2 + $0xa8] sm:$0xff] %v281_v57 }
  0x5e   : > { %493 = vst [vmem:[#allocation2 + $0x3e0] sm:$0xff] %v429_v60 }
  0x5f   : > { %547 = vrot.lane.b32.xlu2 %v6238_v24, %s6045_s27  ;;  %529 = vrot.lane.b32.xlu1 %v256_v27, %s6045_s27  ;;  %485 = vst [vmem:[#allocation2 + $0x3a0] sm:$0xff] %v421_v61 }
  0x60   : > { %583 = vrot.lane.b32.xlu0 %v6228_v22, %s6045_s27  ;;  %517 = vst [vmem:[#allocation2 + $0x6a0] sm:$0xff] %v281_v57  ;;  %v430_v22 = vsel %vm400_vm0, %v396_v58, %v397_v20  ;;  %v4763_v58 = vor.u32 %v5627_v48, %v4762_v47 }
  0x61   : > { %301 = vst [vmem:[#allocation2 + $0x28] sm:$0xff] %v6328_v62 }
  0x62   : > { %501 = vst [vmem:[#allocation2 + $0x620] sm:$0xff] %v6328_v62  ;;  %3108 = vmatpush.bf16.msra.mxu0 %v4763_v58 }
  0x63   : > { %469 = vst [vmem:[#allocation2 + $0x320] sm:$0xff] %v405_v0  ;;  %v4767_v0 = vor.u32 %v5619_v55, %v4764_v59  ;;  %v398_v59 = vrot.slane %v6466_v52, 4 }
  0x64   : > { %309 = vst [vmem:[#allocation2 + $0x68] sm:$0xff] %v271_v2 }
  0x65   : > { %509 = vst [vmem:[#allocation2 + $0x660] sm:$0xff] %v271_v2  ;;  %3165 = vmatpush.bf16.msra.mxu3 %v4767_v0 }
  0x66   : > { %477 = vst [vmem:[#allocation2 + $0x360] sm:$0xff] %v413_v10 }
  0x67   : > { %535 = vrot.lane.b32.xlu2 %v6255_v32, %s6045_s27  ;;  %589 = vrot.lane.b32.xlu1 %v289_v35, %s6045_s27  ;;  %318 = vst [vmem:[#allocation2 + $0xb0] sm:$0xff] %v6368_v12 }
  0x68   : > { %571 = vrot.lane.b32.xlu0 %v279_v36, %s6045_s27  ;;  %518 = vst [vmem:[#allocation2 + $0x6a8] sm:$0xff] %v6368_v12 }
  0x69   : > { %486 = vst [vmem:[#allocation2 + $0x3a8] sm:$0xff] %v422_v14 }
  0x6a   : > { %326 = vst [vmem:[#allocation2 + $0xf0] sm:$0xff] %v6379_v15 }
  0x6b   : > { %526 = vst [vmem:[#allocation2 + $0x6e8] sm:$0xff] %v6379_v15 }
  0x6c   : > { %310 = vst [vmem:[#allocation2 + $0x70] sm:$0xff] %v6390_v19 }
  0x6d   : > { %510 = vst [vmem:[#allocation2 + $0x668] sm:$0xff] %v6390_v19 }
  0x6e   : > { %494 = vst [vmem:[#allocation2 + $0x3e8] sm:$0xff] %v430_v22 }
  0x6f   : > { %982 = vrot.lane.b32.xlu2 %v289_v35, %s6046_s22  ;;  %964 = vrot.lane.b32.xlu1 %v279_v36, %s6046_s22  ;;  %478 = vst [vmem:[#allocation2 + $0x368] sm:$0xff] %v414_v23 }
  0x70   : > { %553 = vrot.lane.b32.xlu0 %v269_v41, %s6045_s27  ;;  %319 = vst [vmem:[#allocation2 + $0xb8] sm:$0xff] %v6414_v26 }
  0x71   : > { %519 = vst [vmem:[#allocation2 + $0x6b0] sm:$0xff] %v6414_v26 }
  0x72   : > { %487 = vst [vmem:[#allocation2 + $0x3b0] sm:$0xff] %v423_v34  ;;  %v4700_v34 = vld [vmem:[#allocation2 + $0x340] sm:$0xf0] }
  0x73   : > { %302 = vst [vmem:[#allocation2 + $0x30] sm:$0xff] %v6451_v40 }
  0x74   : > { %502 = vst [vmem:[#allocation2 + $0x628] sm:$0xff] %v6451_v40 }
  0x75   : > { %327 = vst [vmem:[#allocation2 + $0xf8] sm:$0xff] %v6466_v52 }
  0x76   : > { %527 = vst [vmem:[#allocation2 + $0x6f0] sm:$0xff] %v6466_v52 }
  0x77   : > { %946 = vrot.lane.b32.xlu1 %v269_v41, %s6046_s22  ;;  %573 = vrot.lane.b32.xlu2 %v280_v44, %s6045_s27 }
  0x78   : > { %928 = vrot.lane.b32.xlu0 %v6255_v32, %s6046_s22 }
  0x7f   : > { %537 = vrot.lane.b32.xlu1 %v6289_v45, %s6045_s27  ;;  %555 = vrot.lane.b32.xlu2 %v270_v53, %s6045_s27 }
  0x80   : > { %591 = vrot.lane.b32.xlu0 %v290_v50, %s6045_s27 }
  0x81   : > { %v6340_v1 = vpop.permute.xlu2 %960 }
  0x82   : > { %v1013_v3 = vrot.slane %v6340_v1, 4 }
  0x87   : > { %984 = vrot.lane.b32.xlu1 %v290_v50, %s6046_s22  ;;  %575 = vrot.lane.b32.xlu2 %v281_v57, %s6045_s27 }
  0x88   : > { %966 = vrot.lane.b32.xlu0 %v280_v44, %s6046_s22 }
  0x89   : > { %v6347_v4 = vpop.permute.xlu2 %962 }
  0x8a   : > { %v1014_v5 = vrot.slane %v6347_v4, 4 }
  0x8c   : > { %v1065_v7 = vsel %vm400_vm0, %v1013_v3, %v1014_v5 }
  0x8d   : > { %v1066_v8 = vsel %vm1031_vm1, %v6340_v1, %v1065_v7  ;;  %v1176_v9 = vsel %vm1031_vm1, %v1065_v7, %v6347_v4 }
  0x8e   : > { %1144 = vst [vmem:[#allocation2 + $0x288] sm:$0xff] %v1066_v8 }
  0x8f   : > { %1240 = vst [vmem:[#allocation2 + $0x588] sm:$0xff] %v1176_v9  ;;  %930 = vrot.lane.b32.xlu1 %v6289_v45, %s6046_s22  ;;  %948 = vrot.lane.b32.xlu2 %v270_v53, %s6046_s22  ;;  %v406_v9 = vsel %vm400_vm0, %v369_v63, %v370_v51  ;;  %v5603_v63 = vld [vmem:[#allocation2 + $0x304] sm:$0xf] }
  0x90   : > { %1295 = vst [vmem:[#allocation2 + $0x880] sm:$0xff] %v1066_v8  ;;  %593 = vrot.lane.b32.xlu0 %v6313_v56, %s6045_s27 }
  0x91   : > { %v6365_v11 = vpop.permute.xlu2 %531  ;;  %470 = vst [vmem:[#allocation2 + $0x328] sm:$0xff] %v406_v9 }
  0x92   : > { %v602_v10 = vrot.slane %v6365_v11, 4 }
  0x97   : > { %557 = vrot.lane.b32.xlu1 %v271_v2, %s6045_s27  ;;  %968 = vrot.lane.b32.xlu2 %v281_v57, %s6046_s22 }
  0x98   : > { %539 = vrot.lane.b32.xlu0 %v6328_v62, %s6045_s27 }
  0x99   : > { %v6381_v16 = vpop.permute.xlu1 %585  ;;  %v6383_v17 = vpop.permute.xlu2 %551 }
  0x9a   : > { %v6386_v18 = vpop.permute.xlu0 %567  ;;  %v629_v27 = vrot.slane %v6381_v16, 4  ;;  %v612_v60 = vrot.slane %v6383_v17, 4 }
  0x9b   : > { %v620_v31 = vrot.slane %v6386_v18, 4 }
  0x9f   : > { %932 = vrot.lane.b32.xlu1 %v6328_v62, %s6046_s22  ;;  %950 = vrot.lane.b32.xlu2 %v271_v2, %s6046_s22  ;;  %v4698_v2 = vld [vmem:[#allocation2 + $0x300] sm:$0xf] }
  0xa0   : > { %986 = vrot.lane.b32.xlu0 %v6313_v56, %s6046_s22  ;;  %v4699_v23 = vor.u32 %v5611_v6, %v4698_v2 }
  0xa1   : > { %v6409_v24 = vpop.permute.xlu1 %587  ;;  %v6411_v25 = vpop.permute.xlu2 %942 }
  0xa2   : > { %v630_v28 = vrot.slane %v6409_v24, 4  ;;  %v6418_v29 = vpop.permute.xlu0 %569  ;;  %3109 = vmatpush.bf16.msra.mxu0 %v4699_v23 }
  0xa3   : > { %v621_v32 = vrot.slane %v6418_v29, 4 }
  0xa4   : > { %v688_v33 = vsel %vm400_vm0, %v629_v27, %v630_v28 }
  0xa5   : > { %v689_v35 = vsel %vm638_vm2, %v6381_v16, %v688_v33  ;;  %v791_v36 = vsel %vm638_vm2, %v688_v33, %v6409_v24  ;;  %v672_v37 = vsel %vm400_vm0, %v620_v31, %v621_v32 }
  0xa6   : > { %759 = vst [vmem:[#allocation2 + $0x1c8] sm:$0xff] %v689_v35  ;;  %v673_v38 = vsel %vm638_vm2, %v6386_v18, %v672_v37  ;;  %v783_v39 = vsel %vm638_vm2, %v672_v37, %v6418_v29 }
  0xa7   : > { %855 = vst [vmem:[#allocation2 + $0x4c8] sm:$0xff] %v791_v36  ;;  %595 = vrot.lane.b32.xlu1 %v6379_v15, %s6045_s27  ;;  %541 = vrot.lane.b32.xlu2 %v6451_v40, %s6045_s27  ;;  %v4703_v36 = vor.u32 %v5603_v63, %v4700_v34 }
  0xa8   : > { %914 = vst [vmem:[#allocation2 + $0x7c0] sm:$0xff] %v689_v35  ;;  %577 = vrot.lane.b32.xlu0 %v6368_v12, %s6045_s27 }
  0xa9   : > { %751 = vst [vmem:[#allocation2 + $0x188] sm:$0xff] %v673_v38  ;;  %v6453_v41 = vpop.permute.xlu1 %980  ;;  %v977_v42 = vpop.permute.xlu2 %976  ;;  %3166 = vmatpush.bf16.msra.mxu3 %v4703_v36 }
  0xaa   : > { %847 = vst [vmem:[#allocation2 + $0x488] sm:$0xff] %v783_v39  ;;  %v1023_v43 = vrot.slane %v6453_v41, 4  ;;  %v979_v44 = vpop.permute.xlu0 %978  ;;  %v1021_v45 = vrot.slane %v977_v42, 4 }
  0xab   : > { %906 = vst [vmem:[#allocation2 + $0x780] sm:$0xff] %v673_v38  ;;  %v1022_v46 = vrot.slane %v979_v44, 4 }
  0xad   : > { %v1081_v49 = vsel %vm400_vm0, %v1022_v46, %v1023_v43  ;;  %v1079_v50 = vsel %vm400_vm0, %v1021_v45, %v1022_v46  ;;  %v5402_v46 = vld [vmem:[#allocation2 + $0x880] sm:$0xf] }
  0xae   : > { %v1082_v53 = vsel %vm1031_vm1, %v979_v44, %v1081_v49  ;;  %v1184_v54 = vsel %vm1031_vm1, %v1081_v49, %v6453_v41  ;;  %v1080_v56 = vsel %vm1031_vm1, %v977_v42, %v1079_v50  ;;  %v1183_v61 = vsel %vm1031_vm1, %v1079_v50, %v979_v44 }
  0xaf   : > { %1152 = vst [vmem:[#allocation2 + $0x2c8] sm:$0xff] %v1082_v53  ;;  %v5755_v57 = vld [vmem:[#allocation2 + $0x7bc] sm:$0xf0]  ;;  %970 = vrot.lane.b32.xlu1 %v6368_v12, %s6046_s22  ;;  %988 = vrot.lane.b32.xlu2 %v6379_v15, %s6046_s22 }
  0xb0   : > { %1248 = vst [vmem:[#allocation2 + $0x5c8] sm:$0xff] %v1184_v54  ;;  %559 = vrot.lane.b32.xlu0 %v6390_v19, %s6045_s27 }
  0xb1   : > { %1303 = vst [vmem:[#allocation2 + $0x8c0] sm:$0xff] %v1082_v53  ;;  %v6479_v7 = vpop.permute.xlu1 %549  ;;  %v566_v8 = vpop.permute.xlu2 %565 }
  0xb2   : > { %1151 = vst [vmem:[#allocation2 + $0x2c0] sm:$0xff] %v1080_v56  ;;  %v5274_v12 = vld [vmem:[#allocation2 + $0x780] sm:$0xf]  ;;  %v611_v13 = vrot.slane %v6479_v7, 4  ;;  %v6490_v14 = vpop.permute.xlu0 %533  ;;  %v619_v22 = vrot.slane %v566_v8, 4 }
  0xb3   : > { %1247 = vst [vmem:[#allocation2 + $0x5c0] sm:$0xff] %v1183_v61  ;;  %v5275_v33 = vor.u32 %v5755_v57, %v5274_v12  ;;  %v603_v62 = vrot.slane %v6490_v14, 4  ;;  %v6530_v61 = vld [vmem:[%s6167_s19 + $0x38] sm:$0xff]  ;;  %v431_v12 = vsel %vm400_vm0, %v397_v20, %v398_v59 }
  0xb4   : > { %v656_v35 = vsel %vm400_vm0, %v611_v13, %v612_v60  ;;  %v670_v44 = vsel %vm400_vm0, %v619_v22, %v620_v31  ;;  %495 = vst [vmem:[#allocation2 + $0x3f0] sm:$0xff] %v431_v12  ;;  %v6604_v12 = vld [vmem:[%s6167_s19 + $0xd8] sm:$0xff] }
  0xb5   : > { %3127 = vmatpush.bf16.msra.mxu1 %v5275_v33  ;;  %v657_v37 = vsel %vm638_vm2, %v6479_v7, %v656_v35  ;;  %v775_v38 = vsel %vm638_vm2, %v656_v35, %v6383_v17  ;;  %v640_v39 = vsel %vm400_vm0, %v602_v10, %v603_v62  ;;  %v671_v48 = vsel %vm638_vm2, %v566_v8, %v670_v44  ;;  %v5723_v33 = vld [vmem:[#allocation2 + $0x6bc] sm:$0xf0] }
  0xb6   : > { %743 = vst [vmem:[#allocation2 + $0x148] sm:$0xff] %v657_v37  ;;  %v641_v42 = vsel %vm638_vm2, %v6365_v11, %v640_v39  ;;  %v767_v45 = vsel %vm638_vm2, %v640_v39, %v6490_v14  ;;  %v782_v53 = vsel %vm638_vm2, %v670_v44, %v6386_v18  ;;  %v1004_v35 = vrot.slane %v6411_v25, 4 }
  0xb7   : > { %839 = vst [vmem:[#allocation2 + $0x448] sm:$0xff] %v775_v38  ;;  %597 = vrot.lane.b32.xlu1 %v6466_v52, %s6045_s27  ;;  %934 = vrot.lane.b32.xlu2 %v6451_v40, %s6046_s22 }
  0xb8   : > { %898 = vst [vmem:[#allocation2 + $0x740] sm:$0xff] %v657_v37  ;;  %v5787_v47 = vld [vmem:[#allocation2 + $0x8bc] sm:$0xf0]  ;;  %579 = vrot.lane.b32.xlu0 %v6414_v26, %s6045_s27 }
  0xb9   : > { %735 = vst [vmem:[#allocation2 + $0x108] sm:$0xff] %v641_v42  ;;  %v5403_v31 = vor.u32 %v5787_v47, %v5402_v46  ;;  %v6517_v49 = vpop.permute.xlu1 %926  ;;  %v548_v50 = vpop.permute.xlu2 %547 }
  0xba   : > { %831 = vst [vmem:[#allocation2 + $0x408] sm:$0xff] %v767_v45  ;;  %v996_v54 = vrot.slane %v6517_v49, 4  ;;  %v6524_v55 = vpop.permute.xlu0 %924  ;;  %v610_v56 = vrot.slane %v548_v50, 4 }
  0xbb   : > { %890 = vst [vmem:[#allocation2 + $0x700] sm:$0xff] %v641_v42  ;;  %3152 = vmatpush.bf16.msra.mxu2 %v5403_v31  ;;  %v995_v57 = vrot.slane %v6524_v55, 4 }
  0xbc   : > { %750 = vst [vmem:[#allocation2 + $0x180] sm:$0xff] %v671_v48  ;;  %v654_v58 = vsel %vm400_vm0, %v610_v56, %v611_v13  ;;  %v6554_v13 = vld [vmem:[%s6167_s19 + $0x84] sm:$0xff]  ;;  %v5082_v48 = vld [vmem:[#allocation2 + $0x600] sm:$0xf] }
  0xbd   : > { %846 = vst [vmem:[#allocation2 + $0x480] sm:$0xff] %v782_v53  ;;  %v1033_v18 = vsel %vm400_vm0, %v995_v57, %v996_v54  ;;  %v655_v0 = vsel %vm638_vm2, %v548_v50, %v654_v58  ;;  %v774_v8 = vsel %vm638_vm2, %v654_v58, %v6479_v7  ;;  %v5146_v7 = vld [vmem:[#allocation2 + $0x680] sm:$0xf] }
  0xbe   : > { %v1034_v2 = vsel %vm1031_vm1, %v6524_v55, %v1033_v18  ;;  %v1160_v6 = vsel %vm1031_vm1, %v1033_v18, %v6517_v49  ;;  %742 = vst [vmem:[#allocation2 + $0x140] sm:$0xff] %v655_v0  ;;  %v5147_v39 = vor.u32 %v5723_v33, %v5146_v7 }
  0xbf   : > { %1128 = vst [vmem:[#allocation2 + $0x208] sm:$0xff] %v1034_v2  ;;  %543 = vrot.lane.b32.xlu1 %v6530_v61, %s6045_s27  ;;  %v5739_v9 = vld [vmem:[#allocation2 + $0x73c] sm:$0xf0]  ;;  %561 = vrot.lane.b32.xlu2 %v6554_v13, %s6045_s27 }
  0xc0   : > { %1224 = vst [vmem:[#allocation2 + $0x508] sm:$0xff] %v1160_v6  ;;  %952 = vrot.lane.b32.xlu0 %v6390_v19, %s6046_s22 }
  0xc1   : > { %1279 = vst [vmem:[#allocation2 + $0x800] sm:$0xff] %v1034_v2  ;;  %v959_v22 = vpop.permute.xlu1 %958  ;;  %v6556_v23 = vpop.permute.xlu2 %535 }
  0xc2   : > { %838 = vst [vmem:[#allocation2 + $0x440] sm:$0xff] %v774_v8  ;;  %v5210_v63 = vld [vmem:[#allocation2 + $0x700] sm:$0xf]  ;;  %v1012_v34 = vrot.slane %v959_v22, 4  ;;  %v6560_v15 = vpop.permute.xlu0 %944  ;;  %v604_v20 = vrot.slane %v6556_v23, 4 }
  0xc3   : > { %v5211_v36 = vor.u32 %v5739_v9, %v5210_v63  ;;  %v1005_v37 = vrot.slane %v6560_v15, 4  ;;  %v5595_v8 = vld [vmem:[#allocation2 + $0x2bc] sm:$0xf0]  ;;  %v4636_v9 = vld [vmem:[#allocation2 + $0x2c0] sm:$0xf0]  ;;  %303 = vst [vmem:[#allocation2 + $0x38] sm:$0xff] %v6530_v61 }
  0xc4   : > { %v1063_v38 = vsel %vm400_vm0, %v1012_v34, %v1013_v3  ;;  %v642_v46 = vsel %vm400_vm0, %v603_v62, %v604_v20  ;;  %503 = vst [vmem:[#allocation2 + $0x630] sm:$0xff] %v6530_v61 }
  0xc5   : > { %3128 = vmatpush.bf16.msra.mxu1 %v5211_v36  ;;  %v1064_v42 = vsel %vm1031_vm1, %v959_v22, %v1063_v38  ;;  %v1175_v44 = vsel %vm1031_vm1, %v1063_v38, %v6340_v1  ;;  %v1049_v45 = vsel %vm400_vm0, %v1004_v35, %v1005_v37  ;;  %v5707_v1 = vld [vmem:[#allocation2 + $0x63c] sm:$0xf0]  ;;  %v643_v31 = vsel %vm638_vm2, %v6490_v14, %v642_v46 }
  0xc6   : > { %1143 = vst [vmem:[#allocation2 + $0x280] sm:$0xff] %v1064_v42  ;;  %v1050_v3 = vsel %vm1031_vm1, %v6411_v25, %v1049_v45  ;;  %v1168_v47 = vsel %vm1031_vm1, %v1049_v45, %v6560_v15  ;;  %v768_v62 = vsel %vm638_vm2, %v642_v46, %v6556_v23  ;;  %v5083_v18 = vor.u32 %v5707_v1, %v5082_v48  ;;  %v5276_v45 = vld [vmem:[#allocation2 + $0x7c0] sm:$0xf0] }
  0xc7   : > { %1239 = vst [vmem:[#allocation2 + $0x580] sm:$0xff] %v1175_v44  ;;  %990 = vrot.lane.b32.xlu1 %v6466_v52, %s6046_s22  ;;  %936 = vrot.lane.b32.xlu2 %v6530_v61, %s6046_s22  ;;  %v5747_v44 = vld [vmem:[#allocation2 + $0x784] sm:$0xf] }
  0xc8   : > { %1136 = vst [vmem:[#allocation2 + $0x248] sm:$0xff] %v1050_v3  ;;  %972 = vrot.lane.b32.xlu0 %v6414_v26, %s6046_s22  ;;  %v5338_v1 = vld [vmem:[#allocation2 + $0x800] sm:$0xf] }
  0xc9   : > { %1232 = vst [vmem:[#allocation2 + $0x548] sm:$0xff] %v1168_v47  ;;  %3129 = vmatpush.bf16.msra.mxu1 %v5147_v39  ;;  %v941_v50 = vpop.permute.xlu1 %940  ;;  %v6592_v53 = vpop.permute.xlu2 %982  ;;  %v5691_v39 = vld [vmem:[#allocation2 + $0x5bc] sm:$0xf0]  ;;  %v6621_v47 = vld [vmem:[%s6167_s19 + $0x124] sm:$0xff] }
  0xca   : > { %1287 = vst [vmem:[#allocation2 + $0x840] sm:$0xff] %v1050_v3  ;;  %v1003_v56 = vrot.slane %v941_v50, 4  ;;  %v7861_v58 = vrot.slane %v6592_v53, 4  ;;  %v923_v14 = vpop.permute.xlu0 %922  ;;  %v5503_v3 = vld [vmem:[#allocation6 + $0x10] sm:$0xf0] }
  0xcb   : > { %736 = vst [vmem:[#allocation2 + $0x110] sm:$0xff] %v643_v31  ;;  %v994_v0 = vrot.slane %v923_v14, 4 }
  0xcc   : > { %832 = vst [vmem:[#allocation2 + $0x410] sm:$0xff] %v768_v62  ;;  %v1047_v2 = vsel %vm400_vm0, %v1003_v56, %v1004_v35  ;;  %v1083_v6 = vsel %vm400_vm0, %v1023_v43, %v7861_v58  ;;  %v5279_v56 = vor.u32 %v5747_v44, %v5276_v45  ;;  %v5699_v44 = vld [vmem:[#allocation2 + $0x604] sm:$0xf] }
  0xcd   : > { %891 = vst [vmem:[#allocation2 + $0x708] sm:$0xff] %v643_v31  ;;  %v1048_v22 = vsel %vm1031_vm1, %v941_v50, %v1047_v2  ;;  %v1167_v7 = vsel %vm1031_vm1, %v1047_v2, %v6411_v25  ;;  %v1084_v33 = vsel %vm1031_vm1, %v6453_v41, %v1083_v6  ;;  %v1185_v63 = vsel %vm1031_vm1, %v1083_v6, %v6592_v53  ;;  %v4634_v34 = vld [vmem:[#allocation2 + $0x280] sm:$0xf]  ;;  %v5587_v35 = vld [vmem:[#allocation2 + $0x284] sm:$0xf] }
  0xce   : > { %1135 = vst [vmem:[#allocation2 + $0x240] sm:$0xff] %v1048_v22  ;;  %v1030_v43 = vsel %vm400_vm0, %v994_v0, %v995_v57  ;;  %3130 = vmatpush.bf16.msra.mxu1 %v5083_v18  ;;  %v4635_v36 = vor.u32 %v5595_v8, %v4634_v34  ;;  %v5018_v38 = vld [vmem:[#allocation2 + $0x580] sm:$0xf]  ;;  %v4639_v42 = vor.u32 %v5587_v35, %v4636_v9  ;;  %v371_v25 = vrot.slane %v6530_v61, 4  ;;  %v4298_v57 = vld [vmem:[#allocation6 + $0x8] sm:$0xf] }
  0xcf   : > { %1231 = vst [vmem:[#allocation2 + $0x540] sm:$0xff] %v1167_v7  ;;  %v5019_v41 = vor.u32 %v5691_v39, %v5018_v38  ;;  %581 = vrot.lane.b32.xlu1 %v6604_v12, %s6045_s27  ;;  %v1032_v46 = vsel %vm1031_vm1, %v923_v14, %v1030_v43  ;;  %v1159_v48 = vsel %vm1031_vm1, %v1030_v43, %v6524_v55  ;;  %v5731_v9 = vld [vmem:[#allocation2 + $0x704] sm:$0xf]  ;;  %v6642_v7 = vld [vmem:[%s6167_s19 + $0x8c] sm:$0xff] }
  0xd0   : > { %1153 = vst [vmem:[#allocation2 + $0x2d0] sm:$0xff] %v1084_v33  ;;  %3110 = vmatpush.bf16.msra.mxu0 %v4635_v36  ;;  %3167 = vmatpush.bf16.msra.mxu3 %v4639_v42  ;;  %v407_v55 = vsel %vm400_vm0, %v370_v51, %v371_v25  ;;  %v6634_v2 = vor.u32 %v5503_v3, %v4298_v57  ;;  %v5212_v22 = vld [vmem:[#allocation2 + $0x740] sm:$0xf0]  ;;  %v4314_v61 = vld [vmem:[#allocation2] sm:$0xf] }
  0xd1   : > { %1249 = vst [vmem:[#allocation2 + $0x5d0] sm:$0xff] %v1185_v63  ;;  %v5771_v31 = vld [vmem:[#allocation2 + $0x83c] sm:$0xf0]  ;;  %v530_v62 = vpop.permute.xlu1 %529  ;;  %954 = vrot.lane.b32.xlu0 %v6554_v13, %s6046_s22  ;;  %599 = vrot.lane.b32.xlu2 %v6621_v47, %s6045_s27  ;;  %v6636_v6 = vpop.permute.xlu2 %573  ;;  %v380_v63 = vrot.slane %v6554_v13, 4  ;;  %v5215_v35 = vor.u32 %v5731_v9, %v5212_v22  ;;  %v5715_v43 = vld [vmem:[#allocation2 + $0x684] sm:$0xf] }
  0xd2   : > { %1304 = vst [vmem:[#allocation2 + $0x8c8] sm:$0xff] %v1084_v33  ;;  %3131 = vmatpush.bf16.msra.mxu1 %v5019_v41  ;;  %v5339_v50 = vor.u32 %v5771_v31, %v5338_v1  ;;  %v601_v14 = vrot.slane %v530_v62, 4  ;;  %v584_v18 = vpop.permute.xlu0 %583  ;;  %v5148_v36 = vld [vmem:[#allocation2 + $0x6c0] sm:$0xf0]  ;;  %v623_v42 = vrot.slane %v6636_v6, 4 }
  0xd3   : > { %1127 = vst [vmem:[#allocation2 + $0x200] sm:$0xff] %v1032_v46  ;;  %v628_v0 = vrot.slane %v584_v18, 4  ;;  %v5151_v57 = vor.u32 %v5715_v43, %v5148_v36  ;;  %v4506_v22 = vld [vmem:[#allocation2 + $0x180] sm:$0xf]  ;;  %v6703_v43 = vld [vmem:[#allocation2 + $0x388] sm:$0xf] }
  0xd4   : > { %1223 = vst [vmem:[#allocation2 + $0x500] sm:$0xff] %v1159_v48  ;;  %3153 = vmatpush.bf16.msra.mxu2 %v5339_v50  ;;  %v637_v8 = vsel %vm400_vm0, %v601_v14, %v602_v10  ;;  %v6653_v10 = vld [vmem:[%s6167_s19 + $0x40] sm:$0xff] }
  0xd5   : > { %v639_v40 = vsel %vm638_vm2, %v530_v62, %v637_v8  ;;  %v686_v51 = vsel %vm400_vm0, %v628_v0, %v629_v27  ;;  %471 = vst [vmem:[#allocation2 + $0x330] sm:$0xff] %v407_v55  ;;  %v766_v33 = vsel %vm638_vm2, %v637_v8, %v6365_v11  ;;  %v5579_v27 = vld [vmem:[#allocation2 + $0x23c] sm:$0xf0]  ;;  %v4572_v38 = vld [vmem:[#allocation2 + $0x240] sm:$0xf0] }
  0xd6   : > { %v687_v34 = vsel %vm638_vm2, %v584_v18, %v686_v51  ;;  %734 = vst [vmem:[#allocation2 + $0x100] sm:$0xff] %v639_v40  ;;  %v790_v11 = vsel %vm638_vm2, %v686_v51, %v6381_v16  ;;  %v5675_v39 = vld [vmem:[#allocation2 + $0x53c] sm:$0xf0]  ;;  %v415_v16 = vsel %vm400_vm0, %v379_v21, %v380_v63  ;;  %v5555_v40 = vld [vmem:[#allocation2 + $0x184] sm:$0xf] }
  0xd7   : > { %5464 = vmatmul.msk.bf16.vlgmr.msra.gmra.mxu2 %vm3101_vm3, %v6634_v2  ;;  %563 = vrot.lane.b32.xlu1 %v6642_v7, %s6045_s27  ;;  %830 = vst [vmem:[#allocation2 + $0x400] sm:$0xff] %v766_v33  ;;  %v6683_v14 = vld [vmem:[%s6167_s19 + $0xe0] sm:$0xf]  ;;  %v5683_v51 = vld [vmem:[#allocation2 + $0x584] sm:$0xf] }
  0xd8   : > { %3184 = vmatpush.bf16.msrb.mxu2 %v5279_v56  ;;  %758 = vst [vmem:[#allocation2 + $0x1c0] sm:$0xff] %v687_v34  ;;  %v5084_v56 = vld [vmem:[#allocation2 + $0x640] sm:$0xf0]  ;;  %v4310_v33 = vld [vmem:[#allocation6 + $0x20] sm:$0xf] }
  0xd9   : > { %v6664_v41 = vpop.permute.xlu1 %589  ;;  %545 = vrot.lane.b32.xlu0 %v6653_v10, %s6045_s27  ;;  %974 = vrot.lane.b32.xlu2 %v6604_v12, %s6046_s22  ;;  %854 = vst [vmem:[#allocation2 + $0x4c0] sm:$0xff] %v790_v11  ;;  %v6692_v8 = vpop.permute.xlu2 %555  ;;  %v5087_v9 = vor.u32 %v5699_v44, %v5084_v56  ;;  %v4890_v34 = vld [vmem:[#allocation2 + $0x480] sm:$0xf]  ;;  %v390_v11 = vrot.slane %v6604_v12, 4 }
  0xda   : > { %v4570_v45 = vld [vmem:[#allocation2 + $0x200] sm:$0xf]  ;;  %v5571_v46 = vld [vmem:[#allocation2 + $0x204] sm:$0xf]  ;;  %v631_v3 = vrot.slane %v6664_v41, 4  ;;  %v572_v48 = vpop.permute.xlu0 %571  ;;  %311 = vst [vmem:[#allocation2 + $0x78] sm:$0xff] %v6554_v13 }
  0xdb   : > { %v4571_v1 = vor.u32 %v5579_v27, %v4570_v45  ;;  %v4954_v31 = vld [vmem:[#allocation2 + $0x500] sm:$0xf]  ;;  %v4575_v62 = vor.u32 %v5571_v46, %v4572_v38  ;;  %v622_v50 = vrot.slane %v572_v48, 4  ;;  %479 = vst [vmem:[#allocation2 + $0x370] sm:$0xff] %v415_v16  ;;  %v5020_v38 = vld [vmem:[#allocation2 + $0x5c0] sm:$0xf0] }
  0xdc   : > { %3185 = vmatpush.bf16.msrb.mxu2 %v5215_v35  ;;  %v4955_v19 = vor.u32 %v5675_v39, %v4954_v31  ;;  %v690_v21 = vsel %vm400_vm0, %v630_v28, %v631_v3  ;;  %511 = vst [vmem:[#allocation2 + $0x670] sm:$0xff] %v6554_v13  ;;  %v5506_v35 = vld [vmem:[#allocation6 + $0x28] sm:$0xf0]  ;;  %v372_v31 = vrot.slane %v6653_v10, 4  ;;  %v4578_v13 = vld [vmem:[#allocation2 + $0x208] sm:$0xf] }
  0xdd   : > { %3111 = vmatpush.bf16.msra.mxu0 %v4571_v1  ;;  %3168 = vmatpush.bf16.msra.mxu3 %v4575_v62  ;;  %v691_v18 = vsel %vm638_vm2, %v6409_v24, %v690_v21  ;;  %v792_v55 = vsel %vm638_vm2, %v690_v21, %v6664_v41  ;;  %v674_v0 = vsel %vm400_vm0, %v621_v32, %v622_v50  ;;  %v5628_v1 = vld [vmem:[#allocation2 + $0x3c4] sm:$0xf0]  ;;  %v4442_v56 = vld [vmem:[#allocation2 + $0x100] sm:$0xf]  ;;  %v5539_v21 = vld [vmem:[#allocation2 + $0x104] sm:$0xf] }
  0xde   : > { %3132 = vmatpush.bf16.msra.mxu1 %v4955_v19  ;;  %v676_v28 = vsel %vm400_vm0, %v622_v50, %v623_v42  ;;  %760 = vst [vmem:[#allocation2 + $0x1d0] sm:$0xff] %v691_v18  ;;  %v675_v24 = vsel %vm638_vm2, %v6418_v29, %v674_v0  ;;  %v784_v36 = vsel %vm638_vm2, %v674_v0, %v572_v48  ;;  %v5547_v19 = vld [vmem:[#allocation2 + $0x13c] sm:$0xf0]  ;;  %v4292_v0 = vld [vmem:[#allocation6 + $0xc] sm:$0xf0] }
  0xdf   : > { %870 = vrot.lane.b32.xlu1 %v6683_v14, %s6045_s27  ;;  %856 = vst [vmem:[#allocation2 + $0x4d0] sm:$0xff] %v792_v55  ;;  %v677_v32 = vsel %vm638_vm2, %v572_v48, %v676_v28  ;;  %v5563_v29 = vld [vmem:[#allocation2 + $0x1bc] sm:$0xf0]  ;;  %v4508_v27 = vld [vmem:[#allocation2 + $0x1c0] sm:$0xf0]  ;;  %v785_v44 = vsel %vm638_vm2, %v676_v28, %v6636_v6  ;;  %v6717_v50 = vor.u32 %v5506_v35, %v4310_v33 }
  0xe0   : > { %3186 = vmatpush.bf16.msrb.mxu2 %v5151_v57  ;;  %915 = vst [vmem:[#allocation2 + $0x7c8] sm:$0xff] %v691_v18  ;;  %v4507_v16 = vor.u32 %v5563_v29, %v4506_v22  ;;  %v5659_v45 = vld [vmem:[#allocation2 + $0x4bc] sm:$0xf0]  ;;  %v4511_v46 = vor.u32 %v5555_v40, %v4508_v27  ;;  %v4444_v18 = vld [vmem:[#allocation2 + $0x140] sm:$0xf0]  ;;  %v424_v33 = vsel %vm400_vm0, %v389_v30, %v390_v11 }
  0xe1   : > { %v6707_v39 = vpop.permute.xlu1 %964  ;;  %992 = vrot.lane.b32.xlu0 %v6621_v47, %s6046_s22  ;;  %752 = vst [vmem:[#allocation2 + $0x190] sm:$0xff] %v675_v24  ;;  %v4891_v62 = vor.u32 %v5659_v45, %v4890_v34  ;;  %v5501_v55 = vld [vmem:[#allocation6 + $0x4] sm:$0xf]  ;;  %v6719_v28 = vld [vmem:[#allocation2 + $0x80] sm:$0xf]  ;;  %v4771_v45 = vor.u32 %v5628_v1, %v6703_v43  ;;  %v6726_v58 = vpop.permute.xlu2 %575  ;;  %v4443_v30 = vor.u32 %v5547_v19, %v4442_v56 }
  0xe2   : > { %v1015_v57 = vrot.slane %v6707_v39, 4  ;;  %v6714_v48 = vpop.permute.xlu0 %553  ;;  %753 = vst [vmem:[#allocation2 + $0x198] sm:$0xff] %v677_v32  ;;  %3112 = vmatpush.bf16.msra.mxu0 %v4507_v16  ;;  %3169 = vmatpush.bf16.msra.mxu3 %v4511_v46  ;;  %v4826_v22 = vld [vmem:[#allocation2 + $0x400] sm:$0xf]  ;;  %v5667_v35 = vld [vmem:[#allocation2 + $0x504] sm:$0xf]  ;;  %v408_v43 = vsel %vm400_vm0, %v371_v25, %v372_v31  ;;  %v6741_v46 = vor.u32 %v5501_v55, %v4292_v0 }
  0xe3   : > { %848 = vst [vmem:[#allocation2 + $0x490] sm:$0xff] %v784_v36  ;;  %v5643_v40 = vld [vmem:[#allocation2 + $0x43c] sm:$0xf0]  ;;  %3133 = vmatpush.bf16.msra.mxu1 %v4891_v62  ;;  %v613_v34 = vrot.slane %v6714_v48, 4  ;;  %v4956_v27 = vld [vmem:[#allocation2 + $0x540] sm:$0xf0]  ;;  %v4447_v36 = vor.u32 %v5539_v21, %v4444_v18 }
  0xe4   : > { %3187 = vmatpush.bf16.msrb.mxu2 %v5087_v9  ;;  %v5023_v9 = vor.u32 %v5683_v51, %v5020_v38  ;;  %v5531_v29 = vld [vmem:[#allocation2 + $0xbc] sm:$0xf0]  ;;  %849 = vst [vmem:[#allocation2 + $0x498] sm:$0xff] %v785_v44  ;;  %v614_v51 = vrot.slane %v6692_v8, 4  ;;  %v1067_v26 = vsel %vm400_vm0, %v1014_v5, %v1015_v57  ;;  %v5523_v11 = vld [vmem:[#allocation2 + $0x84] sm:$0xf]  ;;  %v4959_v5 = vor.u32 %v5667_v35, %v4956_v27 }
  0xe5   : > { %907 = vst [vmem:[#allocation2 + $0x788] sm:$0xff] %v675_v24  ;;  %v4380_v38 = vld [vmem:[#allocation2 + $0xc0] sm:$0xf0]  ;;  %v4827_v24 = vor.u32 %v5643_v40, %v4826_v22  ;;  %v4706_v44 = vld [vmem:[#allocation2 + $0x308] sm:$0xf]  ;;  %v1068_v25 = vsel %vm1031_vm1, %v6347_v4, %v1067_v26  ;;  %v658_v1 = vsel %vm400_vm0, %v612_v60, %v613_v34 }
  0xe6   : > { %908 = vst [vmem:[#allocation2 + $0x790] sm:$0xff] %v677_v32  ;;  %v5612_v16 = vld [vmem:[#allocation2 + $0x344] sm:$0xf0]  ;;  %3113 = vmatpush.bf16.msra.mxu0 %v4443_v30  ;;  %3170 = vmatpush.bf16.msra.mxu3 %v4447_v36  ;;  %v4379_v32 = vor.u32 %v5531_v29, %v6719_v28  ;;  %v4383_v31 = vor.u32 %v5523_v11, %v4380_v38  ;;  %v4892_v56 = vld [vmem:[#allocation2 + $0x4c0] sm:$0xf0]  ;;  %v381_v36 = vrot.slane %v6642_v7, 4 }
  0xe7   : > { %5465 = vmatmul.msk.bf16.gmra.mxu2 %vm3101_vm3, %v6717_v50  ;;  %956 = vrot.lane.b32.xlu1 %v6642_v7, %s6046_s22  ;;  %488 = vst [vmem:[#allocation2 + $0x3b8] sm:$0xff] %v424_v33  ;;  %v5515_v19 = vld [vmem:[#allocation2 + $0x3c] sm:$0xf0]  ;;  %v660_v4 = vsel %vm400_vm0, %v613_v34, %v614_v51  ;;  %v4707_v60 = vor.u32 %v5612_v16, %v4706_v44  ;;  %v5507_v18 = vld [vmem:[#allocation2 + $0x4] sm:$0xf] }
  0xe8   : > { %3188 = vmatpush.bf16.msrb.mxu2 %v5023_v9  ;;  %520 = vst [vmem:[#allocation2 + $0x6b8] sm:$0xff] %v6604_v12  ;;  %3134 = vmatpush.bf16.msra.mxu1 %v4827_v24  ;;  %v1177_v12 = vsel %vm1031_vm1, %v1067_v26, %v6707_v39  ;;  %v4316_v55 = vld [vmem:[#allocation2 + $0x40] sm:$0xf0]  ;;  %v5596_v9 = vld [vmem:[#allocation2 + $0x2c4] sm:$0xf0]  ;;  %v659_v22 = vsel %vm638_vm2, %v6383_v17, %v658_v1 }
  0xe9   : > { %v6750_v62 = vpop.permute.xlu1 %946  ;;  %938 = vrot.lane.b32.xlu0 %v6653_v10, %s6046_s22  ;;  %472 = vst [vmem:[#allocation2 + $0x338] sm:$0xff] %v408_v43  ;;  %v5651_v0 = vld [vmem:[#allocation2 + $0x484] sm:$0xf]  ;;  %v4315_v29 = vor.u32 %v5515_v19, %v4314_v61  ;;  %v4290_v34 = vld [vmem:[#allocation6] sm:$0xf]  ;;  %v661_v27 = vsel %vm638_vm2, %v6714_v48, %v660_v4  ;;  %v776_v17 = vsel %vm638_vm2, %v658_v1, %v6714_v48  ;;  %v6775_v61 = vpop.permute.xlu2 %948  ;;  %v399_v48 = vrot.slane %v6621_v47, 4 }
  0xea   : > { %v6759_v21 = vpop.permute.xlu0 %928  ;;  %504 = vst [vmem:[#allocation2 + $0x638] sm:$0xff] %v6653_v10  ;;  %v5404_v28 = vld [vmem:[#allocation2 + $0x8c0] sm:$0xf0]  ;;  %3114 = vmatpush.bf16.msra.mxu0 %v4379_v32  ;;  %v4895_v40 = vor.u32 %v5651_v0, %v4892_v56  ;;  %v5502_v35 = vld [vmem:[#allocation6 + $0x8] sm:$0xf0]  ;;  %3171 = vmatpush.bf16.msra.mxu3 %v4383_v31  ;;  %v4319_v10 = vor.u32 %v5507_v18, %v4316_v55  ;;  %v1006_v24 = vrot.slane %v6750_v62, 4 }
  0xeb   : > { %1145 = vst [vmem:[#allocation2 + $0x290] sm:$0xff] %v1068_v25  ;;  %3135 = vmatmul.bf16.vlgmr.msra.gmra.mxu1 %v6741_v46  ;;  %v5779_v33 = vld [vmem:[#allocation2 + $0x884] sm:$0xf]  ;;  %v4642_v30 = vld [vmem:[#allocation2 + $0x288] sm:$0xf]  ;;  %v777_v43 = vsel %vm638_vm2, %v660_v4, %v6692_v8  ;;  %v6773_v16 = vor.u32 %v5502_v35, %v4290_v34  ;;  %v997_v55 = vrot.slane %v6759_v21, 4  ;;  %v432_v35 = vsel %vm400_vm0, %v398_v59, %v399_v48 }
  0xec   : > { %3189 = vmatpush.bf16.msrb.mxu2 %v4959_v5  ;;  %3222 = vmatpush.bf16.msrb.mxu1 %v4771_v45  ;;  %1241 = vst [vmem:[#allocation2 + $0x590] sm:$0xff] %v1177_v12  ;;  %v5635_v45 = vld [vmem:[#allocation2 + $0x404] sm:$0xf]  ;;  %v5282_v11 = vld [vmem:[#allocation2 + $0x788] sm:$0xf]  ;;  %v5407_v44 = vor.u32 %v5779_v33, %v5404_v28  ;;  %v4643_v1 = vor.u32 %v5596_v9, %v4642_v30 }
  0xed   : > { %v4828_v26 = vld [vmem:[#allocation2 + $0x440] sm:$0xf0]  ;;  %1296 = vst [vmem:[#allocation2 + $0x888] sm:$0xff] %v1068_v25  ;;  %v5756_v38 = vld [vmem:[#allocation2 + $0x7c4] sm:$0xf0]  ;;  %v1035_v59 = vsel %vm400_vm0, %v996_v54, %v997_v55 }
  0xee   : > { %744 = vst [vmem:[#allocation2 + $0x150] sm:$0xff] %v659_v22  ;;  %v5620_v5 = vld [vmem:[#allocation2 + $0x38c] sm:$0xf]  ;;  %3115 = vmatpush.bf16.msra.mxu0 %v4315_v29  ;;  %v4831_v25 = vor.u32 %v5635_v45, %v4828_v26  ;;  %v5580_v31 = vld [vmem:[#allocation2 + $0x244] sm:$0xf0]  ;;  %3172 = vmatpush.bf16.msra.mxu3 %v4319_v10  ;;  %v5283_v12 = vor.u32 %v5756_v38, %v5282_v11  ;;  %v6047_v11 = vmov 0  }
  0xef   : > { %v4772_v32 = vld [vmem:[#allocation2 + $0x3c8] sm:$0xf0]  ;;  %1259 = vrot.lane.b32.xlu1 %v6683_v14, %s6046_s22  ;;  %745 = vst [vmem:[#allocation2 + $0x158] sm:$0xff] %v661_v27  ;;  %v5763_v56 = vld [vmem:[#allocation2 + $0x804] sm:$0xf]  ;;  %v416_v14 = vsel %vm400_vm0, %v380_v63, %v381_v36  ;;  %v1051_v29 = vsel %vm400_vm0, %v1005_v37, %v1006_v24  ;;  %v4579_v10 = vor.u32 %v5580_v31, %v4578_v13  ;;  %v624_v36 = vrot.slane %v6726_v58, 4 }
  0xf0   : > { %3190 = vmatpush.bf16.msrb.mxu2 %v4895_v40  ;;  %3223 = vmatpush.bf16.msrb.mxu1 %v4707_v60  ;;  %v5340_v19 = vld [vmem:[#allocation2 + $0x840] sm:$0xf0]  ;;  %840 = vst [vmem:[#allocation2 + $0x450] sm:$0xff] %v776_v17  ;;  %v6783_v18 = vld [vmem:[#allocation2 + $0x30c] sm:$0xf]  ;;  %v4775_v28 = vor.u32 %v5620_v5, %v4772_v32  ;;  %v1052_v52 = vsel %vm1031_vm1, %v6560_v15, %v1051_v29 }
  0xf1   : > { %v6780_v4 = vpop.permute.xlu1 %537  ;;  %v275_v60 = vld [vmem:[%s6167_s19 + $0x94] sm:$0xf]  ;;  %841 = vst [vmem:[#allocation2 + $0x458] sm:$0xff] %v777_v43  ;;  %v4708_v9 = vld [vmem:[#allocation2 + $0x348] sm:$0xf0]  ;;  %3116 = vmatmul.bf16.vlgmr.msra.gmra.mxu0 %v6773_v16  ;;  %v5343_v63 = vor.u32 %v5763_v56, %v5340_v19  ;;  %3173 = vmatmul.bf16.vlgmr.msra.gmra.mxu3 %v6773_v16  ;;  %v1169_v17 = vsel %vm1031_vm1, %v1051_v29, %v6750_v62 }
  0xf2   : > { %3209 = vmatpush.bf16.msrb.mxu0 %v5407_v44  ;;  %v6789_v0 = vpop.permute.xlu0 %591  ;;  %v6792_v40 = vld [vmem:[%s6167_s19 + $0x12c] sm:$0xf]  ;;  %899 = vst [vmem:[#allocation2 + $0x748] sm:$0xff] %v659_v22  ;;  %3241 = vmatpush.bf16.msrb.mxu3 %v5283_v12  ;;  %v4514_v33 = vld [vmem:[#allocation2 + $0x188] sm:$0xf]  ;;  %v4711_v26 = vor.u32 %v6783_v18, %v4708_v9  ;;  %v605_v54 = vrot.slane %v6780_v4, 4  ;;  %v1036_v32 = vsel %vm1031_vm1, %v6517_v49, %v1035_v59 }
  0xf3   : > { %v5564_v34 = vld [vmem:[#allocation2 + $0x1c4] sm:$0xf0]  ;;  %900 = vst [vmem:[#allocation2 + $0x750] sm:$0xff] %v661_v27  ;;  %868 = vrot.lane.b32.xlu0 %v275_v60, %s6045_s27  ;;  %v5504_v45 = vld [vmem:[#allocation6 + $0x1c] sm:$0xf]  ;;  %872 = vrot.lane.b32.xlu2 %v6792_v40, %s6045_s27  ;;  %v1161_v56 = vsel %vm1031_vm1, %v1035_v59, %v6759_v21  ;;  %v678_v49 = vsel %vm400_vm0, %v623_v42, %v624_v36  ;;  %v632_v18 = vrot.slane %v6789_v0, 4 }
  0xf4   : > { %3191 = vmatpush.bf16.msrb.mxu2 %v4831_v25  ;;  %3224 = vmatpush.bf16.msrb.mxu1 %v4643_v1  ;;  %v5788_v22 = vld [vmem:[#allocation2 + $0x8c4] sm:$0xf0]  ;;  %480 = vst [vmem:[#allocation2 + $0x378] sm:$0xff] %v416_v14  ;;  %v4644_v15 = vld [vmem:[#allocation2 + $0x2c8] sm:$0xf0]  ;;  %v4515_v43 = vor.u32 %v5564_v34, %v4514_v33  ;;  %v644_v29 = vsel %vm400_vm0, %v604_v20, %v605_v54  ;;  %v1609_v20 = vld [vmem:[%s7859_s2 + $0x10] sm:$0xff] }
  0xf5   : > { %v5410_v37 = vld [vmem:[#allocation2 + $0x888] sm:$0xf]  ;;  %512 = vst [vmem:[#allocation2 + $0x678] sm:$0xff] %v6642_v7  ;;  %5890 = vset.pattern.permute.xlu0 %v6047_v11  ;;  %v5588_v31 = vld [vmem:[#allocation2 + $0x28c] sm:$0xf]  ;;  %5891 = vset.pattern.permute.xlu1 %v6047_v11  ;;  %v786_v34 = vsel %vm638_vm2, %v678_v49, %v6726_v58  ;;  %v645_v59 = vsel %vm638_vm2, %v6556_v23, %v644_v29 }
  0xf6   : > { %3210 = vmatpush.bf16.msrb.mxu0 %v5343_v63  ;;  %v4304_v30 = vld [vmem:[#allocation6 + $0x24] sm:$0xf0]  ;;  %v5411_v27 = vor.u32 %v5788_v22, %v5410_v37  ;;  %496 = vst [vmem:[#allocation2 + $0x3f8] sm:$0xff] %v432_v35  ;;  %5889 = vset.pattern.permute.xlu2 %v6047_v11  ;;  %v4647_v63 = vor.u32 %v5588_v31, %v4644_v15  ;;  %v4302_v33 = vld [vmem:[#allocation6 + $0x18] sm:$0xf]  ;;  %v1007_v37 = vrot.slane %v6775_v61, 4 }
  0xf7   : > { %3192 = vmatmul.bf16.vlgmr.msrb.gmra.mxu2 %v6741_v46  ;;  %v5548_v7 = vld [vmem:[#allocation2 + $0x144] sm:$0xf0]  ;;  %528 = vst [vmem:[#allocation2 + $0x6f8] sm:$0xff] %v6621_v47  ;;  %v6822_v44 = vor.u32 %v5504_v45, %v4304_v30  ;;  %1257 = vrot.lane.b32.xlu1 %v275_v60, %s6046_s22  ;;  %v6830_v47 = vpop.permute.xlu2 %968  ;;  %v5505_v42 = vld [vmem:[#allocation6 + $0x20] sm:$0xf0]  ;;  %v679_v45 = vsel %vm638_vm2, %v6636_v6, %v678_v49 }
  0xf8   : > { %3225 = vmatpush.bf16.msrb.mxu1 %v4579_v10  ;;  %3266 = vmatpush.bf16.msra.mxu2 %v5411_v27  ;;  %v5218_v38 = vld [vmem:[#allocation2 + $0x708] sm:$0xf]  ;;  %1137 = vst [vmem:[#allocation2 + $0x250] sm:$0xff] %v1052_v52  ;;  %v5572_v22 = vld [vmem:[#allocation2 + $0x20c] sm:$0xf]  ;;  %v692_v27 = vsel %vm400_vm0, %v631_v3, %v632_v18  ;;  %v769_v11 = vsel %vm638_vm2, %v644_v29, %v6780_v4 }
  0xf9   : > { %v4450_v5 = vld [vmem:[#allocation2 + $0x108] sm:$0xf]  ;;  %v6827_v25 = vpop.permute.xlu1 %984  ;;  %1233 = vst [vmem:[#allocation2 + $0x550] sm:$0xff] %v1169_v17  ;;  %v4580_v10 = vld [vmem:[#allocation2 + $0x248] sm:$0xf0]  ;;  %v6865_v17 = vor.u32 %v5505_v42, %v4302_v33  ;;  %v693_v31 = vsel %vm638_vm2, %v6664_v41, %v692_v27 }
  0xfa   : > { %3279 = vmatpush.bf16.msra.mxu0 %v4775_v28  ;;  %v5154_v48 = vld [vmem:[#allocation2 + $0x688] sm:$0xf]  ;;  %v6834_v60 = vpop.permute.xlu0 %966  ;;  %1288 = vst [vmem:[#allocation2 + $0x848] sm:$0xff] %v1052_v52  ;;  %v4451_v13 = vor.u32 %v5548_v7, %v4450_v5  ;;  %v5556_v15 = vld [vmem:[#allocation2 + $0x18c] sm:$0xf]  ;;  %v1025_v23 = vrot.slane %v6827_v25, 4 }
  0xfb   : > { %v265_v1 = vld [vmem:[%s6167_s19 + $0x48] sm:$0xf]  ;;  %1129 = vst [vmem:[#allocation2 + $0x210] sm:$0xff] %v1036_v32  ;;  %3140 = vmatmul.bf16.gmra.mxu1 %v6822_v44  ;;  %v4516_v5 = vld [vmem:[#allocation2 + $0x1c8] sm:$0xf0]  ;;  %s4163_s19 = scalar_lea.hbm %s7860_s3, %s5795_s4 }
  0xfc   : > { %v5740_v19 = vld [vmem:[#allocation2 + $0x744] sm:$0xf0]  ;;  %3226 = vmatpush.bf16.msrb.mxu1 %v4515_v43  ;;  %1255 = vrot.lane.b32.xlu0 %v265_v1, %s6046_s22  ;;  %1225 = vst [vmem:[#allocation2 + $0x510] sm:$0xff] %v1161_v56  ;;  %v4583_v43 = vor.u32 %v5572_v22, %v4580_v10  ;;  %v1053_v56 = vsel %vm400_vm0, %v1006_v24, %v1007_v37  ;;  %v5284_v49 = vld [vmem:[#allocation2 + $0x7c8] sm:$0xf0]  ;;  %v7868_v10 = vrot.slane %v6592_v53, 4 }
  0xfd   : > { %v5724_v12 = vld [vmem:[#allocation2 + $0x6c4] sm:$0xf0]  ;;  %v5219_v14 = vor.u32 %v5740_v19, %v5218_v38  ;;  %866 = vrot.lane.b32.xlu2 %v265_v1, %s6045_s27  ;;  %1280 = vst [vmem:[#allocation2 + $0x808] sm:$0xff] %v1036_v32  ;;  %v6869_v38 = vld [vmem:[#allocation2 + $0x390] sm:$0xf]  ;;  %v4519_v33 = vor.u32 %v5556_v15, %v4516_v5  ;;  %v1054_v22 = vsel %vm1031_vm1, %v6750_v62, %v1053_v56  ;;  %s4164_s27 = sshll.u32 %s7478_s30, 4  ;;  %s4165_s27 = int_to_ptr.vmem [resolvable:$true] %s4164_s27 }
  0xfe   : > { %3280 = vmatpush.bf16.msra.mxu0 %v4711_v26  ;;  %v4386_v28 = vld [vmem:[#allocation2 + $0x88] sm:$0xf]  ;;  %v5155_v35 = vor.u32 %v5724_v12, %v5154_v48  ;;  %754 = vst [vmem:[#allocation2 + $0x1a0] sm:$0xff] %v679_v45  ;;  %v5629_v32 = vld [vmem:[#allocation2 + $0x3cc] sm:$0xf0] }
  0xff   : > { %v5532_v9 = vld [vmem:[#allocation2 + $0xc4] sm:$0xf0]  ;;  %3242 = vmatpush.bf16.msrb.mxu3 %v5219_v14  ;;  %850 = vst [vmem:[#allocation2 + $0x4a0] sm:$0xff] %v786_v34  ;;  %1623 = vperm.xlu1 %5891, %v1609_v20   ;;  %v5748_v12 = vld [vmem:[#allocation2 + $0x78c] sm:$0xf]  ;;  %v4779_v24 = vor.u32 %v5629_v32, %v6869_v38  ;;  %v1085_v20 = vsel %vm400_vm0, %v7868_v10, %v1025_v23 }
 0x100   : > { %3227 = vmatpush.bf16.msrb.mxu1 %v4451_v13  ;;  %v5090_v26 = vld [vmem:[#allocation2 + $0x608] sm:$0xf]  ;;  %v4387_v52 = vor.u32 %v5532_v9, %v4386_v28  ;;  %909 = vst [vmem:[#allocation2 + $0x798] sm:$0xff] %v679_v45  ;;  %v6886_v28 = vpop.permute.xlu2 %950  ;;  %v793_v9 = vsel %vm638_vm2, %v692_v27, %v6789_v0  ;;  %v1016_v13 = vrot.slane %v6834_v60, 4  ;;  %v5540_v42 = vld [vmem:[#allocation2 + $0x10c] sm:$0xf] }
 0x101   : > { %v5708_v30 = vld [vmem:[#allocation2 + $0x644] sm:$0xf0]  ;;  %v6872_v48 = vpop.permute.xlu1 %930  ;;  %737 = vst [vmem:[#allocation2 + $0x118] sm:$0xff] %v645_v59  ;;  %3121 = vmatmul.bf16.gmra.mxu0 %v6865_v17  ;;  %3178 = vmatmul.bf16.gmra.mxu3 %v6865_v17  ;;  %v4452_v34 = vld [vmem:[#allocation2 + $0x148] sm:$0xf0] }
 0x102   : > { %3281 = vmatpush.bf16.msra.mxu0 %v4647_v63  ;;  %v4322_v6 = vld [vmem:[#allocation2 + $0x8] sm:$0xf]  ;;  %v5091_v3 = vor.u32 %v5708_v30, %v5090_v26  ;;  %v6884_v14 = vpop.permute.xlu0 %593  ;;  %833 = vst [vmem:[#allocation2 + $0x418] sm:$0xff] %v769_v11  ;;  %v4714_v45 = vld [vmem:[#allocation2 + $0x310] sm:$0xf]  ;;  %v5287_v30 = vor.u32 %v5748_v12, %v5284_v49  ;;  %v998_v15 = vrot.slane %v6872_v48, 4  ;;  %v4455_v5 = vor.u32 %v5540_v42, %v4452_v34 }
 0x103   : > { %v5516_v7 = vld [vmem:[#allocation2 + $0x44] sm:$0xf0]  ;;  %3243 = vmatpush.bf16.msrb.mxu3 %v5155_v35  ;;  %892 = vst [vmem:[#allocation2 + $0x710] sm:$0xff] %v645_v59  ;;  %v1170_v59 = vsel %vm1031_vm1, %v1053_v56, %v6775_v61  ;;  %v5613_v27 = vld [vmem:[#allocation2 + $0x34c] sm:$0xf0] }
 0x104   : > { %v1608_v1 = vld [vmem:[%s7859_s2 + $0x8] sm:$0xff]  ;;  %3228 = vmatpush.bf16.msrb.mxu1 %v4387_v52  ;;  %v4323_v19 = vor.u32 %v5516_v7, %v4322_v6  ;;  %761 = vst [vmem:[#allocation2 + $0x1d8] sm:$0xff] %v693_v31 }
 0x105   : > { %v5772_v41 = vld [vmem:[#allocation2 + $0x844] sm:$0xf0]  ;;  %1618 = vperm.xlu0 %5890, %v1608_v1   ;;  %1261 = vrot.lane.b32.xlu2 %v6792_v40, %s6046_s22  ;;  %857 = vst [vmem:[#allocation2 + $0x4d8] sm:$0xff] %v793_v9  ;;  %v5732_v62 = vld [vmem:[#allocation2 + $0x70c] sm:$0xf]  ;;  %v1086_v40 = vsel %vm1031_vm1, %v6592_v53, %v1085_v20  ;;  %v1186_v1 = vsel %vm1031_vm1, %v1085_v20, %v6827_v25  ;;  %s4166_s22 = sshll.u32 %s4163_s19, 4  ;;  %s4167_s22 = int_to_ptr.hbm [resolvable:$true] %s4166_s22 }
 0x106   : > { %3282 = vmatpush.bf16.msra.mxu0 %v4583_v43  ;;  %v5692_v29 = vld [vmem:[#allocation2 + $0x5c4] sm:$0xf0]  ;;  %v5220_v6 = vld [vmem:[#allocation2 + $0x748] sm:$0xf0]  ;;  %916 = vst [vmem:[#allocation2 + $0x7d0] sm:$0xff] %v693_v31  ;;  %v1069_v43 = vsel %vm400_vm0, %v1015_v57, %v1016_v13  ;;  %v4715_v31 = vor.u32 %v5613_v27, %v4714_v45  ;;  %s5966_s20 = sshra.s32 %s4167_s22, 4  ;;  %s5967_s20 = int_to_ptr.hbm [resolvable:$true] %s5966_s20 }
 0x107   : > { %v5026_v63 = vld [vmem:[#allocation2 + $0x588] sm:$0xf]  ;;  %3244 = vmatpush.bf16.msrb.mxu3 %v5091_v3  ;;  %3197 = vmatmul.bf16.gmra.mxu2 %v6822_v44  ;;  %v5524_v11 = vld [vmem:[#allocation2 + $0x8c] sm:$0xf]  ;;  %1138 = vst [vmem:[#allocation2 + $0x258] sm:$0xff] %v1054_v22  ;;  %v5223_v12 = vor.u32 %v5732_v62, %v5220_v6  ;;  %s5968_s9 = scalar_lea.hbm %s5967_s20, 256  ;;  %p5973_p8 = scmp.lt.s32.totalorder %s5967_s20, %s7860_s3 }
 0x108   : > { %v5346_v35 = vld [vmem:[#allocation2 + $0x808] sm:$0xf]  ;;  %3229 = vmatpush.bf16.msrb.mxu1 %v4323_v19  ;;  %v5027_v7 = vor.u32 %v5692_v29, %v5026_v63  ;;  %v4388_v38 = vld [vmem:[#allocation2 + $0xc8] sm:$0xf0]  ;;  %1234 = vst [vmem:[#allocation2 + $0x558] sm:$0xff] %v1170_v59  ;;  %v1070_v63 = vsel %vm1031_vm1, %v6707_v39, %v1069_v43  ;;  %v633_v39 = vrot.slane %v6884_v14, 4  ;;  %v6934_v45 = vpop.permute.xlu2 %541  ;;  %p5969_p1 = scmp.ne.s32.totalorder %s5967_s20, %s5968_s9  ;;  %p5974_p12 = scmp.lt.s32.totalorder %s5972_s25, %s5968_s9 }
 0x109   : > { %v5676_v26 = vld [vmem:[#allocation2 + $0x544] sm:$0xf0]  ;;  %v5347_v52 = vor.u32 %v5772_v41, %v5346_v35  ;;  %v5716_v32 = vld [vmem:[#allocation2 + $0x68c] sm:$0xf]  ;;  %v6916_v53 = vpop.permute.xlu1 %557  ;;  %1289 = vst [vmem:[#allocation2 + $0x850] sm:$0xff] %v1054_v22  ;;  %v4391_v57 = vor.u32 %v5524_v11, %v4388_v38  ;;  %v1607_v35 = vld [vmem:[%s7859_s2] sm:$0xff]  ;;  %v1178_v22 = vsel %vm1031_vm1, %v1069_v43, %v6834_v60 }
 0x10a   : > { %3283 = vmatpush.bf16.msra.mxu0 %v4519_v33  ;;  %v5156_v3 = vld [vmem:[#allocation2 + $0x6c8] sm:$0xf0]  ;;  %v4962_v56 = vld [vmem:[#allocation2 + $0x508] sm:$0xf]  ;;  %v4650_v9 = vld [vmem:[#allocation2 + $0x290] sm:$0xf]  ;;  %v6918_v29 = vpop.permute.xlu0 %539  ;;  %p5970_p2 = pnand %p5969_p1, %p6145_p5  ;;  %p5975_p13 = por %p5974_p12, %p5973_p8 }
 0x10b   : > { %3267 = vmatpush.bf16.msra.mxu2 %v5347_v52  ;;  %3245 = vmatpush.bf16.msrb.mxu3 %v5027_v7  ;;  %v4898_v19 = vld [vmem:[#allocation2 + $0x488] sm:$0xf]  ;;  %v4963_v49 = vor.u32 %v5676_v26, %v4962_v56  ;;  %1154 = vst [vmem:[#allocation2 + $0x2d8] sm:$0xff] %v1086_v40  ;;  %v5159_v33 = vor.u32 %v5716_v32, %v5156_v3  ;;  %v5508_v42 = vld [vmem:[#allocation2 + $0xc] sm:$0xf]  ;;  %v1017_v26 = vrot.slane %v6830_v47, 4 }
 0x10c   : > { %3298 = vmatpush.bf16.msra.mxu1 %v5287_v30  ;;  %v5660_v41 = vld [vmem:[#allocation2 + $0x4c4] sm:$0xf0]  ;;  %v4324_v34 = vld [vmem:[#allocation2 + $0x48] sm:$0xf0]  ;;  %1250 = vst [vmem:[#allocation2 + $0x5d8] sm:$0xff] %v1186_v1  ;;  %p5971_p4 = pneg %p5970_p2 }
 0x10d   : > { %3230 = vmatmul.bf16.vlgmr.msrb.gmra.mxu1 %v6773_v16  ;;  %v5700_v10 = vld [vmem:[#allocation2 + $0x60c] sm:$0xf]  ;;  %1305 = vst [vmem:[#allocation2 + $0x8d0] sm:$0xff] %v1086_v40  ;;  %v5597_v52 = vld [vmem:[#allocation2 + $0x2cc] sm:$0xf0]  ;;  %v4899_v59 = vor.u32 %v5660_v41, %v4898_v19  ;;  %v4327_v62 = vor.u32 %v5508_v42, %v4324_v34  ;;  %1613 = vperm.xlu2 %5889, %v1607_v35  }
 0x10e   : > { %3284 = vmatpush.bf16.msra.mxu0 %v4455_v5  ;;  %v5092_v20 = vld [vmem:[#allocation2 + $0x648] sm:$0xf0]  ;;  %1146 = vst [vmem:[#allocation2 + $0x298] sm:$0xff] %v1070_v63  ;;  %v5644_v27 = vld [vmem:[#allocation2 + $0x444] sm:$0xf0]  ;;  %v4651_v7 = vor.u32 %v5597_v52, %v4650_v9  ;;  %v606_v9 = vrot.slane %v6918_v29, 4  ;;  %p5976_p0 = pnand %p5975_p13, %p5971_p4 }
 0x10f   : > { %3336 = vmatpush.bf16.msrb.mxu2 %v4779_v24  ;;  %v1037_v24 = vsel %vm400_vm0, %v997_v55, %v998_v15  ;;  %3246 = vmatpush.bf16.msrb.mxu3 %v4963_v49  ;;  %v4834_v55 = vld [vmem:[#allocation2 + $0x408] sm:$0xf]  ;;  %1242 = vst [vmem:[#allocation2 + $0x598] sm:$0xff] %v1178_v22  ;;  %v5780_v11 = vld [vmem:[#allocation2 + $0x88c] sm:$0xf]  ;;  %v5095_v38 = vor.u32 %v5700_v10, %v5092_v20  ;;  %v1008_v22 = vrot.slane %v6886_v28, 4 }
 0x110   : > { %3299 = vmatpush.bf16.msra.mxu1 %v5223_v12  ;;  %v1038_v30 = vsel %vm1031_vm1, %v6759_v21, %v1037_v24  ;;  %v1162_v6 = vsel %vm1031_vm1, %v1037_v24, %v6872_v48  ;;  %v5757_v40 = vld [vmem:[#allocation2 + $0x7cc] sm:$0xf0]  ;;  %1297 = vst [vmem:[#allocation2 + $0x890] sm:$0xff] %v1070_v63  ;;  %v694_v21 = vsel %vm400_vm0, %v632_v18, %v633_v39  ;;  %v5412_v1 = vld [vmem:[#allocation2 + $0x8c8] sm:$0xf0] }
 0x111   : > { %v4586_v43 = vld [vmem:[#allocation2 + $0x210] sm:$0xf]  ;;  %1130 = vst [vmem:[#allocation2 + $0x218] sm:$0xff] %v1038_v30  ;;  %v5028_v19 = vld [vmem:[#allocation2 + $0x5c8] sm:$0xf0]  ;;  %v6955_v12 = vpop.permute.xlu1 %932  ;;  %v794_v18 = vsel %vm638_vm2, %v694_v21, %v6884_v14  ;;  %v4835_v49 = vor.u32 %v5644_v27, %v4834_v55  ;;  %5466 = vmatmul.msk.bf16.vlgmr.msrb.gmra.mxu0 %vm3101_vm3, %v6634_v2  ;;  %v5415_v10 = vor.u32 %v5780_v11, %v5412_v1  ;;  %v6982_v11 = vpop.permute.xlu2 %988 }
 0x112   : > { %3285 = vmatpush.bf16.msra.mxu0 %v4391_v57  ;;  %v5581_v5 = vld [vmem:[#allocation2 + $0x24c] sm:$0xf0]  ;;  %1226 = vst [vmem:[#allocation2 + $0x518] sm:$0xff] %v1162_v6  ;;  %v6960_v57 = vld [vmem:[#allocation2 + $0x394] sm:$0xf] }
 0x113   : > { %3337 = vmatpush.bf16.msrb.mxu2 %v4715_v31  ;;  %3247 = vmatpush.bf16.msrb.mxu3 %v4899_v59  ;;  %v6946_v32 = vld [vmem:[#allocation2 + $0x190] sm:$0xf]  ;;  %v1071_v31 = vsel %vm400_vm0, %v1016_v13, %v1017_v26  ;;  %v6962_v63 = vld [vmem:[#allocation2 + $0x3d0] sm:$0xf0]  ;;  %v5684_v24 = vld [vmem:[#allocation2 + $0x58c] sm:$0xf]  ;;  %v695_v13 = vsel %vm638_vm2, %v6789_v0, %v694_v21  ;;  %v4587_v42 = vor.u32 %v5581_v5, %v4586_v43 }
 0x114   : > { %3300 = vmatpush.bf16.msra.mxu1 %v5159_v33  ;;  %v6948_v3 = vld [vmem:[#allocation2 + $0x1cc] sm:$0xf0]  ;;  %v6964_v33 = vpop.permute.xlu0 %986  ;;  %1281 = vst [vmem:[#allocation2 + $0x810] sm:$0xff] %v1038_v30  ;;  %v1072_v20 = vsel %vm1031_vm1, %v6834_v60, %v1071_v31  ;;  %v5764_v55 = vld [vmem:[#allocation2 + $0x80c] sm:$0xf]  ;;  %v1179_v0 = vsel %vm1031_vm1, %v1071_v31, %v6830_v47  ;;  %v5031_v30 = vor.u32 %v5684_v24, %v5028_v19  ;;  %v1610_v5 = vld [vmem:[%s7859_s2 + $0x18] sm:$0xff] }
 0x115   : > { %v5290_v56 = vld [vmem:[#allocation2 + $0x790] sm:$0xf]  ;;  %762 = vst [vmem:[#allocation2 + $0x1e0] sm:$0xff] %v695_v13  ;;  %v5348_v52 = vld [vmem:[#allocation2 + $0x848] sm:$0xf0]  ;;  %v646_v60 = vsel %vm400_vm0, %v605_v54, %v606_v9  ;;  %v4783_v21 = vor.u32 %v6960_v57, %v6962_v63  ;;  %v1055_v54 = vsel %vm400_vm0, %v1007_v37, %v1008_v22  ;;  %1628 = vperm.xlu2 %5889, %v1610_v5  }
 0x116   : > { %3286 = vmatpush.bf16.msra.mxu0 %v4327_v62  ;;  %v5291_v41 = vor.u32 %v5757_v40, %v5290_v56  ;;  %v5226_v34 = vld [vmem:[#allocation2 + $0x710] sm:$0xf]  ;;  %858 = vst [vmem:[#allocation2 + $0x4e0] sm:$0xff] %v794_v18  ;;  %v4523_v62 = vor.u32 %v6948_v3, %v6946_v32  ;;  %v5351_v40 = vor.u32 %v5764_v55, %v5348_v52  ;;  %v5668_v43 = vld [vmem:[#allocation2 + $0x50c] sm:$0xf]  ;;  %v615_v18 = vrot.slane %v6916_v53, 4 }
 0x117   : > { %3338 = vmatpush.bf16.msrb.mxu2 %v4651_v7  ;;  %v5741_v35 = vld [vmem:[#allocation2 + $0x74c] sm:$0xf0]  ;;  %3248 = vmatpush.bf16.msrb.mxu3 %v4835_v49  ;;  %917 = vst [vmem:[#allocation2 + $0x7d8] sm:$0xff] %v695_v13  ;;  %v4964_v7 = vld [vmem:[#allocation2 + $0x548] sm:$0xf0]  ;;  %v770_v32 = vsel %vm638_vm2, %v646_v60, %v6918_v29  ;;  %v647_v49 = vsel %vm638_vm2, %v6780_v4, %v646_v60 }
 0x118   : > { %3301 = vmatpush.bf16.msra.mxu1 %v5095_v38  ;;  %v5162_v59 = vld [vmem:[#allocation2 + $0x690] sm:$0xf]  ;;  %v5227_v6 = vor.u32 %v5741_v35, %v5226_v34  ;;  %1147 = vst [vmem:[#allocation2 + $0x2a0] sm:$0xff] %v1072_v20  ;;  %5468 = vmatmul.msk.bf16.vlgmr.msra.gmra.mxu2 %vm3101_vm3, %v6634_v2  ;;  %v5605_v56 = vld [vmem:[#allocation2 + $0x314] sm:$0xf]  ;;  %v4967_v57 = vor.u32 %v5668_v43, %v4964_v7 }
 0x119   : > { %v5725_v27 = vld [vmem:[#allocation2 + $0x6cc] sm:$0xf0]  ;;  %1243 = vst [vmem:[#allocation2 + $0x5a0] sm:$0xff] %v1179_v0  ;;  %v4716_v19 = vld [vmem:[#allocation2 + $0x350] sm:$0xf0]  ;;  %v7003_v13 = vpop.permute.xlu1 %595  ;;  %v1171_v55 = vsel %vm1031_vm1, %v1055_v54, %v6886_v28  ;;  %v662_v52 = vsel %vm400_vm0, %v614_v51, %v615_v18 }
 0x11a   : > { %3355 = vmatpush.bf16.msrb.mxu0 %v5291_v41  ;;  %v5549_v38 = vld [vmem:[#allocation2 + $0x14c] sm:$0xf0]  ;;  %3249 = vmatmul.bf16.vlgmr.msrb.gmra.mxu3 %v6741_v46  ;;  %v5163_v37 = vor.u32 %v5725_v27, %v5162_v59  ;;  %1298 = vst [vmem:[#allocation2 + $0x898] sm:$0xff] %v1072_v20  ;;  %v1026_v41 = vrot.slane %v6964_v33, 4  ;;  %v5652_v34 = vld [vmem:[#allocation2 + $0x48c] sm:$0xf]  ;;  %v4719_v4 = vor.u32 %v5605_v56, %v4716_v19 }
 0x11b   : > { %3339 = vmatpush.bf16.msrb.mxu2 %v4587_v42  ;;  %3323 = vmatpush.bf16.msra.mxu3 %v5415_v10  ;;  %v4458_v3 = vld [vmem:[#allocation2 + $0x110] sm:$0xf]  ;;  %738 = vst [vmem:[#allocation2 + $0x120] sm:$0xff] %v647_v49  ;;  %v1056_v42 = vsel %vm1031_vm1, %v6775_v61, %v1055_v54  ;;  %v4900_v35 = vld [vmem:[#allocation2 + $0x4c8] sm:$0xf0] }
 0x11c   : > { %3302 = vmatpush.bf16.msra.mxu1 %v5031_v30  ;;  %v4394_v1 = vld [vmem:[#allocation2 + $0x90] sm:$0xf]  ;;  %v7007_v10 = vpop.permute.xlu0 %577  ;;  %834 = vst [vmem:[#allocation2 + $0x420] sm:$0xff] %v770_v32  ;;  %v4459_v20 = vor.u32 %v5549_v38, %v4458_v3  ;;  %v607_v30 = vrot.slane %v6934_v45, 4  ;;  %v1087_v27 = vsel %vm400_vm0, %v1025_v23, %v1026_v41  ;;  %v5589_v60 = vld [vmem:[#allocation2 + $0x294] sm:$0xf]  ;;  %v4903_v51 = vor.u32 %v5652_v34, %v4900_v35 }
 0x11d   : > { %v5533_v31 = vld [vmem:[#allocation2 + $0xcc] sm:$0xf0]  ;;  %893 = vst [vmem:[#allocation2 + $0x718] sm:$0xff] %v647_v49  ;;  %3235 = vmatmul.bf16.gmra.mxu1 %v6865_v17  ;;  %v5636_v7 = vld [vmem:[#allocation2 + $0x40c] sm:$0xf]  ;;  %v1088_v23 = vsel %vm1031_vm1, %v6827_v25, %v1087_v27 }
 0x11e   : > { %3356 = vmatpush.bf16.msrb.mxu0 %v5227_v6  ;;  %v5098_v63 = vld [vmem:[#allocation2 + $0x610] sm:$0xf]  ;;  %v4395_v59 = vor.u32 %v5533_v31, %v4394_v1  ;;  %1139 = vst [vmem:[#allocation2 + $0x260] sm:$0xff] %v1056_v42  ;;  %v778_v6 = vsel %vm638_vm2, %v662_v52, %v6916_v53  ;;  %v4836_v38 = vld [vmem:[#allocation2 + $0x448] sm:$0xf0]  ;;  %v648_v3 = vsel %vm400_vm0, %v606_v9, %v607_v30  ;;  %v7038_v1 = vpop.permute.xlu2 %934 }
 0x11f   : > { %3340 = vmatpush.bf16.msrb.mxu2 %v4523_v62  ;;  %v5709_v24 = vld [vmem:[#allocation2 + $0x64c] sm:$0xf0]  ;;  %3324 = vmatpush.bf16.msra.mxu3 %v5351_v40  ;;  %1235 = vst [vmem:[#allocation2 + $0x560] sm:$0xff] %v1171_v55  ;;  %v663_v40 = vsel %vm638_vm2, %v6692_v8, %v662_v52  ;;  %v4652_v32 = vld [vmem:[#allocation2 + $0x2d0] sm:$0xf0]  ;;  %v1187_v31 = vsel %vm1031_vm1, %v1087_v27, %v6964_v33 }
 0x120   : > { %3303 = vmatpush.bf16.msra.mxu1 %v4967_v57  ;;  %v7016_v61 = vld [vmem:[#allocation2 + $0x10] sm:$0xf]  ;;  %v5099_v0 = vor.u32 %v5709_v24, %v5098_v63  ;;  %1290 = vst [vmem:[#allocation2 + $0x858] sm:$0xff] %v1056_v42  ;;  %v5749_v56 = vld [vmem:[#allocation2 + $0x794] sm:$0xf]  ;;  %v4655_v19 = vor.u32 %v5589_v60, %v4652_v32  ;;  %v4839_v49 = vor.u32 %v5636_v7, %v4836_v38  ;;  %v625_v24 = vrot.slane %v7007_v10, 4 }
 0x121   : > { %v5517_v62 = vld [vmem:[#allocation2 + $0x4c] sm:$0xf0]  ;;  %746 = vst [vmem:[#allocation2 + $0x160] sm:$0xff] %v663_v40  ;;  %v5292_v25 = vld [vmem:[#allocation2 + $0x7d0] sm:$0xf0]  ;;  %v7042_v57 = vpop.permute.xlu1 %970  ;;  %5467 = vmatmul.msk.bf16.gmra.mxu0 %vm3101_vm3, %v6717_v50 }
 0x122   : > { %3357 = vmatpush.bf16.msrb.mxu0 %v5163_v37  ;;  %v5418_v54 = vld [vmem:[#allocation2 + $0x890] sm:$0xf]  ;;  %v4331_v5 = vor.u32 %v5517_v62, %v7016_v61  ;;  %842 = vst [vmem:[#allocation2 + $0x460] sm:$0xff] %v778_v6  ;;  %v5573_v37 = vld [vmem:[#allocation2 + $0x214] sm:$0xf]  ;;  %v1027_v6 = vrot.slane %v6982_v11, 4  ;;  %v680_v38 = vsel %vm400_vm0, %v624_v36, %v625_v24 }
 0x123   : > { %3393 = vmatpush.bf16.msrb.mxu3 %v4783_v21  ;;  %3341 = vmatpush.bf16.msrb.mxu2 %v4459_v20  ;;  %v999_v21 = vrot.slane %v6955_v12, 4  ;;  %v5789_v43 = vld [vmem:[#allocation2 + $0x8cc] sm:$0xf0]  ;;  %901 = vst [vmem:[#allocation2 + $0x758] sm:$0xff] %v663_v40  ;;  %v4588_v63 = vld [vmem:[#allocation2 + $0x250] sm:$0xf0]  ;;  %v649_v20 = vsel %vm638_vm2, %v6918_v29, %v648_v3 }
 0x124   : > { %3304 = vmatpush.bf16.msra.mxu1 %v4903_v51  ;;  %v5034_v8 = vld [vmem:[#allocation2 + $0x590] sm:$0xf]  ;;  %v5419_v42 = vor.u32 %v5789_v43, %v5418_v54  ;;  %v7045_v34 = vpop.permute.xlu0 %559  ;;  %1155 = vst [vmem:[#allocation2 + $0x2e0] sm:$0xff] %v1088_v23  ;;  %v5733_v35 = vld [vmem:[#allocation2 + $0x714] sm:$0xf]  ;;  %v4591_v60 = vor.u32 %v5573_v37, %v4588_v63  ;;  %v634_v36 = vrot.slane %v7003_v13, 4  ;;  %v1089_v63 = vsel %vm400_vm0, %v1026_v41, %v1027_v6 }
 0x125   : > { %v5693_v9 = vld [vmem:[#allocation2 + $0x5cc] sm:$0xf0]  ;;  %1251 = vst [vmem:[#allocation2 + $0x5e0] sm:$0xff] %v1187_v31  ;;  %v5228_v62 = vld [vmem:[#allocation2 + $0x750] sm:$0xf0] }
 0x126   : > { %3358 = vmatpush.bf16.msrb.mxu0 %v5099_v0  ;;  %v5035_v55 = vor.u32 %v5693_v9, %v5034_v8  ;;  %v5354_v52 = vld [vmem:[#allocation2 + $0x810] sm:$0xf]  ;;  %v5295_v0 = vor.u32 %v5749_v56, %v5292_v25  ;;  %1306 = vst [vmem:[#allocation2 + $0x8d8] sm:$0xff] %v1088_v23  ;;  %v4524_v51 = vld [vmem:[#allocation2 + $0x1d0] sm:$0xf0]  ;;  %v681_v25 = vsel %vm638_vm2, %v6726_v58, %v680_v38 }
 0x127   : > { %3394 = vmatpush.bf16.msrb.mxu3 %v4719_v4  ;;  %3342 = vmatpush.bf16.msrb.mxu2 %v4395_v59  ;;  %v1039_v4 = vsel %vm400_vm0, %v998_v15, %v999_v21  ;;  %v5773_v61 = vld [vmem:[#allocation2 + $0x84c] sm:$0xf0]  ;;  %v771_v59 = vsel %vm638_vm2, %v648_v3, %v6934_v45  ;;  %v5557_v15 = vld [vmem:[#allocation2 + $0x194] sm:$0xf]  ;;  %739 = vst [vmem:[#allocation2 + $0x128] sm:$0xff] %v649_v20 }
 0x128   : > { %3305 = vmatpush.bf16.msra.mxu1 %v4839_v49  ;;  %v4970_v29 = vld [vmem:[#allocation2 + $0x510] sm:$0xf]  ;;  %v1040_v7 = vsel %vm1031_vm1, %v6872_v48, %v1039_v4  ;;  %v5355_v40 = vor.u32 %v5773_v61, %v5354_v52  ;;  %v4786_v54 = vld [vmem:[#allocation2 + $0x398] sm:$0xf]  ;;  %835 = vst [vmem:[#allocation2 + $0x428] sm:$0xff] %v771_v59  ;;  %v1163_v23 = vsel %vm1031_vm1, %v1039_v4, %v6955_v12  ;;  %v7085_v52 = vpop.permute.xlu2 %561  ;;  %v616_v61 = vrot.slane %v7045_v34, 4 }
 0x129   : > { %v5677_v27 = vld [vmem:[#allocation2 + $0x54c] sm:$0xf0]  ;;  %v5630_v43 = vld [vmem:[#allocation2 + $0x3d4] sm:$0xf0]  ;;  %v5164_v32 = vld [vmem:[#allocation2 + $0x6d0] sm:$0xf0]  ;;  %5469 = vmatmul.msk.bf16.gmra.mxu2 %vm3101_vm3, %v6717_v50  ;;  %v5231_v3 = vor.u32 %v5733_v35, %v5228_v62  ;;  %v4527_v8 = vor.u32 %v5557_v15, %v4524_v51  ;;  %v787_v35 = vsel %vm638_vm2, %v680_v38, %v7007_v10  ;;  %v696_v62 = vsel %vm400_vm0, %v633_v39, %v634_v36 }
 0x12a   : > { %3359 = vmatpush.bf16.msrb.mxu0 %v5035_v55  ;;  %v4971_v48 = vor.u32 %v5677_v27, %v4970_v29  ;;  %894 = vst [vmem:[#allocation2 + $0x720] sm:$0xff] %v649_v20  ;;  %3254 = vmatmul.bf16.gmra.mxu3 %v6822_v44  ;;  %v4906_v31 = vld [vmem:[#allocation2 + $0x490] sm:$0xf]  ;;  %v5100_v37 = vld [vmem:[#allocation2 + $0x650] sm:$0xf0]  ;;  %v4787_v9 = vor.u32 %v5630_v43, %v4786_v54  ;;  %v1000_v54 = vrot.slane %v7038_v1, 4 }
 0x12b   : > { %3395 = vmatpush.bf16.msrb.mxu3 %v4655_v19  ;;  %3343 = vmatpush.bf16.msrb.mxu2 %v4331_v5  ;;  %v5717_v5 = vld [vmem:[#allocation2 + $0x694] sm:$0xf]  ;;  %v5661_v56 = vld [vmem:[#allocation2 + $0x4cc] sm:$0xf0]  ;;  %1131 = vst [vmem:[#allocation2 + $0x220] sm:$0xff] %v1040_v7  ;;  %v1090_v27 = vsel %vm1031_vm1, %v6964_v33, %v1089_v63  ;;  %v1188_v51 = vsel %vm1031_vm1, %v1089_v63, %v6982_v11 }
 0x12c   : > { %3380 = vmatpush.bf16.msrb.mxu1 %v5419_v42  ;;  %v5701_v19 = vld [vmem:[#allocation2 + $0x614] sm:$0xf]  ;;  %v7079_v42 = vpop.permute.xlu1 %597  ;;  %1227 = vst [vmem:[#allocation2 + $0x520] sm:$0xff] %v1163_v23  ;;  %v5167_v20 = vor.u32 %v5717_v5, %v5164_v32  ;;  %v4722_v58 = vld [vmem:[#allocation2 + $0x318] sm:$0xf]  ;;  %v7083_v55 = vpop.permute.xlu0 %579  ;;  %v4907_v41 = vor.u32 %v5661_v56, %v4906_v31  ;;  %v697_v23 = vsel %vm638_vm2, %v6884_v14, %v696_v62  ;;  %v1018_v14 = vrot.slane %v7042_v57, 4 }
 0x12d   : > { %v4460_v49 = vld [vmem:[#allocation2 + $0x150] sm:$0xf0]  ;;  %v5614_v4 = vld [vmem:[#allocation2 + $0x354] sm:$0xf0]  ;;  %1282 = vst [vmem:[#allocation2 + $0x818] sm:$0xff] %v1040_v7  ;;  %3306 = vmatmul.bf16.vlgmr.msra.gmra.mxu1 %v6741_v46  ;;  %v5103_v33 = vor.u32 %v5701_v19, %v5100_v37  ;;  %v664_v5 = vsel %vm400_vm0, %v615_v18, %v616_v61 }
 0x12e   : > { %3360 = vmatpush.bf16.msrb.mxu0 %v4971_v48  ;;  %v4396_v59 = vld [vmem:[#allocation2 + $0xd0] sm:$0xf0]  ;;  %755 = vst [vmem:[#allocation2 + $0x1a8] sm:$0xff] %v681_v25  ;;  %v4842_v7 = vld [vmem:[#allocation2 + $0x410] sm:$0xf]  ;;  %v4723_v38 = vor.u32 %v5614_v4, %v4722_v58  ;;  %v665_v18 = vsel %vm638_vm2, %v6916_v53, %v664_v5  ;;  %v779_v58 = vsel %vm638_vm2, %v664_v5, %v7045_v34 }
 0x12f   : > { %3412 = vmatpush.bf16.msra.mxu2 %v5295_v0  ;;  %3396 = vmatpush.bf16.msrb.mxu3 %v4591_v60  ;;  %v5525_v0 = vld [vmem:[#allocation2 + $0x94] sm:$0xf]  ;;  %v5645_v60 = vld [vmem:[#allocation2 + $0x44c] sm:$0xf0]  ;;  %851 = vst [vmem:[#allocation2 + $0x4a8] sm:$0xff] %v787_v35 }
 0x130   : > { %3381 = vmatpush.bf16.msrb.mxu1 %v5355_v40  ;;  %v5541_v29 = vld [vmem:[#allocation2 + $0x114] sm:$0xf]  ;;  %910 = vst [vmem:[#allocation2 + $0x7a0] sm:$0xff] %v681_v25  ;;  %v4399_v40 = vor.u32 %v5525_v0, %v4396_v59  ;;  %v4843_v32 = vor.u32 %v5645_v60, %v4842_v7  ;;  %v4658_v31 = vld [vmem:[#allocation2 + $0x298] sm:$0xf]  ;;  %v1073_v60 = vsel %vm400_vm0, %v1017_v26, %v1018_v14 }
 0x131   : > { %v4463_v15 = vor.u32 %v5541_v29, %v4460_v49  ;;  %v5509_v43 = vld [vmem:[#allocation2 + $0x14] sm:$0xf]  ;;  %1156 = vst [vmem:[#allocation2 + $0x2e8] sm:$0xff] %v1090_v27  ;;  %v5598_v56 = vld [vmem:[#allocation2 + $0x2d4] sm:$0xf0]  ;;  %v1041_v49 = vsel %vm400_vm0, %v999_v21, %v1000_v54  ;;  %3287 = vmatmul.bf16.vlgmr.msra.gmra.mxu0 %v6773_v16 }
 0x132   : > { %3361 = vmatpush.bf16.msrb.mxu0 %v4907_v41  ;;  %v4332_v39 = vld [vmem:[#allocation2 + $0x50] sm:$0xf0]  ;;  %1252 = vst [vmem:[#allocation2 + $0x5e8] sm:$0xff] %v1188_v51  ;;  %v5758_v35 = vld [vmem:[#allocation2 + $0x7d4] sm:$0xf0]  ;;  %v4659_v53 = vor.u32 %v5598_v56, %v4658_v31 }
 0x133   : > { %3413 = vmatpush.bf16.msra.mxu2 %v5231_v3  ;;  %3397 = vmatpush.bf16.msrb.mxu3 %v4527_v8  ;;  %v5781_v48 = vld [vmem:[#allocation2 + $0x894] sm:$0xf]  ;;  %v795_v8 = vsel %vm638_vm2, %v696_v62, %v7003_v13  ;;  %1307 = vst [vmem:[#allocation2 + $0x8e0] sm:$0xff] %v1090_v27  ;;  %v4335_v63 = vor.u32 %v5509_v43, %v4332_v39  ;;  %v7123_v27 = vpop.permute.xlu2 %936  ;;  %v4594_v51 = vld [vmem:[#allocation2 + $0x218] sm:$0xf] }
 0x134   : > { %3450 = vmatpush.bf16.msra.mxu1 %v4787_v9  ;;  %v5420_v3 = vld [vmem:[#allocation2 + $0x8d0] sm:$0xf0]  ;;  %v7109_v37 = vpop.permute.xlu1 %543  ;;  %763 = vst [vmem:[#allocation2 + $0x1e8] sm:$0xff] %v697_v23  ;;  %v5298_v9 = vld [vmem:[#allocation2 + $0x798] sm:$0xf]  ;;  %v1042_v62 = vsel %vm1031_vm1, %v6955_v12, %v1041_v49  ;;  %v1074_v39 = vsel %vm1031_vm1, %v6830_v47, %v1073_v60 }
 0x135   : > { %v5685_v25 = vld [vmem:[#allocation2 + $0x594] sm:$0xf]  ;;  %859 = vst [vmem:[#allocation2 + $0x4e8] sm:$0xff] %v795_v8  ;;  %v5423_v0 = vor.u32 %v5781_v48, %v5420_v3  ;;  %v5582_v7 = vld [vmem:[#allocation2 + $0x254] sm:$0xf0]  ;;  %v617_v8 = vrot.slane %v7085_v52, 4 }
 0x136   : > { %v5036_v19 = vld [vmem:[#allocation2 + $0x5d0] sm:$0xf0]  ;;  %3362 = vmatpush.bf16.msrb.mxu0 %v4843_v32  ;;  %918 = vst [vmem:[#allocation2 + $0x7e0] sm:$0xff] %v697_v23  ;;  %v5742_v12 = vld [vmem:[#allocation2 + $0x754] sm:$0xf0]  ;;  %v4595_v5 = vor.u32 %v5582_v7, %v4594_v51  ;;  %v1180_v32 = vsel %vm1031_vm1, %v1073_v60, %v7042_v57 }
 0x137   : > { %3414 = vmatpush.bf16.msra.mxu2 %v5167_v20  ;;  %3398 = vmatpush.bf16.msrb.mxu3 %v4463_v15  ;;  %v7118_v20 = vpop.permute.xlu0 %952  ;;  %v5669_v4 = vld [vmem:[#allocation2 + $0x514] sm:$0xf]  ;;  %v5039_v59 = vor.u32 %v5685_v25, %v5036_v19  ;;  %747 = vst [vmem:[#allocation2 + $0x168] sm:$0xff] %v665_v18  ;;  %v5299_v15 = vor.u32 %v5758_v35, %v5298_v9  ;;  %v5566_v31 = vld [vmem:[#allocation2 + $0x1d4] sm:$0xf0] }
 0x138   : > { %3451 = vmatpush.bf16.msra.mxu1 %v4723_v38  ;;  %v4972_v41 = vld [vmem:[#allocation2 + $0x550] sm:$0xf0]  ;;  %843 = vst [vmem:[#allocation2 + $0x468] sm:$0xff] %v779_v58  ;;  %v1164_v38 = vsel %vm1031_vm1, %v1041_v49, %v7038_v1  ;;  %v5170_v25 = vld [vmem:[#allocation2 + $0x698] sm:$0xf] }
 0x139   : > { %v5765_v29 = vld [vmem:[#allocation2 + $0x814] sm:$0xf]  ;;  %902 = vst [vmem:[#allocation2 + $0x760] sm:$0xff] %v665_v18  ;;  %3344 = vmatmul.bf16.vlgmr.msrb.gmra.mxu2 %v6773_v16  ;;  %v4975_v26 = vor.u32 %v5669_v4, %v4972_v41  ;;  %v5726_v19 = vld [vmem:[#allocation2 + $0x6d4] sm:$0xf0] }
 0x13a   : > { %v5356_v21 = vld [vmem:[#allocation2 + $0x850] sm:$0xf0]  ;;  %3437 = vmatpush.bf16.msra.mxu0 %v5423_v0  ;;  %1132 = vst [vmem:[#allocation2 + $0x228] sm:$0xff] %v1042_v62  ;;  %5470 = vmatmul.msk.bf16.vlgmr.msra.gmra.mxu3 %vm3101_vm3, %v6634_v2  ;;  %v5426_v4 = vld [vmem:[#allocation2 + $0x898] sm:$0xf]  ;;  %v635_v0 = vrot.slane %v7079_v42, 4 }
 0x13b   : > { %3415 = vmatpush.bf16.msra.mxu2 %v5103_v33  ;;  %3399 = vmatpush.bf16.msrb.mxu3 %v4399_v40  ;;  %v626_v33 = vrot.slane %v7083_v55, 4  ;;  %v5234_v40 = vld [vmem:[#allocation2 + $0x718] sm:$0xf]  ;;  %v5359_v43 = vor.u32 %v5765_v29, %v5356_v21  ;;  %v5653_v23 = vld [vmem:[#allocation2 + $0x494] sm:$0xf]  ;;  %1228 = vst [vmem:[#allocation2 + $0x528] sm:$0xff] %v1164_v38  ;;  %v5171_v21 = vor.u32 %v5726_v19, %v5170_v25  ;;  %v7164_v7 = vpop.permute.xlu2 %599 }
 0x13c   : > { %3452 = vmatpush.bf16.msra.mxu1 %v4659_v53  ;;  %v4908_v48 = vld [vmem:[#allocation2 + $0x4d0] sm:$0xf0]  ;;  %v5235_v3 = vor.u32 %v5742_v12, %v5234_v40  ;;  %v7143_v56 = vpop.permute.xlu1 %990  ;;  %1283 = vst [vmem:[#allocation2 + $0x820] sm:$0xff] %v1042_v62  ;;  %v5790_v41 = vld [vmem:[#allocation2 + $0x8d4] sm:$0xf0]  ;;  %v1009_v29 = vrot.slane %v7118_v20, 4 }
 0x13d   : > { %v682_v47 = vsel %vm400_vm0, %v625_v24, %v626_v33  ;;  %1148 = vst [vmem:[#allocation2 + $0x2a8] sm:$0xff] %v1074_v39  ;;  %v4844_v49 = vld [vmem:[#allocation2 + $0x450] sm:$0xf0]  ;;  %v4911_v35 = vor.u32 %v5653_v23, %v4908_v48  ;;  %3311 = vmatmul.bf16.gmra.mxu1 %v6822_v44  ;;  %v4466_v62 = vld [vmem:[#allocation2 + $0x118] sm:$0xf]  ;;  %v5427_v38 = vor.u32 %v5790_v41, %v5426_v4  ;;  %v1001_v23 = vrot.slane %v7123_v27, 4 }
 0x13e   : > { %3438 = vmatpush.bf16.msra.mxu0 %v5359_v43  ;;  %1244 = vst [vmem:[#allocation2 + $0x5a8] sm:$0xff] %v1180_v32  ;;  %v788_v9 = vsel %vm638_vm2, %v682_v47, %v7083_v55  ;;  %v5637_v58 = vld [vmem:[#allocation2 + $0x414] sm:$0xf]  ;;  %v683_v53 = vsel %vm638_vm2, %v7007_v10, %v682_v47  ;;  %v5550_v60 = vld [vmem:[#allocation2 + $0x154] sm:$0xf0]  ;;  %v1057_v48 = vsel %vm400_vm0, %v1008_v22, %v1009_v29  ;;  %v608_v4 = vrot.slane %v7109_v37, 4 }
 0x13f   : > { %3416 = vmatpush.bf16.msra.mxu2 %v5039_v59  ;;  %3400 = vmatpush.bf16.msrb.mxu3 %v4335_v63  ;;  %v7150_v18 = vpop.permute.xlu0 %972  ;;  %v4530_v63 = vld [vmem:[#allocation2 + $0x198] sm:$0xf]  ;;  %1299 = vst [vmem:[#allocation2 + $0x8a0] sm:$0xff] %v1074_v39  ;;  %v666_v59 = vsel %vm400_vm0, %v616_v61, %v617_v8  ;;  %v4847_v10 = vor.u32 %v5637_v58, %v4844_v49 }
 0x140   : > { %3453 = vmatpush.bf16.msra.mxu1 %v4595_v5  ;;  %v4531_v24 = vor.u32 %v5566_v31, %v4530_v63  ;;  %756 = vst [vmem:[#allocation2 + $0x1b0] sm:$0xff] %v683_v53  ;;  %v5710_v51 = vld [vmem:[#allocation2 + $0x654] sm:$0xf0]  ;;  %v780_v40 = vsel %vm638_vm2, %v666_v59, %v7085_v52  ;;  %v667_v43 = vsel %vm638_vm2, %v7045_v34, %v666_v59 }
 0x141   : > { %852 = vst [vmem:[#allocation2 + $0x4b0] sm:$0xff] %v788_v9  ;;  %v4402_v12 = vld [vmem:[#allocation2 + $0x98] sm:$0xf]  ;;  %v4467_v39 = vor.u32 %v5550_v60, %v4466_v62  ;;  %v1058_v63 = vsel %vm1031_vm1, %v6886_v28, %v1057_v48  ;;  %v1043_v9 = vsel %vm400_vm0, %v1000_v54, %v1001_v23  ;;  %3292 = vmatmul.bf16.gmra.mxu0 %v6865_v17  ;;  %v1019_v28 = vrot.slane %v7150_v18, 4  ;;  %v5750_v62 = vld [vmem:[#allocation2 + $0x79c] sm:$0xf] }
 0x142   : > { %v5534_v61 = vld [vmem:[#allocation2 + $0xd4] sm:$0xf0]  ;;  %911 = vst [vmem:[#allocation2 + $0x7a8] sm:$0xff] %v683_v53  ;;  %v1044_v54 = vsel %vm1031_vm1, %v7038_v1, %v1043_v9  ;;  %v5300_v60 = vld [vmem:[#allocation2 + $0x7d8] sm:$0xf0]  ;;  %v650_v1 = vsel %vm400_vm0, %v607_v30, %v608_v4 }
 0x143   : > { %3469 = vmatpush.bf16.msra.mxu3 %v5299_v15  ;;  %3417 = vmatpush.bf16.msra.mxu2 %v4975_v26  ;;  %v5106_v15 = vld [vmem:[#allocation2 + $0x618] sm:$0xf]  ;;  %v698_v26 = vsel %vm400_vm0, %v634_v36, %v635_v0  ;;  %748 = vst [vmem:[#allocation2 + $0x170] sm:$0xff] %v667_v43  ;;  %v4403_v31 = vor.u32 %v5534_v61, %v4402_v12 }
 0x144   : > { %3454 = vmatpush.bf16.msra.mxu1 %v4531_v24  ;;  %v5362_v5 = vld [vmem:[#allocation2 + $0x818] sm:$0xf]  ;;  %v5107_v34 = vor.u32 %v5710_v51, %v5106_v15  ;;  %844 = vst [vmem:[#allocation2 + $0x470] sm:$0xff] %v780_v40  ;;  %v796_v36 = vsel %vm638_vm2, %v698_v26, %v7079_v42  ;;  %v699_v47 = vsel %vm638_vm2, %v7003_v13, %v698_v26  ;;  %v7208_v15 = vpop.permute.xlu2 %974  ;;  %v636_v51 = vrot.slane %v7164_v7, 4 }
 0x145   : > { %v5774_v32 = vld [vmem:[#allocation2 + $0x854] sm:$0xf0]  ;;  %903 = vst [vmem:[#allocation2 + $0x768] sm:$0xff] %v667_v43  ;;  %v1172_v13 = vsel %vm1031_vm1, %v1057_v48, %v7118_v20  ;;  %v772_v40 = vsel %vm638_vm2, %v650_v1, %v7109_v37  ;;  %v5303_v30 = vor.u32 %v5750_v62, %v5300_v60  ;;  %v651_v26 = vsel %vm638_vm2, %v6934_v45, %v650_v1 }
 0x146   : > { %v5363_v25 = vor.u32 %v5774_v32, %v5362_v5  ;;  %v4338_v22 = vld [vmem:[#allocation2 + $0x18] sm:$0xf]  ;;  %764 = vst [vmem:[#allocation2 + $0x1f0] sm:$0xff] %v699_v47  ;;  %v5236_v5 = vld [vmem:[#allocation2 + $0x758] sm:$0xf0]  ;;  %v700_v48 = vsel %vm400_vm0, %v635_v0, %v636_v51 }
 0x147   : > { %3470 = vmatpush.bf16.msra.mxu3 %v5235_v3  ;;  %3418 = vmatpush.bf16.msra.mxu2 %v4911_v35  ;;  %v7181_v3 = vpop.permute.xlu1 %581  ;;  %v7187_v19 = vpop.permute.xlu0 %954  ;;  %v5518_v49 = vld [vmem:[#allocation2 + $0x54] sm:$0xf0]  ;;  %860 = vst [vmem:[#allocation2 + $0x4f0] sm:$0xff] %v796_v36  ;;  %v5622_v36 = vld [vmem:[#allocation2 + $0x39c] sm:$0xf] }
 0x148   : > { %3455 = vmatpush.bf16.msra.mxu1 %v4467_v39  ;;  %v5042_v35 = vld [vmem:[#allocation2 + $0x598] sm:$0xf]  ;;  %919 = vst [vmem:[#allocation2 + $0x7e8] sm:$0xff] %v699_v47  ;;  %v4339_v41 = vor.u32 %v5518_v49, %v4338_v22  ;;  %v1028_v39 = vrot.slane %v7143_v56, 4  ;;  %v1010_v47 = vrot.slane %v7187_v19, 4 }
 0x149   : > { %v5694_v58 = vld [vmem:[#allocation2 + $0x5d4] sm:$0xf0]  ;;  %1140 = vst [vmem:[#allocation2 + $0x268] sm:$0xff] %v1058_v63  ;;  %3349 = vmatmul.bf16.gmra.mxu2 %v6865_v17  ;;  %v5718_v22 = vld [vmem:[#allocation2 + $0x69c] sm:$0xf] }
 0x14a   : > { %v5043_v24 = vor.u32 %v5694_v58, %v5042_v35  ;;  %v4978_v53 = vld [vmem:[#allocation2 + $0x518] sm:$0xf]  ;;  %1236 = vst [vmem:[#allocation2 + $0x568] sm:$0xff] %v1172_v13  ;;  %5471 = vmatmul.msk.bf16.gmra.mxu3 %vm3101_vm3, %v6717_v50  ;;  %v5172_v49 = vld [vmem:[#allocation2 + $0x6d8] sm:$0xf0]  ;;  %v1091_v0 = vsel %vm400_vm0, %v1027_v6, %v1028_v39  ;;  %v797_v58 = vsel %vm638_vm2, %v700_v48, %v7164_v7  ;;  %v1020_v13 = vrot.slane %v7208_v15, 4 }
 0x14b   : > { %3471 = vmatpush.bf16.msra.mxu3 %v5171_v21  ;;  %3419 = vmatpush.bf16.msra.mxu2 %v4847_v10  ;;  %v5678_v59 = vld [vmem:[#allocation2 + $0x554] sm:$0xf0]  ;;  %v1165_v21 = vsel %vm1031_vm1, %v1043_v9, %v7123_v27  ;;  %1291 = vst [vmem:[#allocation2 + $0x860] sm:$0xff] %v1058_v63  ;;  %v701_v63 = vsel %vm638_vm2, %v7079_v42, %v700_v48  ;;  %v5766_v48 = vld [vmem:[#allocation2 + $0x81c] sm:$0xf] }
 0x14c   : > { %3456 = vmatpush.bf16.msra.mxu1 %v4403_v31  ;;  %1133 = vst [vmem:[#allocation2 + $0x230] sm:$0xff] %v1044_v54  ;;  %v4979_v12 = vor.u32 %v5678_v59, %v4978_v53  ;;  %v5662_v61 = vld [vmem:[#allocation2 + $0x4d4] sm:$0xf0]  ;;  %v4788_v31 = vld [vmem:[#allocation2 + $0x3d8] sm:$0xf0]  ;;  %v5175_v53 = vor.u32 %v5718_v22, %v5172_v49  ;;  %v1092_v62 = vsel %vm1031_vm1, %v6982_v11, %v1091_v0 }
 0x14d   : > { %1229 = vst [vmem:[#allocation2 + $0x530] sm:$0xff] %v1165_v21  ;;  %5472 = vmatmul.msk.bf16.vlgmr.msrb.gmra.mxu1 %vm3101_vm3, %v6634_v2  ;;  %v4850_v9 = vld [vmem:[#allocation2 + $0x418] sm:$0xf]  ;;  %v5702_v59 = vld [vmem:[#allocation2 + $0x61c] sm:$0xf]  ;;  %v7254_v6 = vpop.permute.xlu2 %872  ;;  %v1059_v60 = vsel %vm400_vm0, %v1009_v29, %v1010_v47  ;;  %v1077_v11 = vsel %vm400_vm0, %v1019_v28, %v1020_v13  ;;  %v627_v29 = vrot.slane %v7181_v3, 4 }
 0x14e   : > { %1284 = vst [vmem:[#allocation2 + $0x828] sm:$0xff] %v1044_v54  ;;  %v5646_v35 = vld [vmem:[#allocation2 + $0x454] sm:$0xf0]  ;;  %v5606_v54 = vld [vmem:[#allocation2 + $0x31c] sm:$0xf]  ;;  %v1078_v49 = vsel %vm1031_vm1, %v7150_v18, %v1077_v11 }
 0x14f   : > { %3494 = vmatpush.bf16.msrb.mxu2 %v5427_v38  ;;  %3472 = vmatpush.bf16.msra.mxu3 %v5107_v34  ;;  %v7216_v10 = vpop.permute.xlu1 %563  ;;  %v1075_v38 = vsel %vm400_vm0, %v1018_v14, %v1019_v28  ;;  %v7225_v43 = vpop.permute.xlu0 %545  ;;  %v5734_v14 = vld [vmem:[#allocation2 + $0x71c] sm:$0xf]  ;;  %740 = vst [vmem:[#allocation2 + $0x130] sm:$0xff] %v651_v26  ;;  %v4914_v34 = vld [vmem:[#allocation2 + $0x498] sm:$0xf]  ;;  %v4851_v1 = vor.u32 %v5646_v35, %v4850_v9 }
 0x150   : > { %3457 = vmatpush.bf16.msra.mxu1 %v4339_v41  ;;  %v1076_v32 = vsel %vm1031_vm1, %v7042_v57, %v1075_v38  ;;  %836 = vst [vmem:[#allocation2 + $0x430] sm:$0xff] %v772_v40  ;;  %v1181_v45 = vsel %vm1031_vm1, %v1075_v38, %v7150_v18  ;;  %v5239_v57 = vor.u32 %v5734_v14, %v5236_v5  ;;  %v5108_v21 = vld [vmem:[#allocation2 + $0x658] sm:$0xf0]  ;;  %v4794_v38 = vld [vmem:[#allocation2 + $0x3a0] sm:$0xf] }
 0x151   : > { %895 = vst [vmem:[#allocation2 + $0x728] sm:$0xff] %v651_v26  ;;  %v4791_v41 = vor.u32 %v5622_v36, %v4788_v31  ;;  %v5631_v40 = vld [vmem:[#allocation2 + $0x3dc] sm:$0xf0]  ;;  %3363 = vmatmul.bf16.vlgmr.msrb.gmra.mxu0 %v6741_v46  ;;  %v5428_v26 = vld [vmem:[#allocation2 + $0x8d8] sm:$0xf0]  ;;  %v1060_v5 = vsel %vm1031_vm1, %v7118_v20, %v1059_v60  ;;  %v1173_v36 = vsel %vm1031_vm1, %v1059_v60, %v7187_v19  ;;  %v618_v60 = vrot.slane %v7216_v10, 4 }
 0x152   : > { %1149 = vst [vmem:[#allocation2 + $0x2b0] sm:$0xff] %v1076_v32  ;;  %v5615_v28 = vld [vmem:[#allocation2 + $0x35c] sm:$0xf0]  ;;  %v5590_v20 = vld [vmem:[#allocation2 + $0x29c] sm:$0xf] }
 0x153   : > { %3495 = vmatpush.bf16.msrb.mxu2 %v5363_v25  ;;  %3473 = vmatpush.bf16.msra.mxu3 %v5043_v24  ;;  %v4915_v25 = vor.u32 %v5662_v61, %v4914_v34  ;;  %1245 = vst [vmem:[#allocation2 + $0x5b0] sm:$0xff] %v1181_v45  ;;  %v4724_v24 = vld [vmem:[#allocation2 + $0x358] sm:$0xf0]  ;;  %v1189_v61 = vsel %vm1031_vm1, %v1091_v0, %v7143_v56 }
 0x154   : > { %3526 = vmatpush.bf16.msrb.mxu1 %v5303_v30  ;;  %1300 = vst [vmem:[#allocation2 + $0x8a8] sm:$0xff] %v1076_v32  ;;  %v5782_v30 = vld [vmem:[#allocation2 + $0x89c] sm:$0xf]  ;;  %3507 = vmatpush.bf16.msrb.mxu0 %v4791_v41  ;;  %v4727_v14 = vor.u32 %v5606_v54, %v4724_v24  ;;  %v5111_v32 = vor.u32 %v5702_v59, %v5108_v21  ;;  %v877_v24 = vrot.slane %v7254_v6, 4 }
 0x155   : > { %765 = vst [vmem:[#allocation2 + $0x1f8] sm:$0xff] %v701_v63  ;;  %v5364_v34 = vld [vmem:[#allocation2 + $0x858] sm:$0xf0]  ;;  %v4795_v45 = vor.u32 %v5631_v40, %v4794_v38  ;;  %v5431_v31 = vor.u32 %v5782_v30, %v5428_v26  ;;  %v4666_v30 = vld [vmem:[#allocation2 + $0x2a0] sm:$0xf] }
 0x156   : > { %861 = vst [vmem:[#allocation2 + $0x4f8] sm:$0xff] %v797_v58  ;;  %v4660_v22 = vld [vmem:[#allocation2 + $0x2d8] sm:$0xf0]  ;;  %v1182_v58 = vsel %vm1031_vm1, %v1077_v11, %v7208_v15  ;;  %v5367_v54 = vor.u32 %v5766_v48, %v5364_v34  ;;  %v5599_v26 = vld [vmem:[#allocation2 + $0x2dc] sm:$0xf0]  ;;  %v884_v11 = vsel %vm400_vm0, %v636_v51, %v877_v24  ;;  %v668_v48 = vsel %vm400_vm0, %v617_v8, %v618_v60 }
 0x157   : > { %3474 = vmatpush.bf16.msra.mxu3 %v4979_v12  ;;  %v7252_v42 = vpop.permute.xlu1 %870  ;;  %v7263_v12 = vpop.permute.xlu0 %992  ;;  %920 = vst [vmem:[#allocation2 + $0x7f0] sm:$0xff] %v701_v63  ;;  %v684_v63 = vsel %vm400_vm0, %v626_v33, %v627_v29  ;;  %v5686_v0 = vld [vmem:[#allocation2 + $0x59c] sm:$0xf]  ;;  %v4663_v33 = vor.u32 %v5590_v20, %v4660_v22  ;;  %v4602_v51 = vld [vmem:[#allocation2 + $0x220] sm:$0xf]  ;;  %v669_v8 = vsel %vm638_vm2, %v7085_v52, %v668_v48 }
 0x158   : > { %3527 = vmatpush.bf16.msrb.mxu1 %v5239_v57  ;;  %1157 = vst [vmem:[#allocation2 + $0x2f0] sm:$0xff] %v1092_v62  ;;  %v609_v57 = vrot.slane %v7225_v43, 4  ;;  %3508 = vmatpush.bf16.msrb.mxu0 %v4727_v14  ;;  %v5044_v9 = vld [vmem:[#allocation2 + $0x5d8] sm:$0xf0]  ;;  %v685_v21 = vsel %vm638_vm2, %v7083_v55, %v684_v63  ;;  %v867_v40 = vpop.permute.xlu2 %866  ;;  %v789_v55 = vsel %vm638_vm2, %v684_v63, %v7181_v3  ;;  %v1029_v14 = vrot.slane %v7263_v12, 4 }
 0x159   : > { %1253 = vst [vmem:[#allocation2 + $0x5f0] sm:$0xff] %v1189_v61  ;;  %3420 = vmatmul.bf16.vlgmr.msra.gmra.mxu2 %v6741_v46  ;;  %v4596_v59 = vld [vmem:[#allocation2 + $0x258] sm:$0xf0]  ;;  %v781_v24 = vsel %vm638_vm2, %v668_v48, %v7216_v10 }
 0x15a   : > { %1308 = vst [vmem:[#allocation2 + $0x8e8] sm:$0xff] %v1092_v62  ;;  %3401 = vmatmul.bf16.vlgmr.msrb.gmra.mxu3 %v6773_v16  ;;  %3564 = vmatpush.bf16.msra.mxu2 %v4795_v45  ;;  %v7292_v41 = vpop.f32.mrf.mxu2  ;;  %v652_v62 = vsel %vm400_vm0, %v608_v4, %v609_v57  ;;  %v5670_v6 = vld [vmem:[#allocation2 + $0x51c] sm:$0xf]  ;;  %v4667_v45 = vor.u32 %v5599_v26, %v4666_v30 }
 0x15b   : > { %3475 = vmatpush.bf16.msra.mxu3 %v4915_v25  ;;  %v4730_v25 = vld [vmem:[#allocation2 + $0x320] sm:$0xf]  ;;  %1141 = vst [vmem:[#allocation2 + $0x270] sm:$0xff] %v1060_v5  ;;  %v4980_v38 = vld [vmem:[#allocation2 + $0x558] sm:$0xf0]  ;;  %v653_v4 = vsel %vm638_vm2, %v7109_v37, %v652_v62  ;;  %v1093_v63 = vsel %vm400_vm0, %v1028_v39, %v1029_v14 }
 0x15c   : > { %3528 = vmatpush.bf16.msrb.mxu1 %v5175_v53  ;;  %1237 = vst [vmem:[#allocation2 + $0x570] sm:$0xff] %v1173_v36  ;;  %v4731_v18 = vor.u32 %v5615_v28, %v4730_v25  ;;  %v5574_v53 = vld [vmem:[#allocation2 + $0x21c] sm:$0xf]  ;;  %3509 = vmatpush.bf16.msrb.mxu0 %v4663_v33  ;;  %v4983_v34 = vor.u32 %v5670_v6, %v4980_v38  ;;  %v874_v28 = vrot.slane %v867_v40, 4  ;;  %v4538_v39 = vld [vmem:[#allocation2 + $0x1a0] sm:$0xf] }
 0x15d   : > { %1292 = vst [vmem:[#allocation2 + $0x868] sm:$0xff] %v1060_v5  ;;  %5473 = vmatmul.msk.bf16.gmra.mxu1 %vm3101_vm3, %v6717_v50  ;;  %v4599_v5 = vor.u32 %v5574_v53, %v4596_v59  ;;  %v4532_v37 = vld [vmem:[#allocation2 + $0x1d8] sm:$0xf0]  ;;  %v885_v25 = vsel %vm638_vm2, %v7164_v7, %v884_v11 }
 0x15e   : > { %1150 = vst [vmem:[#allocation2 + $0x2b8] sm:$0xff] %v1078_v49  ;;  %3565 = vmatpush.bf16.msra.mxu2 %v4731_v18  ;;  %v4916_v36 = vld [vmem:[#allocation2 + $0x4d8] sm:$0xf0]  ;;  %v878_v6 = vsel %vm400_vm0, %v609_v57, %v874_v28 }
 0x15f   : > { %3476 = vmatpush.bf16.msra.mxu3 %v4851_v1  ;;  %v7288_v35 = vpop.permute.xlu1 %956  ;;  %v5047_v1 = vor.u32 %v5686_v0, %v5044_v9  ;;  %v7305_v61 = vpop.permute.xlu0 %938  ;;  %1246 = vst [vmem:[#allocation2 + $0x5b8] sm:$0xff] %v1182_v58  ;;  %v5558_v22 = vld [vmem:[#allocation2 + $0x19c] sm:$0xf]  ;;  %v876_v0 = vrot.slane %v7252_v42, 4  ;;  %v5434_v42 = vld [vmem:[#allocation2 + $0x8a0] sm:$0xf] }
 0x160   : > { %3529 = vmatpush.bf16.msrb.mxu1 %v5111_v32  ;;  %1301 = vst [vmem:[#allocation2 + $0x8b0] sm:$0xff] %v1078_v49  ;;  %v773_v32 = vsel %vm638_vm2, %v652_v62, %v7225_v43  ;;  %3510 = vmatpush.bf16.msrb.mxu0 %v4599_v5  ;;  %v5654_v49 = vld [vmem:[#allocation2 + $0x49c] sm:$0xf]  ;;  %v4535_v7 = vor.u32 %v5558_v22, %v4532_v37  ;;  %v1002_v52 = vrot.slane %v7305_v61, 4  ;;  %v5791_v62 = vld [vmem:[#allocation2 + $0x8dc] sm:$0xf0]  ;;  %v1262_v40 = vpop.permute.xlu2 %1261 }
 0x161   : > { %757 = vst [vmem:[#allocation2 + $0x1b8] sm:$0xff] %v685_v21  ;;  %v5542_v9 = vld [vmem:[#allocation2 + $0x11c] sm:$0xf]  ;;  %3368 = vmatmul.bf16.gmra.mxu0 %v6822_v44  ;;  %v4919_v33 = vor.u32 %v5654_v49, %v4916_v36  ;;  %v882_v11 = vsel %vm400_vm0, %v627_v29, %v876_v0  ;;  %v1266_v5 = vrot.slane %v1262_v40, 4  ;;  %v1011_v48 = vrot.slane %v7288_v35, 4 }
 0x162   : > { %853 = vst [vmem:[#allocation2 + $0x4b8] sm:$0xff] %v789_v55  ;;  %3566 = vmatpush.bf16.msra.mxu2 %v4667_v45  ;;  %v7324_v20 = vpop.f32.mrf.mxu2  ;;  %v4468_v58 = vld [vmem:[#allocation2 + $0x158] sm:$0xf0]  ;;  %v1045_v57 = vsel %vm400_vm0, %v1001_v23, %v1002_v52  ;;  %v5551_v45 = vld [vmem:[#allocation2 + $0x15c] sm:$0xf0]  ;;  %v879_v29 = vsel %vm638_vm2, %v7225_v43, %v878_v6  ;;  %v5435_v37 = vor.u32 %v5791_v62, %v5434_v42 }
 0x163   : > { %3551 = vmatpush.bf16.msrb.mxu3 %v5431_v31  ;;  %912 = vst [vmem:[#allocation2 + $0x7b0] sm:$0xff] %v685_v21  ;;  %v5583_v31 = vld [vmem:[#allocation2 + $0x25c] sm:$0xf0]  ;;  %v5638_v18 = vld [vmem:[#allocation2 + $0x41c] sm:$0xf]  ;;  %v4471_v38 = vor.u32 %v5542_v9, %v4468_v58  ;;  %v1046_v43 = vsel %vm1031_vm1, %v7123_v27, %v1045_v57  ;;  %v1061_v9 = vsel %vm400_vm0, %v1010_v47, %v1011_v48 }
 0x164   : > { %3530 = vmatpush.bf16.msrb.mxu1 %v5047_v1  ;;  %741 = vst [vmem:[#allocation2 + $0x138] sm:$0xff] %v653_v4  ;;  %v4603_v53 = vor.u32 %v5583_v31, %v4602_v51  ;;  %v4852_v59 = vld [vmem:[#allocation2 + $0x458] sm:$0xf0]  ;;  %v5567_v21 = vld [vmem:[#allocation2 + $0x1dc] sm:$0xf0]  ;;  %3511 = vmatpush.bf16.msrb.mxu0 %v4535_v7  ;;  %v1094_v1 = vsel %vm1031_vm1, %v7143_v56, %v1093_v63 }
 0x165   : > { %837 = vst [vmem:[#allocation2 + $0x438] sm:$0xff] %v773_v32  ;;  %v5526_v30 = vld [vmem:[#allocation2 + $0x9c] sm:$0xf]  ;;  %v4855_v56 = vor.u32 %v5638_v18, %v4852_v59  ;;  %v4539_v32 = vor.u32 %v5567_v21, %v4538_v39  ;;  %v5370_v31 = vld [vmem:[#allocation2 + $0x820] sm:$0xf]  ;;  %v1062_v47 = vsel %vm1031_vm1, %v7187_v19, %v1061_v9 }
 0x166   : > { %896 = vst [vmem:[#allocation2 + $0x730] sm:$0xff] %v653_v4  ;;  %3567 = vmatpush.bf16.msra.mxu2 %v4603_v53  ;;  %v4404_v26 = vld [vmem:[#allocation2 + $0xd8] sm:$0xf0]  ;;  %v1190_v4 = vsel %vm1031_vm1, %v1093_v63, %v7263_v12  ;;  %v5775_v23 = vld [vmem:[#allocation2 + $0x85c] sm:$0xf0] }
 0x167   : > { %3552 = vmatpush.bf16.msrb.mxu3 %v5367_v54  ;;  %v7334_v54 = vpop.permute.xlu1 %1259  ;;  %921 = vst [vmem:[#allocation2 + $0x7f8] sm:$0xff] %v885_v25  ;;  %v869_v55 = vpop.permute.xlu0 %868  ;;  %v4407_v51 = vor.u32 %v5526_v30, %v4404_v26  ;;  %v883_v25 = vsel %vm638_vm2, %v7181_v3, %v882_v11  ;;  %v5510_v22 = vld [vmem:[#allocation2 + $0x1c] sm:$0xf]  ;;  %v4410_v0 = vld [vmem:[#allocation2 + $0xa0] sm:$0xf]  ;;  %v1166_v3 = vsel %vm1031_vm1, %v1045_v57, %v7305_v61 }
 0x168   : > { %3531 = vmatpush.bf16.msrb.mxu1 %v4983_v34  ;;  %749 = vst [vmem:[#allocation2 + $0x178] sm:$0xff] %v669_v8  ;;  %v4474_v34 = vld [vmem:[#allocation2 + $0x120] sm:$0xf]  ;;  %3512 = vmatpush.bf16.msrb.mxu0 %v4471_v38  ;;  %v7360_v36 = vpop.f32.mrf.mxu1  ;;  %v4340_v49 = vld [vmem:[#allocation2 + $0x58] sm:$0xf0]  ;;  %v875_v63 = vrot.slane %v869_v55, 4 }
 0x169   : > { %845 = vst [vmem:[#allocation2 + $0x478] sm:$0xff] %v781_v24  ;;  %3425 = vmatmul.bf16.gmra.mxu2 %v6822_v44  ;;  %v5535_v7 = vld [vmem:[#allocation2 + $0xdc] sm:$0xf0]  ;;  %v4475_v27 = vor.u32 %v5551_v45, %v4474_v34  ;;  %v1265_v58 = vrot.slane %v7334_v54, 4  ;;  %v4343_v18 = vor.u32 %v5510_v22, %v4340_v49  ;;  %v4796_v26 = vld [vmem:[#allocation2 + $0x3e0] sm:$0xf0] }
 0x16a   : > { %904 = vst [vmem:[#allocation2 + $0x770] sm:$0xff] %v669_v8  ;;  %3406 = vmatmul.bf16.gmra.mxu3 %v6865_v17  ;;  %3568 = vmatpush.bf16.msra.mxu2 %v4539_v32  ;;  %v7364_v28 = vpop.f32.mrf.mxu2  ;;  %v1273_v8 = vsel %vm400_vm0, %v1029_v14, %v1266_v5  ;;  %v5371_v14 = vor.u32 %v5775_v23, %v5370_v31  ;;  %v4346_v42 = vld [vmem:[#allocation2 + $0x20] sm:$0xf]  ;;  %v5607_v32 = vld [vmem:[#allocation2 + $0x324] sm:$0xf] }
 0x16b   : > { %1158 = vst [vmem:[#allocation2 + $0x2f8] sm:$0xff] %v1094_v1  ;;  %v4411_v59 = vor.u32 %v5535_v7, %v4410_v0  ;;  %v880_v54 = vsel %vm400_vm0, %v618_v60, %v875_v63  ;;  %v5519_v62 = vld [vmem:[#allocation2 + $0x5c] sm:$0xf0]  ;;  %v4732_v34 = vld [vmem:[#allocation2 + $0x360] sm:$0xf0] }
 0x16c   : > { %3532 = vmatpush.bf16.msrb.mxu1 %v4919_v33  ;;  %1254 = vst [vmem:[#allocation2 + $0x5f8] sm:$0xff] %v1190_v4  ;;  %3513 = vmatpush.bf16.msrb.mxu0 %v4407_v51  ;;  %v1274_v33 = vsel %vm1031_vm1, %v7263_v12, %v1273_v8  ;;  %v1271_v12 = vsel %vm400_vm0, %v1020_v13, %v1265_v58  ;;  %v5306_v38 = vld [vmem:[#allocation2 + $0x7a0] sm:$0xf]  ;;  %v5623_v13 = vld [vmem:[#allocation2 + $0x3a4] sm:$0xf] }
 0x16d   : > { %1309 = vst [vmem:[#allocation2 + $0x8f0] sm:$0xff] %v1094_v1  ;;  %3458 = vmatmul.bf16.vlgmr.msra.gmra.mxu1 %v6773_v16  ;;  %v1174_v1 = vsel %vm1031_vm1, %v1061_v9, %v7288_v35  ;;  %v5759_v40 = vld [vmem:[#allocation2 + $0x7dc] sm:$0xf0]  ;;  %v881_v55 = vsel %vm638_vm2, %v7216_v10, %v880_v54  ;;  %v4347_v4 = vor.u32 %v5519_v62, %v4346_v42  ;;  %v5735_v49 = vld [vmem:[#allocation2 + $0x724] sm:$0xf] }
 0x16e   : > { %897 = vst [vmem:[#allocation2 + $0x738] sm:$0xff] %v879_v29  ;;  %3569 = vmatpush.bf16.msra.mxu2 %v4475_v27  ;;  %v7392_v6 = vpop.f32.mrf.mxu0  ;;  %v5242_v5 = vld [vmem:[#allocation2 + $0x720] sm:$0xf]  ;;  %v4799_v45 = vor.u32 %v5623_v13, %v4796_v26  ;;  %v5308_v29 = vld [vmem:[#allocation2 + $0x7e0] sm:$0xf0]  ;;  %v7434_v13 = vpop.permute.xlu2 %1613 }
 0x16f   : > { %913 = vst [vmem:[#allocation2 + $0x7b8] sm:$0xff] %v883_v25  ;;  %v1258_v24 = vpop.permute.xlu1 %1257  ;;  %v1256_v53 = vpop.permute.xlu0 %1255  ;;  %v5743_v57 = vld [vmem:[#allocation2 + $0x75c] sm:$0xf0]  ;;  %v5180_v9 = vld [vmem:[#allocation2 + $0x6e0] sm:$0xf0] }
 0x170   : > { %3533 = vmatpush.bf16.msrb.mxu1 %v4855_v56  ;;  %1134 = vst [vmem:[#allocation2 + $0x238] sm:$0xff] %v1046_v43  ;;  %v1264_v39 = vrot.slane %v1258_v24, 4  ;;  %v1263_v21 = vrot.slane %v1256_v53, 4  ;;  %3514 = vmatpush.bf16.msrb.mxu0 %v4343_v18  ;;  %v7397_v60 = vpop.f32.mrf.mxu1  ;;  %v5307_v56 = vor.u32 %v5759_v40, %v5306_v38  ;;  %v5727_v51 = vld [vmem:[#allocation2 + $0x6dc] sm:$0xf0] }
 0x171   : > { %1230 = vst [vmem:[#allocation2 + $0x538] sm:$0xff] %v1166_v3  ;;  %5474 = vmatmul.msk.bf16.vlgmr.msra.gmra.mxu0 %vm3101_vm3, %v6634_v2  ;;  %v5114_v0 = vld [vmem:[#allocation2 + $0x620] sm:$0xf]  ;;  %v5719_v3 = vld [vmem:[#allocation2 + $0x6a4] sm:$0xf] }
 0x172   : > { %1285 = vst [vmem:[#allocation2 + $0x830] sm:$0xff] %v1046_v43  ;;  %v1267_v19 = vsel %vm400_vm0, %v1002_v52, %v1263_v21  ;;  %v7401_v30 = vpop.f32.mrf.mxu2  ;;  %3570 = vmatpush.bf16.msra.mxu2 %v4411_v59  ;;  %v1269_v11 = vsel %vm400_vm0, %v1011_v48, %v1264_v39  ;;  %v1272_v52 = vsel %vm1031_vm1, %v7208_v15, %v1271_v12  ;;  %v5751_v48 = vld [vmem:[#allocation2 + $0x7a4] sm:$0xf]  ;;  %v5711_v7 = vld [vmem:[#allocation2 + $0x65c] sm:$0xf0] }
 0x173   : > { %1310 = vst [vmem:[#allocation2 + $0x8f8] sm:$0xff] %v1274_v33  ;;  %v1268_v10 = vsel %vm1031_vm1, %v7305_v61, %v1267_v19  ;;  %v1270_v15 = vsel %vm1031_vm1, %v7288_v35, %v1269_v11  ;;  %v5243_v61 = vor.u32 %v5743_v57, %v5242_v5  ;;  %v5311_v23 = vor.u32 %v5751_v48, %v5308_v29  ;;  %v5244_v43 = vld [vmem:[#allocation2 + $0x760] sm:$0xf0]  ;;  %v5050_v42 = vld [vmem:[#allocation2 + $0x5a0] sm:$0xf] }
 0x174   : > { %3608 = vmatpush.bf16.msra.mxu1 %v5435_v37  ;;  %1142 = vst [vmem:[#allocation2 + $0x278] sm:$0xff] %v1062_v47  ;;  %3583 = vmatpush.bf16.msra.mxu0 %v5307_v56  ;;  %v5178_v37 = vld [vmem:[#allocation2 + $0x6a0] sm:$0xf]  ;;  %v7414_v31 = vpop.f32.mrf.mxu3  ;;  %v4735_v35 = vor.u32 %v5607_v32, %v4732_v34  ;;  %v5591_v27 = vld [vmem:[#allocation2 + $0x2a4] sm:$0xf]  ;;  %v5115_v18 = vor.u32 %v5711_v7, %v5114_v0 }
 0x175   : > { %1238 = vst [vmem:[#allocation2 + $0x578] sm:$0xff] %v1174_v1  ;;  %v5179_v22 = vor.u32 %v5727_v51, %v5178_v37  ;;  %v4668_v58 = vld [vmem:[#allocation2 + $0x2e0] sm:$0xf0]  ;;  %v5183_v24 = vor.u32 %v5719_v3, %v5180_v9  ;;  %v5695_v62 = vld [vmem:[#allocation2 + $0x5dc] sm:$0xf0]  ;;  %v3118_v5 = vadd.f32 %v7392_v6, %v7434_v13 }
 0x176   : > { %1293 = vst [vmem:[#allocation2 + $0x870] sm:$0xff] %v1062_v47  ;;  %3571 = vmatpush.bf16.msra.mxu2 %v4347_v4  ;;  %v7419_v25 = vpop.f32.mrf.mxu0  ;;  %v4671_v33 = vor.u32 %v5591_v27, %v4668_v58  ;;  %v5575_v59 = vld [vmem:[#allocation2 + $0x224] sm:$0xf]  ;;  %v5051_v19 = vor.u32 %v5695_v62, %v5050_v42  ;;  %v4986_v4 = vld [vmem:[#allocation2 + $0x520] sm:$0xf] }
 0x177   : > { %905 = vst [vmem:[#allocation2 + $0x778] sm:$0xff] %v881_v55  ;;  %v5703_v39 = vld [vmem:[#allocation2 + $0x624] sm:$0xf]  ;;  %v5679_v11 = vld [vmem:[#allocation2 + $0x55c] sm:$0xf0]  ;;  %v3137_v7 = vadd.f32 %v7360_v36, %v3118_v5 }
 0x178   : > { %3609 = vmatpush.bf16.msra.mxu1 %v5371_v14  ;;  %1302 = vst [vmem:[#allocation2 + $0x8b8] sm:$0xff] %v1272_v52  ;;  %3584 = vmatpush.bf16.msra.mxu0 %v5243_v61  ;;  %v7421_v8 = vpop.f32.mrf.mxu1  ;;  %v5247_v14 = vor.u32 %v5735_v49, %v5244_v43  ;;  %v5116_v47 = vld [vmem:[#allocation2 + $0x660] sm:$0xf0]  ;;  %v4987_v32 = vor.u32 %v5679_v11, %v4986_v4  ;;  %v5632_v48 = vld [vmem:[#allocation2 + $0x3e4] sm:$0xf0] }
 0x179   : > { %1286 = vst [vmem:[#allocation2 + $0x838] sm:$0xff] %v1268_v10  ;;  %5476 = vmatmul.msk.bf16.vlgmr.msrb.gmra.mxu2 %vm3101_vm3, %v6634_v2  ;;  %v4604_v54 = vld [vmem:[#allocation2 + $0x260] sm:$0xf0]  ;;  %v5119_v38 = vor.u32 %v5703_v39, %v5116_v47  ;;  %v4922_v51 = vld [vmem:[#allocation2 + $0x4a0] sm:$0xf] }
 0x17a   : > { %3477 = vmatmul.bf16.vlgmr.msra.gmra.mxu3 %v6741_v46  ;;  %1294 = vst [vmem:[#allocation2 + $0x878] sm:$0xff] %v1270_v15  ;;  %3640 = vmatpush.bf16.msrb.mxu2 %v5311_v23  ;;  %v7423_v63 = vpop.f32.mrf.mxu2  ;;  %v4607_v40 = vor.u32 %v5575_v59, %v4604_v54  ;;  %v5559_v55 = vld [vmem:[#allocation2 + $0x1a4] sm:$0xf]  ;;  %v5663_v61 = vld [vmem:[#allocation2 + $0x4dc] sm:$0xf0]  ;;  %v3175_v59 = vadd.f32 %v7414_v31, %v7434_v13 }
 0x17b   : > { %3621 = vmatpush.bf16.msra.mxu3 %v4799_v45  ;;  %v4540_v26 = vld [vmem:[#allocation2 + $0x1e0] sm:$0xf0]  ;;  %v4802_v45 = vld [vmem:[#allocation2 + $0x3a8] sm:$0xf]  ;;  %v4923_v9 = vor.u32 %v5663_v61, %v4922_v51 }
 0x17c   : > { %3585 = vmatpush.bf16.msra.mxu0 %v5179_v22  ;;  %v7426_v53 = vpop.f32.mrf.mxu3  ;;  %v5687_v52 = vld [vmem:[#allocation2 + $0x5a4] sm:$0xf]  ;;  %v4543_v57 = vor.u32 %v5559_v55, %v4540_v26  ;;  %v4803_v49 = vor.u32 %v5632_v48, %v4802_v45  ;;  %v4738_v27 = vld [vmem:[#allocation2 + $0x328] sm:$0xf] }
 0x17d   : > { %3463 = vmatmul.bf16.gmra.mxu1 %v6865_v17  ;;  %v5052_v56 = vld [vmem:[#allocation2 + $0x5e0] sm:$0xf0]  ;;  %v5616_v58 = vld [vmem:[#allocation2 + $0x364] sm:$0xf0] }
 0x17e   : > { %3641 = vmatpush.bf16.msrb.mxu2 %v5247_v14  ;;  %v7428_v21 = vpop.f32.mrf.mxu0  ;;  %v5543_v34 = vld [vmem:[#allocation2 + $0x124] sm:$0xf]  ;;  %v5055_v15 = vor.u32 %v5687_v52, %v5052_v56  ;;  %v7452_v14 = vpop.permute.xlu0 %1618  ;;  %v4739_v54 = vor.u32 %v5616_v58, %v4738_v27  ;;  %v5760_v48 = vld [vmem:[#allocation2 + $0x7e4] sm:$0xf0] }
 0x17f   : > { %3622 = vmatpush.bf16.msra.mxu3 %v4735_v35  ;;  %v4476_v29 = vld [vmem:[#allocation2 + $0x160] sm:$0xf0]  ;;  %v4610_v58 = vld [vmem:[#allocation2 + $0x228] sm:$0xf] }
 0x180   : > { %3586 = vmatpush.bf16.msra.mxu0 %v5115_v18  ;;  %v7430_v1 = vpop.f32.mrf.mxu1  ;;  %v5671_v6 = vld [vmem:[#allocation2 + $0x524] sm:$0xf]  ;;  %v4479_v3 = vor.u32 %v5543_v34, %v4476_v29  ;;  %v5600_v34 = vld [vmem:[#allocation2 + $0x2e4] sm:$0xf0] }
 0x181   : > { %5475 = vmatmul.msk.bf16.gmra.mxu0 %vm3101_vm3, %v6717_v50  ;;  %v4988_v23 = vld [vmem:[#allocation2 + $0x560] sm:$0xf0] }
 0x182   : > { %3642 = vmatpush.bf16.msrb.mxu2 %v5183_v24  ;;  %v7432_v12 = vpop.f32.mrf.mxu2  ;;  %v5527_v43 = vld [vmem:[#allocation2 + $0xa4] sm:$0xf]  ;;  %v4991_v18 = vor.u32 %v5671_v6, %v4988_v23  ;;  %v4858_v24 = vld [vmem:[#allocation2 + $0x420] sm:$0xf]  ;;  %v5442_v6 = vld [vmem:[#allocation2 + $0x8a8] sm:$0xf] }
 0x183   : > { %3623 = vmatpush.bf16.msra.mxu3 %v4671_v33  ;;  %v4412_v0 = vld [vmem:[#allocation2 + $0xe0] sm:$0xf0]  ;;  %v5647_v33 = vld [vmem:[#allocation2 + $0x45c] sm:$0xf0]  ;;  %v5792_v23 = vld [vmem:[#allocation2 + $0x8e4] sm:$0xf0] }
 0x184   : > { %3587 = vmatpush.bf16.msra.mxu0 %v5051_v19  ;;  %v7440_v10 = vpop.f32.mrf.mxu3  ;;  %v4415_v39 = vor.u32 %v5527_v43, %v4412_v0  ;;  %v5655_v47 = vld [vmem:[#allocation2 + $0x4a4] sm:$0xf]  ;;  %v3194_v19 = vadd.f32 %v7423_v63, %v3175_v59  ;;  %v4859_v55 = vor.u32 %v5647_v33, %v4858_v24  ;;  %v5314_v63 = vld [vmem:[#allocation2 + $0x7a8] sm:$0xf]  ;;  %v5443_v59 = vor.u32 %v5792_v23, %v5442_v6 }
 0x185   : > { %v4924_v36 = vld [vmem:[#allocation2 + $0x4e0] sm:$0xf0]  ;;  %v5250_v24 = vld [vmem:[#allocation2 + $0x728] sm:$0xf] }
 0x186   : > { %3643 = vmatpush.bf16.msrb.mxu2 %v5119_v38  ;;  %v7445_v37 = vpop.f32.mrf.mxu0  ;;  %v5511_v42 = vld [vmem:[#allocation2 + $0x24] sm:$0xf]  ;;  %v3156_v38 = vadd.f32 %v7292_v41, %v3137_v7  ;;  %v4927_v31 = vor.u32 %v5655_v47, %v4924_v36  ;;  %v4674_v41 = vld [vmem:[#allocation2 + $0x2a8] sm:$0xf] }
 0x187   : > { %3624 = vmatpush.bf16.msra.mxu3 %v4607_v40  ;;  %v4348_v62 = vld [vmem:[#allocation2 + $0x60] sm:$0xf0]  ;;  %v3120_v40 = vadd.f32 %v7419_v25, %v7452_v14  ;;  %v4675_v43 = vor.u32 %v5600_v34, %v4674_v41  ;;  %v5744_v33 = vld [vmem:[#allocation2 + $0x764] sm:$0xf0]  ;;  %v7494_v41 = vpop.permute.xlu2 %1628 }
 0x188   : > { %3588 = vmatpush.bf16.msra.mxu0 %v4987_v32  ;;  %v5639_v4 = vld [vmem:[#allocation2 + $0x424] sm:$0xf]  ;;  %v5378_v36 = vld [vmem:[#allocation2 + $0x828] sm:$0xf] }
 0x189   : > { %5477 = vmatmul.msk.bf16.gmra.mxu2 %vm3101_vm3, %v6717_v50  ;;  %v5783_v11 = vld [vmem:[#allocation2 + $0x8a4] sm:$0xf]  ;;  %v3139_v29 = vadd.f32 %v7397_v60, %v3120_v40  ;;  %v5315_v60 = vor.u32 %v5760_v48, %v5314_v63  ;;  %v4546_v40 = vld [vmem:[#allocation2 + $0x1a8] sm:$0xf] }
 0x18a   : > { %3482 = vmatmul.bf16.gmra.mxu3 %v6822_v44  ;;  %v7447_v35 = vpop.f32.mrf.mxu1  ;;  %3644 = vmatpush.bf16.msrb.mxu2 %v5055_v15  ;;  %v7449_v22 = vpop.f32.mrf.mxu2  ;;  %v5436_v52 = vld [vmem:[#allocation2 + $0x8e0] sm:$0xf0]  ;;  %v4020_v15 = vmax.f32 %v3156_v38, 0.0  ;;  %v4482_v48 = vld [vmem:[#allocation2 + $0x128] sm:$0xf] }
 0x18b   : > { %3625 = vmatpush.bf16.msra.mxu3 %v4543_v57  ;;  %v4351_v57 = vor.u32 %v5511_v42, %v4348_v62  ;;  %v4860_v32 = vld [vmem:[#allocation2 + $0x460] sm:$0xf0]  ;;  %v5439_v61 = vor.u32 %v5783_v11, %v5436_v52  ;;  %v4418_v6 = vld [vmem:[#allocation2 + $0xa8] sm:$0xf] }
 0x18c   : > { %3589 = vmatpush.bf16.msra.mxu0 %v4923_v9  ;;  %v7462_v56 = vpop.f32.mrf.mxu3  ;;  %v5767_v0 = vld [vmem:[#allocation2 + $0x824] sm:$0xf]  ;;  %v7472_v9 = vpop.permute.xlu1 %1623 }
 0x18d   : > { %3534 = vmatmul.bf16.vlgmr.msrb.gmra.mxu1 %v6741_v46  ;;  %v5372_v7 = vld [vmem:[#allocation2 + $0x860] sm:$0xf0]  ;;  %v3123_v42 = vadd.f32 %v7428_v21, %v7472_v9  ;;  %v5186_v21 = vld [vmem:[#allocation2 + $0x6a8] sm:$0xf] }
 0x18e   : > { %3645 = vmatpush.bf16.msrb.mxu2 %v4991_v18  ;;  %3678 = vmatpush.bf16.msrb.mxu1 %v4803_v49  ;;  %v3212_v26 = vpop.f32.mrf.mxu0  ;;  %v4863_v49 = vor.u32 %v5639_v4, %v4860_v32  ;;  %v5584_v18 = vld [vmem:[#allocation2 + $0x264] sm:$0xf0] }
 0x18f   : > { %3626 = vmatpush.bf16.msra.mxu3 %v4479_v3  ;;  %v3213_v5 = vadd.f32 %v3212_v26, %v3194_v19  ;;  %v3177_v3 = vadd.f32 %v7426_v53, %v7452_v14  ;;  %v5375_v53 = vor.u32 %v5767_v0, %v5372_v7  ;;  %v4611_v62 = vor.u32 %v5584_v18, %v4610_v58  ;;  %v5568_v19 = vld [vmem:[#allocation2 + $0x1e4] sm:$0xf0] }
 0x190   : > { %3590 = vmatpush.bf16.msra.mxu0 %v4859_v55  ;;  %v5728_v26 = vld [vmem:[#allocation2 + $0x6e4] sm:$0xf0]  ;;  %v4547_v32 = vor.u32 %v5568_v19, %v4546_v40 }
 0x191   : > { %v4021_v51 = vmax.f32 %v3213_v5, 0.0  ;;  %3515 = vmatmul.bf16.vlgmr.msrb.gmra.mxu0 %v6773_v16  ;;  %v3196_v47 = vadd.f32 %v7432_v12, %v3177_v3  ;;  %v5251_v12 = vor.u32 %v5744_v33, %v5250_v24  ;;  %v5187_v63 = vor.u32 %v5728_v26, %v5186_v21  ;;  %v4354_v24 = vld [vmem:[#allocation2 + $0x28] sm:$0xf] }
 0x192   : > { %v7464_v45 = vpop.f32.mrf.mxu1  ;;  %3646 = vmatpush.bf16.msrb.mxu2 %v4927_v31  ;;  %3679 = vmatpush.bf16.msrb.mxu1 %v4739_v54  ;;  %v7466_v25 = vpop.f32.mrf.mxu2  ;;  %v5776_v54 = vld [vmem:[#allocation2 + $0x864] sm:$0xf0] }
 0x193   : > { %3627 = vmatpush.bf16.msra.mxu3 %v4415_v39  ;;  %v4084_v27 = vpack.c.bf16 %v4021_v51, %v4020_v15  ;;  %v3158_v39 = vadd.f32 %v7324_v20, %v3139_v29  ;;  %v5379_v4 = vor.u32 %v5776_v54, %v5378_v36  ;;  %v5552_v29 = vld [vmem:[#allocation2 + $0x164] sm:$0xf0]  ;;  %v3180_v15 = vadd.f32 %v7440_v10, %v7472_v9 }
 0x194   : > { %3665 = vmatpush.bf16.msrb.mxu0 %v5439_v61  ;;  %v5122_v51 = vld [vmem:[#allocation2 + $0x628] sm:$0xf]  ;;  %v4483_v0 = vor.u32 %v5552_v29, %v4482_v48  ;;  %v5624_v48 = vld [vmem:[#allocation2 + $0x3ac] sm:$0xf] }
 0x195   : > { %4116 = vst [vmem:[%s7478_s30] sm:$0xff] %v4084_v27  ;;  %v4036_v52 = vmax.f32 %v3158_v39, 0.0  ;;  %v5712_v61 = vld [vmem:[#allocation2 + $0x664] sm:$0xf0]  ;;  %v4804_v29 = vld [vmem:[#allocation2 + $0x3e8] sm:$0xf0] }
 0x196   : > { %3647 = vmatpush.bf16.msrb.mxu2 %v4863_v49  ;;  %3680 = vmatpush.bf16.msrb.mxu1 %v4675_v43  ;;  %v3214_v20 = vpop.f32.mrf.mxu0  ;;  %v3125_v49 = vadd.f32 %v7445_v37, %v7494_v41  ;;  %v3199_v43 = vadd.f32 %v7449_v22, %v3180_v15  ;;  %v5123_v7 = vor.u32 %v5712_v61, %v5122_v51  ;;  %v5696_v39 = vld [vmem:[#allocation2 + $0x5e4] sm:$0xf0]  ;;  %v5720_v61 = vld [vmem:[#allocation2 + $0x6ac] sm:$0xf] }
 0x197   : > { %3628 = vmatpush.bf16.msra.mxu3 %v4351_v57  ;;  %v3215_v38 = vadd.f32 %v3214_v20, %v3196_v47  ;;  %v3142_v57 = vadd.f32 %v7421_v8, %v3123_v42  ;;  %v5536_v8 = vld [vmem:[#allocation2 + $0xe4] sm:$0xf0]  ;;  %v3182_v47 = vadd.f32 %v7462_v56, %v7494_v41 }
 0x198   : > { %3666 = vmatpush.bf16.msrb.mxu0 %v5375_v53  ;;  %v4419_v58 = vor.u32 %v5536_v8, %v4418_v6  ;;  %v3144_v33 = vadd.f32 %v7430_v1, %v3125_v49  ;;  %v4994_v42 = vld [vmem:[#allocation2 + $0x528] sm:$0xf]  ;;  %v5188_v6 = vld [vmem:[#allocation2 + $0x6e8] sm:$0xf0] }
 0x199   : > { %3572 = vmatmul.bf16.vlgmr.msra.gmra.mxu2 %v6773_v16  ;;  %v4037_v5 = vmax.f32 %v3215_v38, 0.0  ;;  %v3161_v23 = vadd.f32 %v7364_v28, %v3142_v57  ;;  %v5520_v28 = vld [vmem:[#allocation2 + $0x64] sm:$0xf0]  ;;  %v3201_v1 = vadd.f32 %v7466_v25, %v3182_v47  ;;  %v5316_v38 = vld [vmem:[#allocation2 + $0x7e8] sm:$0xf0] }
 0x19a   : > { %5478 = vmatmul.msk.bf16.vlgmr.msrb.gmra.mxu3 %vm3101_vm3, %v6634_v2  ;;  %v7486_v55 = vpop.f32.mrf.mxu1  ;;  %3681 = vmatpush.bf16.msrb.mxu1 %v4611_v62  ;;  %v4355_v36 = vor.u32 %v5520_v28, %v4354_v24  ;;  %v5680_v62 = vld [vmem:[#allocation2 + $0x564] sm:$0xf0]  ;;  %v3163_v20 = vadd.f32 %v7401_v30, %v3144_v33  ;;  %v5704_v24 = vld [vmem:[#allocation2 + $0x62c] sm:$0xf] }
 0x19b   : > { %3697 = vmatpush.bf16.msrb.mxu3 %v5315_v60  ;;  %3722 = vmatpush.bf16.msra.mxu2 %v5443_v59  ;;  %v7488_v31 = vpop.f32.mrf.mxu2  ;;  %v4092_v34 = vpack.c.bf16 %v4037_v5, %v4036_v52  ;;  %v4052_v37 = vmax.f32 %v3161_v23, 0.0  ;;  %v5058_v59 = vld [vmem:[#allocation2 + $0x5a8] sm:$0xf]  ;;  %v4995_v30 = vor.u32 %v5680_v62, %v4994_v42 }
 0x19c   : > { %v5059_v54 = vor.u32 %v5696_v39, %v5058_v59  ;;  %v5664_v25 = vld [vmem:[#allocation2 + $0x4e4] sm:$0xf0]  ;;  %v4068_v5 = vmax.f32 %v3163_v20, 0.0  ;;  %v5633_v59 = vld [vmem:[#allocation2 + $0x3ec] sm:$0xf0]  ;;  %v3232_v39 = vadd.f32 %v7447_v35, %v7434_v13 }
 0x19d   : > { %v7490_v11 = vpop.f32.mrf.mxu3  ;;  %3539 = vmatmul.bf16.gmra.mxu1 %v6822_v44  ;;  %4124 = vst [vmem:[%s7478_s30 + $0x40] sm:$0xff] %v4092_v34  ;;  %v5252_v34 = vld [vmem:[#allocation2 + $0x768] sm:$0xf0]  ;;  %v4866_v8 = vld [vmem:[#allocation2 + $0x428] sm:$0xf] }
 0x19e   : > { %3682 = vmatpush.bf16.msrb.mxu1 %v4547_v32  ;;  %v3217_v3 = vpop.f32.mrf.mxu0  ;;  %v5736_v32 = vld [vmem:[#allocation2 + $0x72c] sm:$0xf]  ;;  %v5648_v23 = vld [vmem:[#allocation2 + $0x464] sm:$0xf0] }
 0x19f   : > { %3698 = vmatpush.bf16.msrb.mxu3 %v5251_v12  ;;  %3723 = vmatpush.bf16.msra.mxu2 %v5379_v4  ;;  %v3218_v10 = vadd.f32 %v3217_v3, %v3199_v43  ;;  %v5752_v12 = vld [vmem:[#allocation2 + $0x7ac] sm:$0xf]  ;;  %v4930_v4 = vld [vmem:[#allocation2 + $0x4a8] sm:$0xf]  ;;  %v5255_v51 = vor.u32 %v5736_v32, %v5252_v34  ;;  %v4807_v43 = vor.u32 %v5624_v48, %v4804_v29 }
 0x1a0   : > { %v5319_v52 = vor.u32 %v5752_v12, %v5316_v38  ;;  %v4931_v15 = vor.u32 %v5664_v25, %v4930_v4  ;;  %v5191_v3 = vor.u32 %v5720_v61, %v5188_v6  ;;  %v4867_v33 = vor.u32 %v5648_v23, %v4866_v8  ;;  %v4746_v12 = vld [vmem:[#allocation2 + $0x330] sm:$0xf]  ;;  %v4676_v4 = vld [vmem:[#allocation2 + $0x2e8] sm:$0xf0] }
 0x1a1   : > { %v4053_v22 = vmax.f32 %v3218_v10, 0.0  ;;  %3520 = vmatmul.bf16.gmra.mxu0 %v6865_v17  ;;  %v5608_v10 = vld [vmem:[#allocation2 + $0x32c] sm:$0xf]  ;;  %v5617_v38 = vld [vmem:[#allocation2 + $0x36c] sm:$0xf0] }
 0x1a2   : > { %v7503_v27 = vpop.f32.mrf.mxu1  ;;  %3683 = vmatpush.bf16.msrb.mxu1 %v4483_v0  ;;  %v4747_v34 = vor.u32 %v5617_v38, %v4746_v12  ;;  %v4612_v61 = vld [vmem:[#allocation2 + $0x268] sm:$0xf0]  ;;  %v5601_v23 = vld [vmem:[#allocation2 + $0x2ec] sm:$0xf0] }
 0x1a3   : > { %3699 = vmatpush.bf16.msrb.mxu3 %v5187_v63  ;;  %v7505_v60 = vpop.f32.mrf.mxu2  ;;  %v4100_v53 = vpack.c.bf16 %v4053_v22, %v4052_v37  ;;  %v5124_v37 = vld [vmem:[#allocation2 + $0x668] sm:$0xf0]  ;;  %v4810_v22 = vld [vmem:[#allocation2 + $0x3b0] sm:$0xf] }
 0x1a4   : > { %v5127_v42 = vor.u32 %v5704_v24, %v5124_v37  ;;  %v4811_v62 = vor.u32 %v5633_v59, %v4810_v22  ;;  %v5672_v6 = vld [vmem:[#allocation2 + $0x52c] sm:$0xf] }
 0x1a5   : > { %v7507_v18 = vpop.f32.mrf.mxu3  ;;  %4132 = vst [vmem:[%s7478_s30 + $0x80] sm:$0xff] %v4100_v53  ;;  %v5784_v53 = vld [vmem:[#allocation2 + $0x8ac] sm:$0xf] }
 0x1a6   : > { %3684 = vmatpush.bf16.msrb.mxu1 %v4419_v58  ;;  %v3219_v56 = vpop.f32.mrf.mxu0  ;;  %v4740_v58 = vld [vmem:[#allocation2 + $0x368] sm:$0xf0] }
 0x1a7   : > { %3700 = vmatpush.bf16.msrb.mxu3 %v5123_v7  ;;  %v3220_v19 = vadd.f32 %v3219_v56, %v3201_v1  ;;  %v5768_v1 = vld [vmem:[#allocation2 + $0x82c] sm:$0xf]  ;;  %v3251_v56 = vadd.f32 %v7490_v11, %v3232_v39 }
 0x1a8   : > { %v4996_v8 = vld [vmem:[#allocation2 + $0x568] sm:$0xf0] }
 0x1a9   : > { %3577 = vmatmul.bf16.gmra.mxu2 %v6865_v17  ;;  %v4069_v57 = vmax.f32 %v3220_v19, 0.0  ;;  %v5380_v19 = vld [vmem:[#allocation2 + $0x868] sm:$0xf0]  ;;  %v3270_v32 = vadd.f32 %v7488_v31, %v3251_v56  ;;  %v4682_v31 = vld [vmem:[#allocation2 + $0x2b0] sm:$0xf]  ;;  %v4999_v37 = vor.u32 %v5672_v6, %v4996_v8 }
 0x1aa   : > { %5479 = vmatmul.msk.bf16.gmra.mxu3 %vm3101_vm3, %v6717_v50  ;;  %v3307_v40 = vpop.f32.mrf.mxu1  ;;  %3685 = vmatpush.bf16.msrb.mxu1 %v4355_v36  ;;  %v5444_v36 = vld [vmem:[#allocation2 + $0x8e8] sm:$0xf0]  ;;  %v4683_v22 = vor.u32 %v5601_v23, %v4682_v31  ;;  %v4490_v31 = vld [vmem:[#allocation2 + $0x130] sm:$0xf] }
 0x1ab   : > { %3701 = vmatpush.bf16.msrb.mxu3 %v5059_v54  ;;  %v4108_v63 = vpack.c.bf16 %v4069_v57, %v4068_v5  ;;  %v4743_v54 = vor.u32 %v5608_v10, %v4740_v58  ;;  %v5447_v20 = vor.u32 %v5784_v53, %v5444_v36  ;;  %v5060_v5 = vld [vmem:[#allocation2 + $0x5e8] sm:$0xf0] }
 0x1ac   : > { %v7519_v21 = vpop.f32.mrf.mxu2  ;;  %v5560_v59 = vld [vmem:[#allocation2 + $0x1ac] sm:$0xf] }
 0x1ad   : > { %v7521_v26 = vpop.f32.mrf.mxu3  ;;  %5480 = vmatmul.msk.bf16.vlgmr.msra.gmra.mxu1 %vm3101_vm3, %v6634_v2  ;;  %4140 = vst [vmem:[%s7478_s30 + $0xc0] sm:$0xff] %v4108_v63  ;;  %v5383_v63 = vor.u32 %v5768_v1, %v5380_v19  ;;  %v4548_v39 = vld [vmem:[#allocation2 + $0x1e8] sm:$0xf0]  ;;  %v3237_v1 = vadd.f32 %v7486_v55, %v7472_v9 }
 0x1ae   : > { %3754 = vmatpush.bf16.msra.mxu1 %v5319_v52  ;;  %v3288_v49 = vpop.f32.mrf.mxu0  ;;  %v5688_v52 = vld [vmem:[#allocation2 + $0x5ac] sm:$0xf]  ;;  %v4551_v38 = vor.u32 %v5560_v59, %v4548_v39  ;;  %v4426_v59 = vld [vmem:[#allocation2 + $0xb0] sm:$0xf] }
 0x1af   : > { %3702 = vmatpush.bf16.msrb.mxu3 %v4995_v30  ;;  %v3289_v47 = vadd.f32 %v3288_v49, %v7434_v13  ;;  %v5592_v30 = vld [vmem:[#allocation2 + $0x2ac] sm:$0xf]  ;;  %v3234_v49 = vadd.f32 %v7464_v45, %v7452_v14  ;;  %v4618_v45 = vld [vmem:[#allocation2 + $0x230] sm:$0xf] }
 0x1b0   : > { %v4679_v48 = vor.u32 %v5592_v30, %v4676_v4  ;;  %v4932_v36 = vld [vmem:[#allocation2 + $0x4e8] sm:$0xf0]  ;;  %v5537_v39 = vld [vmem:[#allocation2 + $0xec] sm:$0xf0] }
 0x1b1   : > { %3591 = vmatmul.bf16.vlgmr.msra.gmra.mxu0 %v6741_v46  ;;  %v3308_v35 = vadd.f32 %v3307_v40, %v3289_v47  ;;  %v3253_v24 = vadd.f32 %v7507_v18, %v3234_v49  ;;  %v5656_v47 = vld [vmem:[#allocation2 + $0x4ac] sm:$0xf]  ;;  %v5553_v49 = vld [vmem:[#allocation2 + $0x16c] sm:$0xf0] }
 0x1b2   : > { %3755 = vmatpush.bf16.msra.mxu1 %v5255_v51  ;;  %v7526_v0 = vpop.f32.mrf.mxu1  ;;  %3735 = vmatpush.bf16.msra.mxu0 %v4807_v43  ;;  %v5576_v51 = vld [vmem:[#allocation2 + $0x22c] sm:$0xf]  ;;  %v4022_v43 = vmax.f32 %v3270_v32, 0.0  ;;  %v5450_v32 = vld [vmem:[#allocation2 + $0x8b0] sm:$0xf] }
 0x1b3   : > { %3703 = vmatpush.bf16.msrb.mxu3 %v4931_v15  ;;  %v5063_v15 = vor.u32 %v5688_v52, %v5060_v5  ;;  %v4615_v58 = vor.u32 %v5576_v51, %v4612_v61  ;;  %v5544_v56 = vld [vmem:[#allocation2 + $0x12c] sm:$0xf]  ;;  %v4554_v52 = vld [vmem:[#allocation2 + $0x1b0] sm:$0xf] }
 0x1b4   : > { %v7528_v7 = vpop.f32.mrf.mxu2  ;;  %v5569_v5 = vld [vmem:[#allocation2 + $0x1ec] sm:$0xf0] }
 0x1b5   : > { %v7530_v28 = vpop.f32.mrf.mxu3  ;;  %v4555_v8 = vor.u32 %v5569_v5, %v4554_v52  ;;  %v4812_v52 = vld [vmem:[#allocation2 + $0x3f0] sm:$0xf0] }
 0x1b6   : > { %3756 = vmatpush.bf16.msra.mxu1 %v5191_v3  ;;  %3736 = vmatpush.bf16.msra.mxu0 %v4743_v54  ;;  %v3290_v25 = vpop.f32.mrf.mxu0  ;;  %v5585_v54 = vld [vmem:[#allocation2 + $0x26c] sm:$0xf0] }
 0x1b7   : > { %3704 = vmatpush.bf16.msrb.mxu3 %v4867_v33  ;;  %v3291_v10 = vadd.f32 %v3290_v25, %v7452_v14  ;;  %v4619_v4 = vor.u32 %v5585_v54, %v4618_v45  ;;  %v5640_v25 = vld [vmem:[#allocation2 + $0x42c] sm:$0xf] }
 0x1b9   : > { %3648 = vmatmul.bf16.vlgmr.msrb.gmra.mxu2 %v6741_v46 }
 0x1ba   : > { %3629 = vmatmul.bf16.vlgmr.msra.gmra.mxu3 %v6773_v16  ;;  %v7539_v57 = vpop.f32.mrf.mxu1  ;;  %3757 = vmatpush.bf16.msra.mxu1 %v5127_v42 }
 0x1bb   : > { %3779 = vmatpush.bf16.msra.mxu3 %v5447_v20  ;;  %3792 = vmatpush.bf16.msrb.mxu2 %v4811_v62  ;;  %v3272_v62 = vadd.f32 %v7505_v60, %v3253_v24  ;;  %v3310_v20 = vadd.f32 %v7526_v0, %v3291_v10  ;;  %v4935_v60 = vor.u32 %v5656_v47, %v4932_v36  ;;  %v4868_v0 = vld [vmem:[#allocation2 + $0x468] sm:$0xf0] }
 0x1bc   : > { %v7542_v11 = vpop.f32.mrf.mxu2  ;;  %3737 = vmatpush.bf16.msra.mxu0 %v4679_v48  ;;  %v4420_v48 = vld [vmem:[#allocation2 + $0xe8] sm:$0xf0]  ;;  %v4871_v51 = vor.u32 %v5640_v25, %v4868_v0  ;;  %v3239_v36 = vadd.f32 %v7503_v27, %v7494_v41  ;;  %v5625_v0 = vld [vmem:[#allocation2 + $0x3b4] sm:$0xf] }
 0x1bd   : > { %v3326_v40 = vpop.f32.mrf.mxu3  ;;  %5481 = vmatmul.msk.bf16.gmra.mxu1 %vm3101_vm3, %v6717_v50 }
 0x1be   : > { %v3327_v29 = vadd.f32 %v3326_v40, %v3308_v35  ;;  %3758 = vmatpush.bf16.msra.mxu1 %v5063_v15  ;;  %v3293_v53 = vpop.f32.mrf.mxu0  ;;  %v4484_v35 = vld [vmem:[#allocation2 + $0x168] sm:$0xf0]  ;;  %v4038_v40 = vmax.f32 %v3272_v62, 0.0 }
 0x1bf   : > { %3780 = vmatpush.bf16.msra.mxu3 %v5383_v63  ;;  %3793 = vmatpush.bf16.msrb.mxu2 %v4747_v34  ;;  %v3294_v30 = vadd.f32 %v3293_v53, %v7472_v9  ;;  %v5793_v34 = vld [vmem:[#allocation2 + $0x8ec] sm:$0xf0]  ;;  %v5528_v63 = vld [vmem:[#allocation2 + $0xac] sm:$0xf]  ;;  %v4487_v15 = vor.u32 %v5544_v56, %v4484_v35  ;;  %v4491_v53 = vor.u32 %v5553_v49, %v4490_v31 }
 0x1c0   : > { %v4023_v3 = vmax.f32 %v3327_v29, 0.0  ;;  %3738 = vmatpush.bf16.msra.mxu0 %v4615_v58  ;;  %v3256_v29 = vadd.f32 %v7521_v26, %v3237_v1  ;;  %v4423_v10 = vor.u32 %v5528_v63, %v4420_v48  ;;  %v5386_v26 = vld [vmem:[#allocation2 + $0x830] sm:$0xf]  ;;  %v4427_v1 = vor.u32 %v5537_v39, %v4426_v59  ;;  %v5609_v48 = vld [vmem:[#allocation2 + $0x334] sm:$0xf] }
 0x1c1   : > { %3596 = vmatmul.bf16.gmra.mxu0 %v6822_v44  ;;  %v3313_v6 = vadd.f32 %v7539_v57, %v3294_v30  ;;  %v5777_v58 = vld [vmem:[#allocation2 + $0x86c] sm:$0xf0]  ;;  %v4356_v57 = vld [vmem:[#allocation2 + $0x68] sm:$0xf0]  ;;  %v3258_v56 = vadd.f32 %v7530_v28, %v3239_v36  ;;  %v5593_v36 = vld [vmem:[#allocation2 + $0x2b4] sm:$0xf] }
 0x1c2   : > { %v4085_v33 = vpack.c.bf16 %v4023_v3, %v4022_v43  ;;  %v7550_v42 = vpop.f32.mrf.mxu1  ;;  %3759 = vmatpush.bf16.msra.mxu1 %v4999_v37  ;;  %v5451_v43 = vor.u32 %v5793_v34, %v5450_v32  ;;  %v3275_v24 = vadd.f32 %v7519_v21, %v3256_v29  ;;  %v5387_v21 = vor.u32 %v5777_v58, %v5386_v26  ;;  %v5761_v30 = vld [vmem:[#allocation2 + $0x7ec] sm:$0xf0]  ;;  %v4748_v29 = vld [vmem:[#allocation2 + $0x370] sm:$0xf0] }
 0x1c3   : > { %3794 = vmatpush.bf16.msrb.mxu2 %v4683_v22  ;;  %v5745_v63 = vld [vmem:[#allocation2 + $0x76c] sm:$0xf0]  ;;  %v5737_v58 = vld [vmem:[#allocation2 + $0x734] sm:$0xf] }
 0x1c4   : > { %4117 = vst [vmem:[%s7478_s30 + $0x8] sm:$0xff] %v4085_v33  ;;  %v7555_v18 = vpop.f32.mrf.mxu2  ;;  %3739 = vmatpush.bf16.msra.mxu0 %v4551_v38  ;;  %v5512_v33 = vld [vmem:[#allocation2 + $0x2c] sm:$0xf]  ;;  %v4054_v54 = vmax.f32 %v3275_v24, 0.0  ;;  %v5521_v38 = vld [vmem:[#allocation2 + $0x6c] sm:$0xf0] }
 0x1c5   : > { %v3328_v12 = vpop.f32.mrf.mxu3  ;;  %v4359_v45 = vor.u32 %v5512_v33, %v4356_v57  ;;  %v5260_v24 = vld [vmem:[#allocation2 + $0x770] sm:$0xf0]  ;;  %v5130_v57 = vld [vmem:[#allocation2 + $0x630] sm:$0xf] }
 0x1c6   : > { %v3329_v19 = vadd.f32 %v3328_v12, %v3310_v20  ;;  %3760 = vmatpush.bf16.msra.mxu1 %v4935_v60  ;;  %v3295_v23 = vpop.f32.mrf.mxu0  ;;  %v4362_v12 = vld [vmem:[#allocation2 + $0x30] sm:$0xf] }
 0x1c7   : > { %3795 = vmatpush.bf16.msrb.mxu2 %v4619_v4  ;;  %v3296_v20 = vadd.f32 %v3295_v23, %v7494_v41  ;;  %v3277_v4 = vadd.f32 %v7528_v7, %v3258_v56  ;;  %v4363_v5 = vor.u32 %v5521_v38, %v4362_v12  ;;  %v4815_v7 = vor.u32 %v5625_v0, %v4812_v52  ;;  %v5705_v12 = vld [vmem:[#allocation2 + $0x634] sm:$0xf] }
 0x1c8   : > { %v4039_v55 = vmax.f32 %v3329_v19, 0.0  ;;  %3740 = vmatpush.bf16.msra.mxu0 %v4487_v15  ;;  %v5322_v19 = vld [vmem:[#allocation2 + $0x7b0] sm:$0xf]  ;;  %v5753_v15 = vld [vmem:[#allocation2 + $0x7b4] sm:$0xf] }
 0x1c9   : > { %3653 = vmatmul.bf16.gmra.mxu2 %v6822_v44  ;;  %v3315_v25 = vadd.f32 %v7550_v42, %v3296_v20  ;;  %v5323_v34 = vor.u32 %v5761_v30, %v5322_v19  ;;  %v5324_v42 = vld [vmem:[#allocation2 + $0x7f0] sm:$0xf0]  ;;  %v5697_v19 = vld [vmem:[#allocation2 + $0x5ec] sm:$0xf0] }
 0x1ca   : > { %v4093_v61 = vpack.c.bf16 %v4039_v55, %v4038_v40  ;;  %3634 = vmatmul.bf16.gmra.mxu3 %v6865_v17  ;;  %v7565_v3 = vpop.f32.mrf.mxu1  ;;  %3761 = vmatpush.bf16.msra.mxu1 %v4871_v51  ;;  %v5258_v55 = vld [vmem:[#allocation2 + $0x730] sm:$0xf]  ;;  %v4070_v51 = vmax.f32 %v3277_v4, 0.0  ;;  %v5327_v49 = vor.u32 %v5753_v15, %v5324_v42  ;;  %v5132_v38 = vld [vmem:[#allocation2 + $0x670] sm:$0xf0] }
 0x1cb   : > { %3796 = vmatpush.bf16.msrb.mxu2 %v4555_v8  ;;  %v5729_v8 = vld [vmem:[#allocation2 + $0x6ec] sm:$0xf0]  ;;  %v5259_v31 = vor.u32 %v5745_v63, %v5258_v55  ;;  %v4620_v56 = vld [vmem:[#allocation2 + $0x270] sm:$0xf0] }
 0x1cc   : > { %4125 = vst [vmem:[%s7478_s30 + $0x48] sm:$0xff] %v4093_v61  ;;  %v7569_v22 = vpop.f32.mrf.mxu2  ;;  %3741 = vmatpush.bf16.msra.mxu0 %v4423_v10  ;;  %v5002_v55 = vld [vmem:[#allocation2 + $0x530] sm:$0xf]  ;;  %v5545_v42 = vld [vmem:[#allocation2 + $0x134] sm:$0xf] }
 0x1cd   : > { %v3331_v37 = vpop.f32.mrf.mxu3  ;;  %3686 = vmatmul.bf16.vlgmr.msrb.gmra.mxu1 %v6773_v16  ;;  %v5681_v63 = vld [vmem:[#allocation2 + $0x56c] sm:$0xf0] }
 0x1ce   : > { %v3332_v47 = vadd.f32 %v3331_v37, %v3313_v6  ;;  %3836 = vmatpush.bf16.msrb.mxu1 %v5451_v43  ;;  %v7576_v27 = vpop.f32.mrf.mxu0  ;;  %v5194_v6 = vld [vmem:[#allocation2 + $0x6b0] sm:$0xf]  ;;  %v4751_v43 = vor.u32 %v5609_v48, %v4748_v29  ;;  %v5689_v48 = vld [vmem:[#allocation2 + $0x5b4] sm:$0xf]  ;;  %v5003_v15 = vor.u32 %v5681_v63, %v5002_v55 }
 0x1cf   : > { %3797 = vmatpush.bf16.msrb.mxu2 %v4491_v53  ;;  %v5195_v26 = vor.u32 %v5729_v8, %v5194_v6  ;;  %v5713_v37 = vld [vmem:[#allocation2 + $0x66c] sm:$0xf0]  ;;  %v5196_v53 = vld [vmem:[#allocation2 + $0x6f0] sm:$0xf0] }
 0x1d0   : > { %v4055_v62 = vmax.f32 %v3332_v47, 0.0  ;;  %3742 = vmatpush.bf16.msra.mxu0 %v4359_v45  ;;  %v5721_v47 = vld [vmem:[#allocation2 + $0x6b4] sm:$0xf]  ;;  %v5263_v45 = vor.u32 %v5737_v58, %v5260_v24 }
 0x1d1   : > { %5482 = vmatmul.msk.bf16.vlgmr.msrb.gmra.mxu0 %vm3101_vm3, %v6634_v2  ;;  %v4492_v6 = vld [vmem:[#allocation2 + $0x170] sm:$0xf0] }
 0x1d2   : > { %v4101_v35 = vpack.c.bf16 %v4055_v62, %v4054_v54  ;;  %3837 = vmatpush.bf16.msrb.mxu1 %v5387_v21  ;;  %v7578_v60 = vpop.f32.mrf.mxu1  ;;  %v4684_v21 = vld [vmem:[#allocation2 + $0x2f0] sm:$0xf0]  ;;  %v5131_v54 = vor.u32 %v5713_v37, %v5130_v57  ;;  %v5199_v62 = vor.u32 %v5721_v47, %v5196_v53 }
 0x1d3   : > { %3798 = vmatpush.bf16.msrb.mxu2 %v4427_v1  ;;  %v4687_v20 = vor.u32 %v5593_v36, %v4684_v21  ;;  %v5577_v1 = vld [vmem:[#allocation2 + $0x234] sm:$0xf]  ;;  %v4495_v21 = vor.u32 %v5545_v42, %v4492_v6  ;;  %v3348_v6 = vadd.f32 %v7555_v18, %v7452_v14 }
 0x1d4   : > { %4133 = vst [vmem:[%s7478_s30 + $0x88] sm:$0xff] %v4101_v35  ;;  %v7583_v28 = vpop.f32.mrf.mxu2  ;;  %3811 = vmatpush.bf16.msrb.mxu0 %v5323_v34  ;;  %v5066_v35 = vld [vmem:[#allocation2 + $0x5b0] sm:$0xf]  ;;  %v4623_v52 = vor.u32 %v5577_v1, %v4620_v56  ;;  %v5561_v34 = vld [vmem:[#allocation2 + $0x1b4] sm:$0xf] }
 0x1d5   : > { %v3333_v32 = vpop.f32.mrf.mxu3  ;;  %v5004_v58 = vld [vmem:[#allocation2 + $0x570] sm:$0xf0]  ;;  %v4874_v1 = vld [vmem:[#allocation2 + $0x430] sm:$0xf] }
 0x1d6   : > { %v3334_v40 = vadd.f32 %v3333_v32, %v3315_v25  ;;  %v7590_v10 = vpop.f32.mrf.mxu0  ;;  %v5135_v25 = vor.u32 %v5705_v12, %v5132_v38  ;;  %v5067_v32 = vor.u32 %v5697_v19, %v5066_v35  ;;  %v5529_v37 = vld [vmem:[#allocation2 + $0xb4] sm:$0xf]  ;;  %v5649_v12 = vld [vmem:[#allocation2 + $0x46c] sm:$0xf0] }
 0x1d7   : > { %3799 = vmatpush.bf16.msrb.mxu2 %v4363_v5  ;;  %v4428_v47 = vld [vmem:[#allocation2 + $0xf0] sm:$0xf0] }
 0x1d8   : > { %v4071_v61 = vmax.f32 %v3334_v40, 0.0  ;;  %3812 = vmatpush.bf16.msrb.mxu0 %v5259_v31  ;;  %v4556_v40 = vld [vmem:[#allocation2 + $0x1f0] sm:$0xf0]  ;;  %v4938_v31 = vld [vmem:[#allocation2 + $0x4b0] sm:$0xf]  ;;  %v4431_v38 = vor.u32 %v5529_v37, %v4428_v47  ;;  %v3367_v37 = vadd.f32 %v7590_v10, %v3348_v6 }
 0x1d9   : > { %5484 = vmatmul.msk.bf16.vlgmr.msra.gmra.mxu2 %vm3101_vm3, %v6634_v2  ;;  %v4559_v29 = vor.u32 %v5561_v34, %v4556_v40  ;;  %v5657_v56 = vld [vmem:[#allocation2 + $0x4b4] sm:$0xf]  ;;  %v4875_v34 = vor.u32 %v5649_v12, %v4874_v1  ;;  %v5266_v10 = vld [vmem:[#allocation2 + $0x738] sm:$0xf] }
 0x1da   : > { %v4109_v23 = vpack.c.bf16 %v4071_v61, %v4070_v51  ;;  %3705 = vmatmul.bf16.vlgmr.msrb.gmra.mxu3 %v6741_v46  ;;  %v7592_v33 = vpop.f32.mrf.mxu1  ;;  %v4818_v51 = vld [vmem:[#allocation2 + $0x3b8] sm:$0xf]  ;;  %v4940_v35 = vld [vmem:[#allocation2 + $0x4f0] sm:$0xf0] }
 0x1db   : > { %3849 = vmatpush.bf16.msrb.mxu3 %v4815_v7  ;;  %3868 = vmatpush.bf16.msra.mxu2 %v5327_v49  ;;  %v5068_v7 = vld [vmem:[#allocation2 + $0x5f0] sm:$0xf0]  ;;  %v5634_v61 = vld [vmem:[#allocation2 + $0x3f4] sm:$0xf0]  ;;  %v3346_v49 = vadd.f32 %v7542_v11, %v7434_v13  ;;  %v4943_v55 = vor.u32 %v5657_v56, %v4940_v35 }
 0x1dc   : > { %4141 = vst [vmem:[%s7478_s30 + $0xc8] sm:$0xff] %v4109_v23  ;;  %v7597_v39 = vpop.f32.mrf.mxu2  ;;  %3813 = vmatpush.bf16.msrb.mxu0 %v5195_v26  ;;  %v5071_v8 = vor.u32 %v5689_v48, %v5068_v7  ;;  %v5665_v23 = vld [vmem:[#allocation2 + $0x4ec] sm:$0xf0]  ;;  %v5673_v26 = vld [vmem:[#allocation2 + $0x534] sm:$0xf]  ;;  %v4819_v57 = vor.u32 %v5634_v61, %v4818_v51 }
 0x1dd   : > { %v7595_v59 = vpop.f32.mrf.mxu3  ;;  %3691 = vmatmul.bf16.gmra.mxu1 %v6865_v17  ;;  %v3365_v53 = vadd.f32 %v7576_v27, %v3346_v49  ;;  %v4939_v11 = vor.u32 %v5665_v23, %v4938_v31  ;;  %v5641_v63 = vld [vmem:[#allocation2 + $0x434] sm:$0xf]  ;;  %v5602_v51 = vld [vmem:[#allocation2 + $0x2f4] sm:$0xf0] }
 0x1de   : > { %v7600_v30 = vpop.f32.mrf.mxu0  ;;  %v3403_v27 = vadd.f32 %v7595_v59, %v7434_v13  ;;  %v5785_v48 = vld [vmem:[#allocation2 + $0x8b4] sm:$0xf]  ;;  %v4690_v59 = vld [vmem:[#allocation2 + $0x2b8] sm:$0xf] }
 0x1df   : > { %3850 = vmatpush.bf16.msrb.mxu3 %v4751_v43  ;;  %3869 = vmatpush.bf16.msra.mxu2 %v5263_v45  ;;  %v5452_v7 = vld [vmem:[#allocation2 + $0x8f0] sm:$0xf0]  ;;  %v4691_v18 = vor.u32 %v5602_v51, %v4690_v59 }
 0x1e0   : > { %3814 = vmatpush.bf16.msrb.mxu0 %v5131_v54  ;;  %v4754_v54 = vld [vmem:[#allocation2 + $0x338] sm:$0xf]  ;;  %v3422_v40 = vadd.f32 %v7597_v39, %v3403_v27  ;;  %v4876_v42 = vld [vmem:[#allocation2 + $0x470] sm:$0xf0] }
 0x1e1   : > { %5483 = vmatmul.msk.bf16.gmra.mxu0 %vm3101_vm3, %v6717_v50  ;;  %v5330_v39 = vld [vmem:[#allocation2 + $0x7b8] sm:$0xf] }
 0x1e2   : > { %v7602_v4 = vpop.f32.mrf.mxu1  ;;  %v5394_v27 = vld [vmem:[#allocation2 + $0x838] sm:$0xf] }
 0x1e3   : > { %3851 = vmatpush.bf16.msrb.mxu3 %v4687_v20  ;;  %3870 = vmatpush.bf16.msra.mxu2 %v5199_v62  ;;  %v5618_v62 = vld [vmem:[#allocation2 + $0x374] sm:$0xf0]  ;;  %v5007_v20 = vor.u32 %v5673_v26, %v5004_v58  ;;  %v5455_v26 = vor.u32 %v5785_v48, %v5452_v7 }
 0x1e4   : > { %v7606_v5 = vpop.f32.mrf.mxu2  ;;  %3815 = vmatpush.bf16.msrb.mxu0 %v5067_v32  ;;  %v4755_v19 = vor.u32 %v5618_v62, %v4754_v54  ;;  %v3384_v32 = vadd.f32 %v7565_v3, %v3365_v53  ;;  %v5458_v58 = vld [vmem:[#allocation2 + $0x8b8] sm:$0xf]  ;;  %v4879_v53 = vor.u32 %v5641_v63, %v4876_v42 }
 0x1e5   : > { %v7604_v0 = vpop.f32.mrf.mxu3  ;;  %v4626_v62 = vld [vmem:[#allocation2 + $0x238] sm:$0xf] }
 0x1e6   : > { %v7615_v43 = vpop.f32.mrf.mxu0  ;;  %v4024_v31 = vmax.f32 %v3384_v32, 0.0  ;;  %v3405_v1 = vadd.f32 %v7604_v0, %v7452_v14  ;;  %v5202_v48 = vld [vmem:[#allocation2 + $0x6b8] sm:$0xf] }
 0x1e7   : > { %3852 = vmatpush.bf16.msrb.mxu3 %v4623_v52  ;;  %3871 = vmatpush.bf16.msra.mxu2 %v5135_v25  ;;  %v5513_v25 = vld [vmem:[#allocation2 + $0x34] sm:$0xf]  ;;  %v5730_v7 = vld [vmem:[#allocation2 + $0x6f4] sm:$0xf0] }
 0x1e8   : > { %3816 = vmatpush.bf16.msrb.mxu0 %v5003_v15  ;;  %v4364_v52 = vld [vmem:[#allocation2 + $0x70] sm:$0xf0] }
 0x1e9   : > { %5485 = vmatmul.msk.bf16.gmra.mxu2 %vm3101_vm3, %v6717_v50  ;;  %v4367_v15 = vor.u32 %v5513_v25, %v4364_v52  ;;  %v3386_v25 = vadd.f32 %v7578_v60, %v3367_v37  ;;  %v3424_v52 = vadd.f32 %v7606_v5, %v3405_v1  ;;  %v3351_v60 = vadd.f32 %v7569_v22, %v7472_v9  ;;  %v4434_v37 = vld [vmem:[#allocation2 + $0xb8] sm:$0xf] }
 0x1ea   : > { %3710 = vmatmul.bf16.gmra.mxu3 %v6822_v44  ;;  %v7617_v24 = vpop.f32.mrf.mxu1  ;;  %v5203_v22 = vor.u32 %v5730_v7, %v5202_v48 }
 0x1eb   : > { %3853 = vmatpush.bf16.msrb.mxu3 %v4559_v29  ;;  %3872 = vmatpush.bf16.msra.mxu2 %v5071_v8  ;;  %v5762_v8 = vld [vmem:[#allocation2 + $0x7f4] sm:$0xf0]  ;;  %v4040_v59 = vmax.f32 %v3386_v25, 0.0  ;;  %v3370_v51 = vadd.f32 %v7600_v30, %v3351_v60 }
 0x1ec   : > { %v7622_v45 = vpop.f32.mrf.mxu2  ;;  %3817 = vmatpush.bf16.msrb.mxu0 %v4939_v11  ;;  %v5388_v11 = vld [vmem:[#allocation2 + $0x870] sm:$0xf0]  ;;  %v5331_v54 = vor.u32 %v5762_v8, %v5330_v39  ;;  %v4498_v39 = vld [vmem:[#allocation2 + $0x138] sm:$0xf] }
 0x1ed   : > { %v7620_v36 = vpop.f32.mrf.mxu3  ;;  %3762 = vmatmul.bf16.vlgmr.msra.gmra.mxu1 %v6741_v46  ;;  %v5554_v8 = vld [vmem:[#allocation2 + $0x174] sm:$0xf0]  ;;  %v3389_v30 = vadd.f32 %v7592_v33, %v3370_v51 }
 0x1ee   : > { %3906 = vmatpush.bf16.msra.mxu1 %v4819_v57  ;;  %v3440_v29 = vpop.f32.mrf.mxu0  ;;  %v5794_v57 = vld [vmem:[#allocation2 + $0x8f4] sm:$0xf0] }
 0x1ef   : > { %3854 = vmatpush.bf16.msrb.mxu3 %v4495_v21  ;;  %3873 = vmatpush.bf16.msra.mxu2 %v5007_v20  ;;  %v3441_v3 = vadd.f32 %v3440_v29, %v3422_v40  ;;  %v5769_v21 = vld [vmem:[#allocation2 + $0x834] sm:$0xf]  ;;  %v5586_v20 = vld [vmem:[#allocation2 + $0x274] sm:$0xf0]  ;;  %v5459_v56 = vor.u32 %v5794_v57, %v5458_v58 }
 0x1f0   : > { %3818 = vmatpush.bf16.msrb.mxu0 %v4875_v34  ;;  %v5391_v35 = vor.u32 %v5769_v21, %v5388_v11  ;;  %v4627_v0 = vor.u32 %v5586_v20, %v4626_v62  ;;  %v4562_v40 = vld [vmem:[#allocation2 + $0x1b8] sm:$0xf] }
 0x1f1   : > { %v4025_v47 = vmax.f32 %v3441_v3, 0.0  ;;  %3743 = vmatmul.bf16.vlgmr.msra.gmra.mxu0 %v6773_v16  ;;  %v5138_v58 = vld [vmem:[#allocation2 + $0x638] sm:$0xf] }
 0x1f2   : > { %v7629_v61 = vpop.f32.mrf.mxu1  ;;  %3907 = vmatpush.bf16.msra.mxu1 %v4755_v19  ;;  %v5778_v19 = vld [vmem:[#allocation2 + $0x874] sm:$0xf0] }
 0x1f3   : > { %3855 = vmatpush.bf16.msrb.mxu3 %v4431_v38  ;;  %3874 = vmatpush.bf16.msra.mxu2 %v4943_v55  ;;  %v4086_v12 = vpack.c.bf16 %v4025_v47, %v4024_v31  ;;  %v5746_v38 = vld [vmem:[#allocation2 + $0x774] sm:$0xf0]  ;;  %v5395_v29 = vor.u32 %v5778_v19, %v5394_v27  ;;  %v3408_v31 = vadd.f32 %v7620_v36, %v7472_v9 }
 0x1f4   : > { %v7635_v49 = vpop.f32.mrf.mxu2  ;;  %3893 = vmatpush.bf16.msra.mxu0 %v5455_v26  ;;  %v5267_v32 = vor.u32 %v5746_v38, %v5266_v10  ;;  %v5570_v55 = vld [vmem:[#allocation2 + $0x1f4] sm:$0xf0]  ;;  %v3353_v36 = vadd.f32 %v7583_v28, %v7494_v41 }
 0x1f5   : > { %v7633_v23 = vpop.f32.mrf.mxu3  ;;  %4118 = vst [vmem:[%s7478_s30 + $0x10] sm:$0xff] %v4086_v12  ;;  %v4563_v3 = vor.u32 %v5570_v55, %v4562_v40  ;;  %v5714_v57 = vld [vmem:[#allocation2 + $0x674] sm:$0xf0]  ;;  %v5332_v55 = vld [vmem:[#allocation2 + $0x7f8] sm:$0xf0] }
 0x1f6   : > { %3908 = vmatpush.bf16.msra.mxu1 %v4691_v18  ;;  %v3442_v34 = vpop.f32.mrf.mxu0  ;;  %v5538_v47 = vld [vmem:[#allocation2 + $0xf4] sm:$0xf0]  ;;  %v4499_v18 = vor.u32 %v5554_v8, %v4498_v39  ;;  %v5139_v21 = vor.u32 %v5714_v57, %v5138_v58  ;;  %v3372_v38 = vadd.f32 %v7615_v43, %v3353_v36  ;;  %v3410_v28 = vadd.f32 %v7633_v23, %v7494_v41  ;;  %v5754_v43 = vld [vmem:[#allocation2 + $0x7bc] sm:$0xf] }
 0x1f7   : > { %3856 = vmatpush.bf16.msrb.mxu3 %v4367_v15  ;;  %3875 = vmatpush.bf16.msra.mxu2 %v4879_v53  ;;  %v3443_v5 = vadd.f32 %v3442_v34, %v3424_v52  ;;  %v3427_v53 = vadd.f32 %v7622_v45, %v3408_v31  ;;  %v4435_v20 = vor.u32 %v5538_v47, %v4434_v37  ;;  %v4370_v33 = vld [vmem:[#allocation2 + $0x38] sm:$0xf]  ;;  %v4056_v45 = vmax.f32 %v3389_v30, 0.0  ;;  %v5626_v8 = vld [vmem:[#allocation2 + $0x3bc] sm:$0xf] }
 0x1f8   : > { %3894 = vmatpush.bf16.msra.mxu0 %v5391_v35  ;;  %v5522_v10 = vld [vmem:[#allocation2 + $0x74] sm:$0xf0]  ;;  %v3391_v34 = vadd.f32 %v7602_v4, %v3372_v38  ;;  %v3429_v40 = vadd.f32 %v7635_v49, %v3410_v28  ;;  %v4820_v31 = vld [vmem:[#allocation2 + $0x3f8] sm:$0xf0] }
 0x1f9   : > { %3800 = vmatmul.bf16.vlgmr.msrb.gmra.mxu2 %v6773_v16  ;;  %v4041_v6 = vmax.f32 %v3443_v5, 0.0  ;;  %v5074_v35 = vld [vmem:[#allocation2 + $0x5b8] sm:$0xf]  ;;  %v4371_v25 = vor.u32 %v5522_v10, %v4370_v33  ;;  %v5722_v57 = vld [vmem:[#allocation2 + $0x6bc] sm:$0xf] }
 0x1fa   : > { %5486 = vmatmul.msk.bf16.vlgmr.msra.gmra.mxu3 %vm3101_vm3, %v6634_v2  ;;  %v7647_v63 = vpop.f32.mrf.mxu1  ;;  %3909 = vmatpush.bf16.msra.mxu1 %v4627_v0  ;;  %v5698_v27 = vld [vmem:[#allocation2 + $0x5f4] sm:$0xf0]  ;;  %v4072_v51 = vmax.f32 %v3391_v34, 0.0  ;;  %v5204_v37 = vld [vmem:[#allocation2 + $0x6f8] sm:$0xf0] }
 0x1fb   : > { %3925 = vmatpush.bf16.msra.mxu3 %v5331_v54  ;;  %3950 = vmatpush.bf16.msrb.mxu2 %v5459_v56  ;;  %v4094_v26 = vpack.c.bf16 %v4041_v6, %v4040_v59  ;;  %v5075_v52 = vor.u32 %v5698_v27, %v5074_v35  ;;  %v5010_v0 = vld [vmem:[#allocation2 + $0x538] sm:$0xf]  ;;  %v5335_v59 = vor.u32 %v5754_v43, %v5332_v55  ;;  %v5610_v36 = vld [vmem:[#allocation2 + $0x33c] sm:$0xf] }
 0x1fc   : > { %v7653_v42 = vpop.f32.mrf.mxu2  ;;  %v4946_v4 = vld [vmem:[#allocation2 + $0x4b8] sm:$0xf]  ;;  %v4756_v10 = vld [vmem:[#allocation2 + $0x378] sm:$0xf0] }
 0x1fd   : > { %v7651_v15 = vpop.f32.mrf.mxu3  ;;  %3767 = vmatmul.bf16.gmra.mxu1 %v6822_v44  ;;  %4126 = vst [vmem:[%s7478_s30 + $0x50] sm:$0xff] %v4094_v26  ;;  %v5666_v49 = vld [vmem:[#allocation2 + $0x4f4] sm:$0xf0]  ;;  %v5140_v38 = vld [vmem:[#allocation2 + $0x678] sm:$0xf0] }
 0x1fe   : > { %3910 = vmatpush.bf16.msra.mxu1 %v4563_v3  ;;  %v3445_v11 = vpop.f32.mrf.mxu0  ;;  %v5738_v3 = vld [vmem:[#allocation2 + $0x73c] sm:$0xf]  ;;  %v4947_v26 = vor.u32 %v5666_v49, %v4946_v4  ;;  %v4882_v47 = vld [vmem:[#allocation2 + $0x438] sm:$0xf] }
 0x1ff   : > { %3926 = vmatpush.bf16.msra.mxu3 %v5267_v32  ;;  %3951 = vmatpush.bf16.msrb.mxu2 %v5395_v29  ;;  %v3446_v62 = vadd.f32 %v3445_v11, %v3427_v53  ;;  %v5682_v32 = vld [vmem:[#allocation2 + $0x574] sm:$0xf0]  ;;  %v5207_v11 = vor.u32 %v5722_v57, %v5204_v37  ;;  %v5786_v27 = vld [vmem:[#allocation2 + $0x8bc] sm:$0xf] }
 0x200   : > { %v5011_v7 = vor.u32 %v5682_v32, %v5010_v0  ;;  %v5650_v30 = vld [vmem:[#allocation2 + $0x474] sm:$0xf0]  ;;  %v5460_v28 = vld [vmem:[#allocation2 + $0x8f8] sm:$0xf0] }
 0x201   : > { %v4057_v56 = vmax.f32 %v3446_v62, 0.0  ;;  %3748 = vmatmul.bf16.gmra.mxu0 %v6865_v17  ;;  %v5396_v34 = vld [vmem:[#allocation2 + $0x878] sm:$0xf0] }
 0x202   : > { %v7662_v54 = vpop.f32.mrf.mxu1  ;;  %3911 = vmatpush.bf16.msra.mxu1 %v4499_v18  ;;  %v4823_v18 = vor.u32 %v5626_v8, %v4820_v31  ;;  %v4692_v55 = vld [vmem:[#allocation2 + $0x2f8] sm:$0xf0] }
 0x203   : > { %3927 = vmatpush.bf16.msra.mxu3 %v5203_v22  ;;  %v4102_v19 = vpack.c.bf16 %v4057_v56, %v4056_v45  ;;  %v5268_v22 = vld [vmem:[#allocation2 + $0x778] sm:$0xf0]  ;;  %v3460_v56 = vadd.f32 %v7617_v24, %v7434_v13 }
 0x204   : > { %v7668_v12 = vpop.f32.mrf.mxu2  ;;  %v5271_v58 = vor.u32 %v5738_v3, %v5268_v22  ;;  %v5706_v45 = vld [vmem:[#allocation2 + $0x63c] sm:$0xf] }
 0x205   : > { %v7666_v1 = vpop.f32.mrf.mxu3  ;;  %4134 = vst [vmem:[%s7478_s30 + $0x90] sm:$0xff] %v4102_v19  ;;  %v4759_v19 = vor.u32 %v5610_v36, %v4756_v10  ;;  %v3479_v0 = vadd.f32 %v7651_v15, %v3460_v56  ;;  %v5770_v24 = vld [vmem:[#allocation2 + $0x83c] sm:$0xf] }
 0x206   : > { %3912 = vmatpush.bf16.msra.mxu1 %v4435_v20  ;;  %v3447_v23 = vpop.f32.mrf.mxu0  ;;  %v4883_v20 = vor.u32 %v5650_v30, %v4882_v47  ;;  %v5399_v49 = vor.u32 %v5770_v24, %v5396_v34  ;;  %v5578_v3 = vld [vmem:[#allocation2 + $0x23c] sm:$0xf] }
 0x207   : > { %3928 = vmatpush.bf16.msra.mxu3 %v5139_v21  ;;  %v3448_v5 = vadd.f32 %v3447_v23, %v3429_v40  ;;  %v5594_v40 = vld [vmem:[#allocation2 + $0x2bc] sm:$0xf]  ;;  %v3498_v4 = vadd.f32 %v7653_v42, %v3479_v0  ;;  %v3462_v42 = vadd.f32 %v7629_v61, %v7452_v14 }
 0x208   : > { %v5690_v23 = vld [vmem:[#allocation2 + $0x5bc] sm:$0xf] }
 0x209   : > { %3805 = vmatmul.bf16.gmra.mxu2 %v6865_v17  ;;  %v4073_v6 = vmax.f32 %v3448_v5, 0.0  ;;  %v5076_v5 = vld [vmem:[#allocation2 + $0x5f8] sm:$0xf0]  ;;  %v4026_v31 = vmax.f32 %v3498_v4, 0.0  ;;  %v3481_v57 = vadd.f32 %v7666_v1, %v3462_v42 }
 0x20a   : > { %5487 = vmatmul.msk.bf16.gmra.mxu3 %vm3101_vm3, %v6717_v50  ;;  %v3535_v60 = vpop.f32.mrf.mxu1  ;;  %3913 = vmatpush.bf16.msra.mxu1 %v4371_v25  ;;  %v5143_v25 = vor.u32 %v5706_v45, %v5140_v38  ;;  %v4628_v22 = vld [vmem:[#allocation2 + $0x278] sm:$0xf0] }
 0x20b   : > { %3929 = vmatpush.bf16.msra.mxu3 %v5075_v52  ;;  %v4110_v39 = vpack.c.bf16 %v4073_v6, %v4072_v51  ;;  %v5463_v52 = vor.u32 %v5786_v27, %v5460_v28  ;;  %v4695_v51 = vor.u32 %v5594_v40, %v4692_v55  ;;  %v5079_v6 = vor.u32 %v5690_v23, %v5076_v5  ;;  %v5012_v8 = vld [vmem:[#allocation2 + $0x578] sm:$0xf0] }
 0x20c   : > { %v7682_v29 = vpop.f32.mrf.mxu2  ;;  %v4631_v47 = vor.u32 %v5578_v3, %v4628_v22  ;;  %v5658_v36 = vld [vmem:[#allocation2 + $0x4bc] sm:$0xf]  ;;  %v3500_v61 = vadd.f32 %v7668_v12, %v3481_v57  ;;  %v3465_v27 = vadd.f32 %v7647_v63, %v7472_v9 }
 0x20d   : > { %v7680_v48 = vpop.f32.mrf.mxu3  ;;  %5488 = vmatmul.msk.bf16.vlgmr.msrb.gmra.mxu1 %vm3101_vm3, %v6634_v2  ;;  %4142 = vst [vmem:[%s7478_s30 + $0xd0] sm:$0xff] %v4110_v39  ;;  %v5674_v39 = vld [vmem:[#allocation2 + $0x53c] sm:$0xf] }
 0x20e   : > { %3982 = vmatpush.bf16.msrb.mxu1 %v5335_v59  ;;  %v3516_v53 = vpop.f32.mrf.mxu0  ;;  %v5015_v30 = vor.u32 %v5674_v39, %v5012_v8  ;;  %v4500_v12 = vld [vmem:[#allocation2 + $0x178] sm:$0xf0]  ;;  %v3484_v40 = vadd.f32 %v7680_v48, %v3465_v27  ;;  %v3467_v48 = vadd.f32 %v7662_v54, %v7494_v41 }
 0x20f   : > { %3930 = vmatpush.bf16.msra.mxu3 %v5011_v7  ;;  %v3517_v35 = vadd.f32 %v3516_v53, %v7434_v13  ;;  %v5562_v53 = vld [vmem:[#allocation2 + $0x1bc] sm:$0xf] }
 0x210   : > { %v4884_v0 = vld [vmem:[#allocation2 + $0x478] sm:$0xf0]  ;;  %v3503_v5 = vadd.f32 %v7682_v29, %v3484_v40 }
 0x211   : > { %3819 = vmatmul.bf16.vlgmr.msrb.gmra.mxu0 %v6741_v46  ;;  %v3536_v32 = vadd.f32 %v3535_v60, %v3517_v35  ;;  %v5546_v35 = vld [vmem:[#allocation2 + $0x13c] sm:$0xf] }
 0x212   : > { %3983 = vmatpush.bf16.msrb.mxu1 %v5271_v58  ;;  %v7687_v21 = vpop.f32.mrf.mxu1  ;;  %3963 = vmatpush.bf16.msrb.mxu0 %v4823_v18  ;;  %v4503_v24 = vor.u32 %v5546_v35, %v4500_v12  ;;  %v4436_v29 = vld [vmem:[#allocation2 + $0xf8] sm:$0xf0] }
 0x213   : > { %3931 = vmatpush.bf16.msra.mxu3 %v4947_v26 }
 0x214   : > { %v7691_v33 = vpop.f32.mrf.mxu2 }
 0x215   : > { %v7689_v62 = vpop.f32.mrf.mxu3 }
 0x216   : > { %3984 = vmatpush.bf16.msrb.mxu1 %v5207_v11  ;;  %v3518_v43 = vpop.f32.mrf.mxu0  ;;  %3964 = vmatpush.bf16.msrb.mxu0 %v4759_v19  ;;  %v3486_v22 = vadd.f32 %v7689_v62, %v3467_v48 }
 0x217   : > { %3932 = vmatpush.bf16.msra.mxu3 %v4883_v20  ;;  %v3519_v58 = vadd.f32 %v3518_v43, %v7452_v14  ;;  %v4948_v20 = vld [vmem:[#allocation2 + $0x4f8] sm:$0xf0] }
 0x219   : > { %3876 = vmatmul.bf16.vlgmr.msra.gmra.mxu2 %v6741_v46  ;;  %v3538_v45 = vadd.f32 %v7687_v21, %v3519_v58  ;;  %v4042_v21 = vmax.f32 %v3500_v61, 0.0 }
 0x21a   : > { %3857 = vmatmul.bf16.vlgmr.msrb.gmra.mxu3 %v6773_v16  ;;  %5796 = vmatpush.bf16.msra.mxu2 %v4823_v18  ;;  %v3540_v7 = vpop.f32.mrf.mxu1  ;;  %v4564_v18 = vld [vmem:[#allocation2 + $0x1f8] sm:$0xf0] }
 0x21b   : > { %4007 = vmatpush.bf16.msrb.mxu3 %v5463_v52  ;;  %3985 = vmatpush.bf16.msrb.mxu1 %v5143_v25  ;;  %v4567_v1 = vor.u32 %v5562_v53, %v4564_v18  ;;  %v4951_v25 = vor.u32 %v5658_v36, %v4948_v20  ;;  %v5642_v52 = vld [vmem:[#allocation2 + $0x43c] sm:$0xf] }
 0x21c   : > { %v7701_v59 = vpop.f32.mrf.mxu2  ;;  %3965 = vmatpush.bf16.msrb.mxu0 %v4695_v51  ;;  %v4887_v34 = vor.u32 %v5642_v52, %v4884_v0 }
 0x21d   : > { %v3554_v15 = vpop.f32.mrf.mxu3  ;;  %5489 = vmatmul.msk.bf16.gmra.mxu1 %vm3101_vm3, %v6717_v50  ;;  %v3574_v27 = vadd.f32 %v7701_v59, %v7434_v13 }
 0x21e   : > { %v3555_v60 = vadd.f32 %v3554_v15, %v3536_v32  ;;  %5797 = vmatpush.bf16.msra.mxu2 %v4759_v19  ;;  %v3521_v11 = vpop.f32.mrf.mxu0 }
 0x21f   : > { %4008 = vmatpush.bf16.msrb.mxu3 %v5399_v49  ;;  %3986 = vmatpush.bf16.msrb.mxu1 %v5079_v6  ;;  %v3522_v19 = vadd.f32 %v3521_v11, %v7472_v9  ;;  %v5530_v6 = vld [vmem:[#allocation2 + $0xbc] sm:$0xf] }
 0x220   : > { %v4027_v26 = vmax.f32 %v3555_v60, 0.0  ;;  %3966 = vmatpush.bf16.msrb.mxu0 %v4631_v47  ;;  %v4439_v3 = vor.u32 %v5530_v6, %v4436_v29 }
 0x221   : > { %3824 = vmatmul.bf16.gmra.mxu0 %v6822_v44  ;;  %v3541_v43 = vadd.f32 %v3540_v7, %v3522_v19  ;;  %v4058_v7 = vmax.f32 %v3503_v5, 0.0 }
 0x222   : > { %v4087_v37 = vpack.c.bf16 %v4027_v26, %v4026_v31  ;;  %5798 = vmatpush.bf16.msra.mxu2 %v4695_v51  ;;  %v3542_v10 = vpop.f32.mrf.mxu1  ;;  %v3505_v31 = vadd.f32 %v7691_v33, %v3486_v22  ;;  %v4372_v33 = vld [vmem:[#allocation2 + $0x78] sm:$0xf0] }
 0x223   : > { %3987 = vmatpush.bf16.msrb.mxu1 %v5015_v30  ;;  %v5514_v30 = vld [vmem:[#allocation2 + $0x3c] sm:$0xf] }
 0x224   : > { %4119 = vst [vmem:[%s7478_s30 + $0x18] sm:$0xff] %v4087_v37  ;;  %v7712_v56 = vpop.f32.mrf.mxu2  ;;  %3967 = vmatpush.bf16.msrb.mxu0 %v4567_v1  ;;  %v4074_v37 = vmax.f32 %v3505_v31, 0.0  ;;  %v4375_v11 = vor.u32 %v5514_v30, %v4372_v33 }
 0x225   : > { %v3556_v38 = vpop.f32.mrf.mxu3 }
 0x226   : > { %v3557_v28 = vadd.f32 %v3556_v38, %v3538_v45  ;;  %5799 = vmatpush.bf16.msra.mxu2 %v4631_v47  ;;  %v3523_v55 = vpop.f32.mrf.mxu0 }
 0x227   : > { %3988 = vmatpush.bf16.msrb.mxu1 %v4951_v25  ;;  %v3524_v51 = vadd.f32 %v3523_v55, %v7494_v41 }
 0x228   : > { %v4043_v32 = vmax.f32 %v3557_v28, 0.0  ;;  %3968 = vmatpush.bf16.msrb.mxu0 %v4503_v24 }
 0x229   : > { %3881 = vmatmul.bf16.gmra.mxu2 %v6822_v44  ;;  %v3543_v26 = vadd.f32 %v3542_v10, %v3524_v51 }
 0x22a   : > { %v4095_v63 = vpack.c.bf16 %v4043_v32, %v4042_v21  ;;  %3862 = vmatmul.bf16.gmra.mxu3 %v6865_v17  ;;  %5800 = vmatpush.bf16.msra.mxu2 %v4567_v1  ;;  %v3611_v23 = vpop.f32.mrf.mxu1 }
 0x22b   : > { %3989 = vmatpush.bf16.msrb.mxu1 %v4887_v34 }
 0x22c   : > { %4127 = vst [vmem:[%s7478_s30 + $0x58] sm:$0xff] %v4095_v63  ;;  %v7723_v15 = vpop.f32.mrf.mxu2  ;;  %3969 = vmatpush.bf16.msrb.mxu0 %v4439_v3 }
 0x22d   : > { %v3559_v4 = vpop.f32.mrf.mxu3  ;;  %3914 = vmatmul.bf16.vlgmr.msra.gmra.mxu1 %v6773_v16  ;;  %v3579_v48 = vadd.f32 %v7723_v15, %v7472_v9 }
 0x22e   : > { %v3560_v49 = vadd.f32 %v3559_v4, %v3541_v43  ;;  %5801 = vmatpush.bf16.msra.mxu2 %v4503_v24  ;;  %v3592_v8 = vpop.f32.mrf.mxu0  ;;  %v3576_v24 = vadd.f32 %v7712_v56, %v7452_v14 }
 0x22f   : > { %v3593_v25 = vadd.f32 %v3592_v8, %v3574_v27 }
 0x230   : > { %v4059_v60 = vmax.f32 %v3560_v49, 0.0  ;;  %3970 = vmatpush.bf16.msrb.mxu0 %v4375_v11 }
 0x231   : > { %5490 = vmatmul.msk.bf16.vlgmr.msra.gmra.mxu0 %vm3101_vm3, %v6634_v2  ;;  %v3612_v52 = vadd.f32 %v3611_v23, %v3593_v25 }
 0x232   : > { %v4103_v39 = vpack.c.bf16 %v4059_v60, %v4058_v7  ;;  %v3613_v42 = vpop.f32.mrf.mxu1  ;;  %5802 = vmatpush.bf16.msra.mxu2 %v4439_v3 }
 0x233   : > { %v4028_v59 = vmax.f32 %v3612_v52, 0.0 }
 0x234   : > { %4135 = vst [vmem:[%s7478_s30 + $0x98] sm:$0xff] %v4103_v39  ;;  %v7732_v58 = vpop.f32.mrf.mxu2 }
 0x235   : > { %v3561_v54 = vpop.f32.mrf.mxu3  ;;  %v3581_v15 = vadd.f32 %v7732_v58, %v7494_v41 }
 0x236   : > { %v3562_v57 = vadd.f32 %v3561_v54, %v3543_v26  ;;  %v3594_v53 = vpop.f32.mrf.mxu0  ;;  %5803 = vmatpush.bf16.msra.mxu2 %v4375_v11 }
 0x237   : > { %v3595_v43 = vadd.f32 %v3594_v53, %v3576_v24 }
 0x238   : > { %v4075_v47 = vmax.f32 %v3562_v57, 0.0 }
 0x239   : > { %5492 = vmatmul.msk.bf16.vlgmr.msrb.gmra.mxu2 %vm3101_vm3, %v6634_v2  ;;  %v3614_v23 = vadd.f32 %v3613_v42, %v3595_v43 }
 0x23a   : > { %v4111_v62 = vpack.c.bf16 %v4075_v47, %v4074_v37  ;;  %3933 = vmatmul.bf16.vlgmr.msra.gmra.mxu3 %v6741_v46  ;;  %v3616_v18 = vpop.f32.mrf.mxu1 }
 0x23b   : > { %v4044_v51 = vmax.f32 %v3614_v23, 0.0 }
 0x23c   : > { %4143 = vst [vmem:[%s7478_s30 + $0xd8] sm:$0xff] %v4111_v62  ;;  %v3649_v20 = vpop.f32.mrf.mxu2 }
 0x23d   : > { %v3630_v36 = vpop.f32.mrf.mxu3  ;;  %3919 = vmatmul.bf16.gmra.mxu1 %v6865_v17 }
 0x23e   : > { %v3597_v10 = vpop.f32.mrf.mxu0  ;;  %v3631_v12 = vadd.f32 %v3630_v36, %v7434_v13 }
 0x23f   : > { %v3598_v6 = vadd.f32 %v3597_v10, %v3579_v48 }
 0x240   : > { %v3650_v0 = vadd.f32 %v3649_v20, %v3631_v12 }
 0x241   : > { %5491 = vmatmul.msk.bf16.gmra.mxu0 %vm3101_vm3, %v6717_v50  ;;  %v3617_v22 = vadd.f32 %v3616_v18, %v3598_v6 }
 0x242   : > { %v3618_v61 = vpop.f32.mrf.mxu1 }
 0x243   : > { %v4060_v54 = vmax.f32 %v3617_v22, 0.0 }
 0x244   : > { %v3651_v38 = vpop.f32.mrf.mxu2 }
 0x245   : > { %v3632_v45 = vpop.f32.mrf.mxu3 }
 0x246   : > { %v3599_v1 = vpop.f32.mrf.mxu0 }
 0x247   : > { %v3600_v57 = vadd.f32 %v3599_v1, %v3581_v15 }
 0x249   : > { %5493 = vmatmul.msk.bf16.gmra.mxu2 %vm3101_vm3, %v6717_v50  ;;  %v3619_v62 = vadd.f32 %v3618_v61, %v3600_v57 }
 0x24a   : > { %3938 = vmatmul.bf16.gmra.mxu3 %v6822_v44  ;;  %v7746_v35 = vpop.f32.mrf.mxu1 }
 0x24b   : > { %v4076_v36 = vmax.f32 %v3619_v62, 0.0  ;;  %v3688_v61 = vadd.f32 %v7746_v35, %v7434_v13 }
 0x24c   : > { %v3654_v19 = vpop.f32.mrf.mxu2 }
 0x24d   : > { %v3635_v28 = vpop.f32.mrf.mxu3  ;;  %3990 = vmatmul.bf16.vlgmr.msrb.gmra.mxu1 %v6741_v46  ;;  %v3633_v46 = vadd.f32 %v3632_v45, %v7452_v14 }
 0x24e   : > { %v3668_v21 = vpop.f32.mrf.mxu0  ;;  %v3636_v3 = vadd.f32 %v3635_v28, %v7472_v9 }
 0x24f   : > { %v3669_v34 = vadd.f32 %v3668_v21, %v3650_v0  ;;  %v3652_v4 = vadd.f32 %v3651_v38, %v3633_v46 }
 0x251   : > { %v4029_v55 = vmax.f32 %v3669_v34, 0.0  ;;  %3971 = vmatmul.bf16.vlgmr.msrb.gmra.mxu0 %v6773_v16 }
 0x252   : > { %v7752_v32 = vpop.f32.mrf.mxu1 }
 0x253   : > { %v4088_v5 = vpack.c.bf16 %v4029_v55, %v4028_v59  ;;  %v3690_v34 = vadd.f32 %v7752_v32, %v7452_v14 }
 0x254   : > { %v3656_v63 = vpop.f32.mrf.mxu2 }
 0x255   : > { %v3637_v40 = vpop.f32.mrf.mxu3  ;;  %4120 = vst [vmem:[%s7478_s30 + $0x20] sm:$0xff] %v4088_v5 }
 0x256   : > { %v3670_v56 = vpop.f32.mrf.mxu0  ;;  %v3638_v37 = vadd.f32 %v3637_v40, %v7494_v41 }
 0x257   : > { %v3671_v7 = vadd.f32 %v3670_v56, %v3652_v4 }
 0x258   : > { %v3657_v30 = vadd.f32 %v3656_v63, %v3638_v37 }
 0x259   : > { %3976 = vmatmul.bf16.vlgmr.msra.gmra.mxu2 %v6865_v17  ;;  %v4045_v29 = vmax.f32 %v3671_v7, 0.0  ;;  %v3655_v17 = vadd.f32 %v3654_v19, %v3636_v3 }
 0x25a   : > { %5494 = vmatmul.msk.bf16.vlgmr.msrb.gmra.mxu3 %vm3101_vm3, %v6634_v2  ;;  %v7762_v49 = vpop.f32.mrf.mxu1 }
 0x25b   : > { %v4096_v2 = vpack.c.bf16 %v4045_v29, %v4044_v51  ;;  %v3693_v48 = vadd.f32 %v7762_v49, %v7472_v9 }
 0x25c   : > { %v3725_v60 = vpop.f32.mrf.mxu2 }
 0x25d   : > { %v3706_v16 = vpop.f32.mrf.mxu3  ;;  %3995 = vmatmul.bf16.gmra.mxu1 %v6822_v44  ;;  %4128 = vst [vmem:[%s7478_s30 + $0x60] sm:$0xff] %v4096_v2 }
 0x25e   : > { %v3673_v39 = vpop.f32.mrf.mxu0  ;;  %v3707_v19 = vadd.f32 %v3706_v16, %v3688_v61 }
 0x25f   : > { %v3674_v42 = vadd.f32 %v3673_v39, %v3655_v17 }
 0x260   : > { %v3726_v52 = vadd.f32 %v3725_v60, %v3707_v19 }
 0x261   : > { %v4061_v44 = vmax.f32 %v3674_v42, 0.0 }
 0x262   : > { %v7769_v8 = vpop.f32.mrf.mxu1  ;;  %v4030_v40 = vmax.f32 %v3726_v52, 0.0 }
 0x263   : > { %v4104_v47 = vpack.c.bf16 %v4061_v44, %v4060_v54  ;;  %v3695_v42 = vadd.f32 %v7769_v8, %v7494_v41 }
 0x264   : > { %v3727_v26 = vpop.f32.mrf.mxu2 }
 0x265   : > { %v3708_v31 = vpop.f32.mrf.mxu3  ;;  %4136 = vst [vmem:[%s7478_s30 + $0xa0] sm:$0xff] %v4104_v47 }
 0x266   : > { %v3675_v33 = vpop.f32.mrf.mxu0  ;;  %v3709_v43 = vadd.f32 %v3708_v31, %v3690_v34 }
 0x267   : > { %v3676_v18 = vadd.f32 %v3675_v33, %v3657_v30 }
 0x268   : > { %v3728_v5 = vadd.f32 %v3727_v26, %v3709_v43 }
 0x269   : > { %v4077_v20 = vmax.f32 %v3676_v18, 0.0 }
 0x26a   : > { %5495 = vmatmul.msk.bf16.gmra.mxu3 %vm3101_vm3, %v6717_v50  ;;  %v3763_v53 = vpop.f32.mrf.mxu1  ;;  %v4046_v16 = vmax.f32 %v3728_v5, 0.0 }
 0x26b   : > { %v4112_v10 = vpack.c.bf16 %v4077_v20, %v4076_v36 }
 0x26c   : > { %v3730_v11 = vpop.f32.mrf.mxu2 }
 0x26d   : > { %v3711_v58 = vpop.f32.mrf.mxu3  ;;  %4144 = vst [vmem:[%s7478_s30 + $0xe0] sm:$0xff] %v4112_v10 }
 0x26e   : > { %v3744_v45 = vpop.f32.mrf.mxu0  ;;  %v3712_v51 = vadd.f32 %v3711_v58, %v3693_v48 }
 0x26f   : > { %v3745_v28 = vadd.f32 %v3744_v45, %v7434_v13 }
 0x270   : > { %v3731_v22 = vadd.f32 %v3730_v11, %v3712_v51 }
 0x271   : > { %v3764_v50 = vadd.f32 %v3763_v53, %v3745_v28 }
 0x272   : > { %v3765_v38 = vpop.f32.mrf.mxu1  ;;  %v4062_v49 = vmax.f32 %v3731_v22, 0.0 }
 0x274   : > { %v3732_v27 = vpop.f32.mrf.mxu2 }
 0x275   : > { %v3713_v1 = vpop.f32.mrf.mxu3 }
 0x276   : > { %v3746_v25 = vpop.f32.mrf.mxu0  ;;  %v3714_v54 = vadd.f32 %v3713_v1, %v3695_v42 }
 0x277   : > { %v3747_v59 = vadd.f32 %v3746_v25, %v7452_v14 }
 0x278   : > { %v3733_v47 = vadd.f32 %v3732_v27, %v3714_v54 }
 0x279   : > { %v3766_v23 = vadd.f32 %v3765_v38, %v3747_v59 }
 0x27a   : > { %v3768_v12 = vpop.f32.mrf.mxu1  ;;  %v4078_v18 = vmax.f32 %v3733_v47, 0.0 }
 0x27c   : > { %v3801_v21 = vpop.f32.mrf.mxu2 }
 0x27d   : > { %v3782_v0 = vpop.f32.mrf.mxu3  ;;  %v3802_v27 = vadd.f32 %v3801_v21, %v7434_v13 }
 0x27e   : > { %v3783_v24 = vadd.f32 %v3782_v0, %v3764_v50  ;;  %v3749_v55 = vpop.f32.mrf.mxu0 }
 0x27f   : > { %v3750_v32 = vadd.f32 %v3749_v55, %v7472_v9 }
 0x280   : > { %v4031_v63 = vmax.f32 %v3783_v24, 0.0 }
 0x281   : > { %v3769_v29 = vadd.f32 %v3768_v12, %v3750_v32 }
 0x282   : > { %v4089_v35 = vpack.c.bf16 %v4031_v63, %v4030_v40  ;;  %v3770_v46 = vpop.f32.mrf.mxu1 }
 0x284   : > { %4121 = vst [vmem:[%s7478_s30 + $0x28] sm:$0xff] %v4089_v35  ;;  %v3803_v56 = vpop.f32.mrf.mxu2 }
 0x285   : > { %v3784_v4 = vpop.f32.mrf.mxu3  ;;  %v3804_v40 = vadd.f32 %v3803_v56, %v7452_v14 }
 0x286   : > { %v3785_v7 = vadd.f32 %v3784_v4, %v3766_v23  ;;  %v3751_v3 = vpop.f32.mrf.mxu0 }
 0x287   : > { %v3752_v26 = vadd.f32 %v3751_v3, %v7494_v41 }
 0x288   : > { %v4047_v60 = vmax.f32 %v3785_v7, 0.0 }
 0x289   : > { %v3771_v62 = vadd.f32 %v3770_v46, %v3752_v26 }
 0x28a   : > { %v4097_v6 = vpack.c.bf16 %v4047_v60, %v4046_v16  ;;  %v3839_v2 = vpop.f32.mrf.mxu1 }
 0x28c   : > { %4129 = vst [vmem:[%s7478_s30 + $0x68] sm:$0xff] %v4097_v6  ;;  %v3806_v39 = vpop.f32.mrf.mxu2 }
 0x28d   : > { %v3787_v17 = vpop.f32.mrf.mxu3  ;;  %v3807_v32 = vadd.f32 %v3806_v39, %v7472_v9 }
 0x28e   : > { %v3788_v15 = vadd.f32 %v3787_v17, %v3769_v29  ;;  %v3820_v44 = vpop.f32.mrf.mxu0 }
 0x28f   : > { %v3821_v12 = vadd.f32 %v3820_v44, %v3802_v27 }
 0x290   : > { %v4063_v31 = vmax.f32 %v3788_v15, 0.0 }
 0x291   : > { %v3840_v0 = vadd.f32 %v3839_v2, %v3821_v12 }
 0x292   : > { %v4105_v57 = vpack.c.bf16 %v4063_v31, %v4062_v49  ;;  %v3841_v37 = vpop.f32.mrf.mxu1 }
 0x293   : > { %v4032_v55 = vmax.f32 %v3840_v0, 0.0 }
 0x294   : > { %4137 = vst [vmem:[%s7478_s30 + $0xa8] sm:$0xff] %v4105_v57  ;;  %v3808_v33 = vpop.f32.mrf.mxu2 }
 0x295   : > { %v3789_v30 = vpop.f32.mrf.mxu3  ;;  %v3809_v49 = vadd.f32 %v3808_v33, %v7494_v41 }
 0x296   : > { %v3790_v53 = vadd.f32 %v3789_v30, %v3771_v62  ;;  %v3822_v36 = vpop.f32.mrf.mxu0 }
 0x297   : > { %v3823_v46 = vadd.f32 %v3822_v36, %v3804_v40 }
 0x298   : > { %v4079_v58 = vmax.f32 %v3790_v53, 0.0 }
 0x299   : > { %v3842_v4 = vadd.f32 %v3841_v37, %v3823_v46 }
 0x29a   : > { %v4113_v11 = vpack.c.bf16 %v4079_v58, %v4078_v18  ;;  %v3844_v8 = vpop.f32.mrf.mxu1 }
 0x29b   : > { %v4048_v51 = vmax.f32 %v3842_v4, 0.0 }
 0x29c   : > { %4145 = vst [vmem:[%s7478_s30 + $0xe8] sm:$0xff] %v4113_v11  ;;  %v3877_v10 = vpop.f32.mrf.mxu2 }
 0x29d   : > { %v3858_v20 = vpop.f32.mrf.mxu3 }
 0x29e   : > { %v3825_v45 = vpop.f32.mrf.mxu0  ;;  %v3859_v52 = vadd.f32 %v3858_v20, %v7434_v13 }
 0x29f   : > { %v3826_v6 = vadd.f32 %v3825_v45, %v3807_v32 }
 0x2a0   : > { %v3878_v24 = vadd.f32 %v3877_v10, %v3859_v52 }
 0x2a1   : > { %v3845_v17 = vadd.f32 %v3844_v8, %v3826_v6 }
 0x2a2   : > { %v3846_v38 = vpop.f32.mrf.mxu1 }
 0x2a3   : > { %v4064_v54 = vmax.f32 %v3845_v17, 0.0 }
 0x2a4   : > { %v3879_v61 = vpop.f32.mrf.mxu2 }
 0x2a5   : > { %v3860_v1 = vpop.f32.mrf.mxu3 }
 0x2a6   : > { %v3827_v28 = vpop.f32.mrf.mxu0  ;;  %v3861_v21 = vadd.f32 %v3860_v1, %v7452_v14 }
 0x2a7   : > { %v3828_v57 = vadd.f32 %v3827_v28, %v3809_v49 }
 0x2a8   : > { %v3880_v48 = vadd.f32 %v3879_v61, %v3861_v21 }
 0x2a9   : > { %v3847_v30 = vadd.f32 %v3846_v38, %v3828_v57 }
 0x2aa   : > { %v3915_v19 = vpop.f32.mrf.mxu1 }
 0x2ab   : > { %v4080_v36 = vmax.f32 %v3847_v30, 0.0  ;;  %v3916_v61 = vadd.f32 %v3915_v19, %v7434_v13 }
 0x2ac   : > { %v3882_v25 = vpop.f32.mrf.mxu2 }
 0x2ad   : > { %v3863_v50 = vpop.f32.mrf.mxu3 }
 0x2ae   : > { %v3896_v34 = vpop.f32.mrf.mxu0  ;;  %v3864_v2 = vadd.f32 %v3863_v50, %v7472_v9 }
 0x2af   : > { %v3897_v63 = vadd.f32 %v3896_v34, %v3878_v24 }
 0x2b0   : > { %v3883_v15 = vadd.f32 %v3882_v25, %v3864_v2 }
 0x2b1   : > { %v4033_v5 = vmax.f32 %v3897_v63, 0.0 }
 0x2b2   : > { %v3917_v59 = vpop.f32.mrf.mxu1 }
 0x2b3   : > { %v4090_v23 = vpack.c.bf16 %v4033_v5, %v4032_v55  ;;  %v3918_v34 = vadd.f32 %v3917_v59, %v7452_v14 }
 0x2b4   : > { %v3884_v35 = vpop.f32.mrf.mxu2 }
 0x2b5   : > { %v3865_v43 = vpop.f32.mrf.mxu3  ;;  %4122 = vst [vmem:[%s7478_s30 + $0x30] sm:$0xff] %v4090_v23 }
 0x2b6   : > { %v3898_v7 = vpop.f32.mrf.mxu0  ;;  %v3866_v37 = vadd.f32 %v3865_v43, %v7494_v41 }
 0x2b7   : > { %v3899_v16 = vadd.f32 %v3898_v7, %v3880_v48 }
 0x2b8   : > { %v3885_v53 = vadd.f32 %v3884_v35, %v3866_v37 }
 0x2b9   : > { %v4049_v29 = vmax.f32 %v3899_v16, 0.0 }
 0x2ba   : > { %v3920_v3 = vpop.f32.mrf.mxu1 }
 0x2bb   : > { %v4098_v22 = vpack.c.bf16 %v4049_v29, %v4048_v51  ;;  %v3921_v21 = vadd.f32 %v3920_v3, %v7472_v9 }
 0x2bc   : > { %v3953_v56 = vpop.f32.mrf.mxu2 }
 0x2bd   : > { %v3934_v60 = vpop.f32.mrf.mxu3  ;;  %4130 = vst [vmem:[%s7478_s30 + $0x70] sm:$0xff] %v4098_v22 }
 0x2be   : > { %v3901_v42 = vpop.f32.mrf.mxu0  ;;  %v3935_v38 = vadd.f32 %v3934_v60, %v3916_v61 }
 0x2bf   : > { %v3902_v31 = vadd.f32 %v3901_v42, %v3883_v15 }
 0x2c0   : > { %v3954_v25 = vadd.f32 %v3953_v56, %v3935_v38 }
 0x2c1   : > { %v4065_v44 = vmax.f32 %v3902_v31, 0.0 }
 0x2c2   : > { %v3922_v62 = vpop.f32.mrf.mxu1  ;;  %v4034_v40 = vmax.f32 %v3954_v25, 0.0 }
 0x2c3   : > { %v4106_v47 = vpack.c.bf16 %v4065_v44, %v4064_v54  ;;  %v3923_v29 = vadd.f32 %v3922_v62, %v7494_v41 }
 0x2c4   : > { %v3955_v39 = vpop.f32.mrf.mxu2 }
 0x2c5   : > { %v3936_v26 = vpop.f32.mrf.mxu3  ;;  %4138 = vst [vmem:[%s7478_s30 + $0xb0] sm:$0xff] %v4106_v47 }
 0x2c6   : > { %v3903_v18 = vpop.f32.mrf.mxu0  ;;  %v3937_v35 = vadd.f32 %v3936_v26, %v3918_v34 }
 0x2c7   : > { %v3904_v58 = vadd.f32 %v3903_v18, %v3885_v53 }
 0x2c9   : > { %v4081_v8 = vmax.f32 %v3904_v58, 0.0 }
 0x2ca   : > { %v3991_v10 = vpop.f32.mrf.mxu1 }
 0x2cb   : > { %v4114_v20 = vpack.c.bf16 %v4081_v8, %v4080_v36 }
 0x2cc   : > { %v3958_v33 = vpop.f32.mrf.mxu2 }
 0x2cd   : > { %v3939_v11 = vpop.f32.mrf.mxu3  ;;  %4146 = vst [vmem:[%s7478_s30 + $0xf0] sm:$0xff] %v4114_v20 }
 0x2ce   : > { %v3972_v45 = vpop.f32.mrf.mxu0  ;;  %v3940_v32 = vadd.f32 %v3939_v11, %v3921_v21 }
 0x2cf   : > { %v3973_v28 = vadd.f32 %v3972_v45, %v7434_v13  ;;  %v3956_v13 = vadd.f32 %v3955_v39, %v3937_v35 }
 0x2d0   : > { %v3959_v60 = vadd.f32 %v3958_v33, %v3940_v32 }
 0x2d1   : > { %v3992_v50 = vadd.f32 %v3991_v10, %v3973_v28  ;;  %v4050_v59 = vmax.f32 %v3956_v13, 0.0 }
 0x2d2   : > { %v3993_v12 = vpop.f32.mrf.mxu1  ;;  %v4066_v3 = vmax.f32 %v3959_v60, 0.0 }
 0x2d4   : > { %v3960_v27 = vpop.f32.mrf.mxu2 }
 0x2d5   : > { %v3941_v1 = vpop.f32.mrf.mxu3 }
 0x2d6   : > { %v3974_v0 = vpop.f32.mrf.mxu0  ;;  %v3942_v17 = vadd.f32 %v3941_v1, %v3923_v29 }
 0x2d7   : > { %v3975_v43 = vadd.f32 %v3974_v0, %v7452_v14 }
 0x2d8   : > { %v3961_v42 = vadd.f32 %v3960_v27, %v3942_v17 }
 0x2d9   : > { %v3994_v46 = vadd.f32 %v3993_v12, %v3975_v43 }
 0x2da   : > { %v3996_v48 = vpop.f32.mrf.mxu1 }
 0x2dc   : > { %v3977_v19 = vpop.f32.mrf.mxu2 }
 0x2dd   : > { %v4010_v52 = vpop.f32.mrf.mxu3  ;;  %v3978_v23 = vadd.f32 %v3977_v19, %v7472_v9 }
 0x2de   : > { %v4011_v24 = vadd.f32 %v4010_v52, %v3992_v50 }
 0x2df   : > { %v3997_v16 = vadd.f32 %v3996_v48, %v3978_v23 }
 0x2e0   : > { %v4035_v63 = vmax.f32 %v4011_v24, 0.0 }
 0x2e2   : > { %v4091_v55 = vpack.c.bf16 %v4035_v63, %v4034_v40  ;;  %v3998_v22 = vpop.f32.mrf.mxu1 }
 0x2e4   : > { %4123 = vst [vmem:[%s7478_s30 + $0x38] sm:$0xff] %v4091_v55  ;;  %v3979_v56 = vpop.f32.mrf.mxu2 }
 0x2e5   : > { %v4012_v5 = vpop.f32.mrf.mxu3  ;;  %v3980_v9 = vadd.f32 %v3979_v56, %v7494_v41  ;;  %v4082_v41 = vmax.f32 %v3961_v42, 0.0 }
 0x2e6   : > { %v4013_v4 = vadd.f32 %v4012_v5, %v3994_v46 }
 0x2e7   : > { %v3999_v49 = vadd.f32 %v3998_v22, %v3980_v9 }
 0x2e8   : > { %v4051_v7 = vmax.f32 %v4013_v4, 0.0 }
 0x2ea   : > { %v4099_v14 = vpack.c.bf16 %v4051_v7, %v4050_v59 }
 0x2ec   : > { %4131 = vst [vmem:[%s7478_s30 + $0x78] sm:$0xff] %v4099_v14 }
 0x2ed   : > { %v4015_v51 = vpop.f32.mrf.mxu3 }
 0x2ee   : > { %v4016_v6 = vadd.f32 %v4015_v51, %v3997_v16 }
 0x2f0   : > { %v4067_v2 = vmax.f32 %v4016_v6, 0.0 }
 0x2f2   : > { %v4107_v15 = vpack.c.bf16 %v4067_v2, %v4066_v3 }
 0x2f4   : > { %4139 = vst [vmem:[%s7478_s30 + $0xb8] sm:$0xff] %v4107_v15 }
 0x2f5   : > { %v4017_v31 = vpop.f32.mrf.mxu3 }
 0x2f6   : > { %v4018_v26 = vadd.f32 %v4017_v31, %v3999_v49 }
 0x2f8   : > { %v4083_v39 = vmax.f32 %v4018_v26, 0.0 }
 0x2fa   : > { %v4115_v54 = vpack.c.bf16 %v4083_v39, %v4082_v41 }
 0x2fc   : > { %4147 = vst [vmem:[%s7478_s30 + $0xf8] sm:$0xff] %v4115_v54 }
 0x2fd   : > { %5979 = shalt.err (!%p5976_p0)
}
 0x2fe   : > { %s6048_s6 = smov 1024   ;;  %s6049_s21 = smov 64  }
 0x2ff   : > { %5813 = dma.vmem_to_hbm [thread:$0]  (%p6145_p5), %s4165_s27, 4096, %s4167_s22, %s4149_s15, %s6048_s6, %s6048_s6, %s6049_s21  }
 0x300 PF: > { %s4181_s29 = sand.u32 1, %s6018_s12   ;;  %p5824_p3 = pnand %p4283_p11, %p6119_p6 }
 0x301   : > { %s4182_s30 = scalar_lea.sflag [#allocation5], %s4181_s29 }
 0x302   : > { %p5825_p7 = pneg %p5824_p3 }
 0x304   : > { %6013 = dma.done.wait (%p5825_p7), %s4182_s30, 4096  }
 0x305   : > { %6015 = vsyncadd (%p5825_p7), %s4182_s30, 4294963200  ;;  %s20_s17 = sadd.s32 1, %s6038_s17   ;;  %s7869_s12 = smov %s6022_s13 }
 0x306   : > { %p17_p9 = scmp.ge.s32.totalorder %s20_s17, 4   ;;  %s7870_s13 = smov %s6026_s14 }
 0x307   : > { %s7871_s14 = smov %s6154_s11  ;;  %s7872_s15 = smov %s6034_s16 }
 0x308   : > { %s7873_s16 = smov %s7875_s5  ;;  %19 = sbr.rel (!%p17_p9) target bundleno = 7 (0x7), region = 85 }
 0x30d   :  { %4188 = vsyncpa [#allocation4], 1 }
 0x30e   :  { %4190 = vsyncpa [#allocation4 + $0x1], 1 }
 0x30f   :  { %4191 = vsyncpa [#allocation7], 1 }
 0x310   :  { %4192 = vsyncpa [#allocation5], 1 }
 0x311   :  { %4194 = vsyncpa [#allocation5 + $0x1], 1 }

</bundles_post_ra>
